<compile_context>
chip_gen: v5e
topology: v5e:2x2
jax: 0.10.0
libtpu: 0.0.40
codegen_flags: <defaults>
</compile_context>

<pallas_src>
import functools

import numpy as np
import jax
import jax.numpy as jnp
from jax.experimental import pallas as pl
from jax.experimental.pallas import tpu as pltpu

# -------------------- config (data_config / args equivalents) --------------------
MAX_SIZE = 16        # n
NODE_DIM = 10        # atom feature dim
BOND_DIM = 4         # bond types (relations / channels)
N_BLOCK = 2
SQUEEZE_FOLD = 2
A_NUM_FLOWS = 2
B_NUM_FLOWS = 2
HID_DIM = 32
FILTER_SIZE = 32
DEQ_SCALE = 0.6

NODE_PAD = 16                        # node feature dim padded 10 -> 16 (8-aligned halves)
D_ATOM = NODE_PAD * SQUEEZE_FOLD     # 32 (identical for both atom blocks)
DH_ATOM = D_ATOM // 2                # 16 (coupling split on an 8-aligned sublane)
NS0 = MAX_SIZE // SQUEEZE_FOLD       # 8 nodes after the first squeeze
NS1 = NS0 // SQUEEZE_FOLD            # 4 nodes after the second squeeze
# parity-major node order for block-0 lanes: even block-0 nodes first, then odd,
# so the block-0 -> block-1 squeeze is a pair of contiguous lane slices in-kernel.
NODE_PERM = np.array([0, 2, 4, 6, 1, 3, 5, 7], dtype=np.int32)
NODE_PERM_INV = np.argsort(NODE_PERM).astype(np.int32)

C0_BOND = BOND_DIM * SQUEEZE_FOLD ** 2           # 16 channels after squeeze 1
C1_BOND = (C0_BOND // 2) * SQUEEZE_FOLD ** 2     # 32 channels after squeeze 2
HW0_BOND = (MAX_SIZE // SQUEEZE_FOLD) ** 2       # 64 pixels / molecule (block 0)
HW1_BOND = (MAX_SIZE // SQUEEZE_FOLD ** 2) ** 2  # 16 pixels / molecule (block 1)


# ============================ Pallas kernels ============================

def _gate(st_scale):
    """scale = sigmoid(st+2), logs = log(scale) with one exp + one log + an EUP
    approx-reciprocal (half the heavy transcendentals of sigmoid-then-log)."""
    x = st_scale + 2.0
    t = jnp.exp(-x)
    denom = 1.0 + t
    logs = -jnp.log(denom)
    scale = pl.reciprocal(denom, approx=True)
    return scale, logs


def _atom_kernel(h0_ref, a0_ref, a1_ref, wself_ref, wrel_ref, bh_ref,
                 wout_ref, bout_ref, fmask_ref, s0_ref, s1_ref,
                 z0_ref, z1_ref, ld_ref, *, batch, n_flow, n_rel):
    """Both GraphFlow blocks (all graph-conv affine couplings), whole batch.

    Layout: features on sublanes (D_ATOM = 32, split at sublane 16),
    batch*nodes on lanes.  Weights are bf16, stacked over (block, flow), and
    stay resident in VMEM for the whole call.
    """
    dh = DH_ATOM
    fmask = fmask_ref[...]                                   # (dh, 1) valid-feature mask

    def coupling_block(h, blk, a_ref, ns):
        lanes = batch * ns
        ld = jnp.zeros((1, lanes), jnp.float32)
        for f in range(n_flow):                              # static unroll (tiny)
            lo, hi = h[:dh, :], h[dh:, :]
            # alternate the transformed half (fixed permutation, logdet = 0)
            xa, xb = (lo, hi) if f % 2 == 0 else (hi, lo)
            xa_b = xa.astype(jnp.bfloat16)
            # self message: (H, dh) @ (dh, lanes), bf16 MXU path, f32 accumulate
            msg = jnp.dot(wself_ref[blk, f], xa_b,
                          preferred_element_type=jnp.float32)
            # one small matmul per relation (no sub-128 lane slicing of a fused
            # 128-wide result)
            us = [jnp.dot(wrel_ref[blk, f, r], xa_b,
                          preferred_element_type=jnp.float32)
                  for r in range(n_rel)]
            # per-molecule adjacency contraction: no block-diag-over-batch tensor
            rel = []
            for b in range(batch):
                acc = jnp.zeros((HID_DIM, ns), jnp.float32)
                for r in range(n_rel):
                    acc = acc + jnp.dot(us[r][:, b * ns:(b + 1) * ns], a_ref[r, b],
                                        preferred_element_type=jnp.float32)
                rel.append(acc)
            msg = msg + jnp.concatenate(rel, axis=1)
            hmid = jnp.tanh(msg + bh_ref[blk, f])
            st = jnp.dot(wout_ref[blk, f], hmid.astype(jnp.bfloat16),
                         preferred_element_type=jnp.float32) + bout_ref[blk, f]
            scale, logs = _gate(st[:dh, :])
            xb = (xb + st[dh:, :]) * scale * fmask           # pad feature rows stay 0
            ld = ld + jnp.sum(logs * fmask, axis=0, keepdims=True)
            h = (jnp.concatenate([xa, xb], axis=0) if f % 2 == 0
                 else jnp.concatenate([xb, xa], axis=0))
        return h, ld

    out0, ld0 = coupling_block(h0_ref[...], 0, a0_ref, NS0)
    z0_ref[...] = out0[:dh, :]

    # multi-scale split + in-kernel squeeze: with the parity-major node order,
    # the even / odd block-0 nodes of each molecule are contiguous lane slices.
    carry = out0[dh:, :]                                     # (dh, batch*NS0)
    lo = jnp.concatenate([carry[:, b * NS0:b * NS0 + NS1] for b in range(batch)], axis=1)
    hi = jnp.concatenate([carry[:, b * NS0 + NS1:(b + 1) * NS0] for b in range(batch)], axis=1)
    h1 = jnp.concatenate([lo, hi], axis=0)                   # (D_ATOM, batch*NS1)

    out1, ld1 = coupling_block(h1, 1, a1_ref, NS1)
    z1_ref[...] = out1

    # per-molecule coupling log-det reduced in-kernel (lanes -> molecules)
    ld_ref[...] = (jnp.dot(ld0, s0_ref[...], preferred_element_type=jnp.float32)
                   + jnp.dot(ld1, s1_ref[...], preferred_element_type=jnp.float32))


def _bond_kernel(h_ref,
                 asc0_ref, abi0_ref, wct0_ref, w1t0_ref, b10_ref, w2t0_ref, b20_ref,
                 asc1_ref, abi1_ref, wct1_ref, w1t1_ref, b11_ref, w2t1_ref, b21_ref,
                 s0_ref, s1_ref,
                 z0_ref, z1_ref, ld_ref, *, n_flow, valid_lanes):
    """Both CC_Glow-style blocks (actnorm + invertible 1x1 conv + coupling).

    Layout: channels on sublanes (8-aligned coupling splits), batch-folded
    pixels on lanes; block 0 is 128 lanes wide at B = 2 and block 1 keeps the
    same 128-lane tile (only the first `valid_lanes` lanes are live) so every
    store / VPU op stays full-width.
    """
    def glow_block(h, asc, abi, wct, w1t, b1, w2t, b2, ch):
        lanes = h.shape[1]
        ld = jnp.zeros((1, lanes), jnp.float32)
        for f in range(n_flow):                               # static unroll
            h = h * asc[f] + abi[f]                           # actnorm (scale pre-exp'd)
            h = jnp.dot(wct[f], h.astype(jnp.bfloat16),
                        preferred_element_type=jnp.float32)   # invertible 1x1 conv
            ha, hb = h[:ch, :], h[ch:, :]
            hid = jnp.maximum(
                jnp.dot(w1t[f], ha.astype(jnp.bfloat16),
                        preferred_element_type=jnp.float32) + b1[f], 0.0)
            st = jnp.dot(w2t[f], hid.astype(jnp.bfloat16),
                         preferred_element_type=jnp.float32) + b2[f]
            scale, logs = _gate(st[:ch, :])
            hb = (hb + st[ch:, :]) * scale
            ld = ld + jnp.sum(logs, axis=0, keepdims=True)
            h = jnp.concatenate([ha, hb], axis=0)             # sublane-aligned concat
        return h, ld

    ch0 = C0_BOND // 2
    ch1 = C1_BOND // 2

    out0, ld0 = glow_block(h_ref[...], asc0_ref, abi0_ref, wct0_ref,
                           w1t0_ref, b10_ref, w2t0_ref, b20_ref, ch0)
    z0_ref[...] = out0[:ch0, :]

    # multi-scale split + in-kernel squeeze: the four squeeze phases are
    # contiguous lane chunks; rotate each to lane 0 and stack on sublanes,
    # keeping the full lane width (dead lanes zeroed; s1 masks them out of ld).
    carry = out0[ch0:, :]                                     # (ch0, P)
    parts = []
    for ph in range(SQUEEZE_FOLD ** 2):
        off = ph * valid_lanes
        parts.append(carry if off == 0 else
                     jnp.concatenate([carry[:, off:], carry[:, :off]], axis=1))
    h1 = jnp.concatenate(parts, axis=0)                       # (C1_BOND, P)
    lane_ok = (jax.lax.broadcasted_iota(jnp.int32, (1, h1.shape[1]), 1)
               < valid_lanes).astype(jnp.float32)
    h1 = h1 * lane_ok

    out1, ld1 = glow_block(h1, asc1_ref, abi1_ref, wct1_ref,
                           w1t1_ref, b11_ref, w2t1_ref, b21_ref, ch1)
    z1_ref[...] = out1

    ld_ref[...] = (jnp.dot(ld0, s0_ref[...], preferred_element_type=jnp.float32)
                   + jnp.dot(ld1, s1_ref[...], preferred_element_type=jnp.float32))


# ============================ flow models (thin JAX glue) ============================

def atom_model_forward(x_deq, adj, p):
    """GraphFlow-like multi-scale node flow conditioned on the pooled adjacency."""
    B = x_deq.shape[0]
    R = adj.shape[1]

    # ---- XLA layout prep (one shot, tiny) --------------------------------
    x_pad = jnp.pad(x_deq, ((0, 0), (0, 0), (0, NODE_PAD - NODE_DIM)))
    x_sq = x_pad.reshape(B, NS0, SQUEEZE_FOLD * NODE_PAD)
    x_sq = jnp.take(x_sq, NODE_PERM, axis=1)
    h0 = x_sq.transpose(2, 0, 1).reshape(D_ATOM, B * NS0)       # (32, B*8)

    # pooled per-molecule adjacencies (R, B, ns, ns) - no block-diag-over-batch
    a0 = adj.reshape(B, R, NS0, SQUEEZE_FOLD, NS0, SQUEEZE_FOLD).sum(axis=(3, 5))
    a1 = a0.reshape(B, R, NS1, SQUEEZE_FOLD, NS1, SQUEEZE_FOLD).sum(axis=(3, 5))
    a0p = jnp.take(jnp.take(a0, NODE_PERM, axis=2), NODE_PERM, axis=3)
    a0k = jnp.swapaxes(a0p.transpose(1, 0, 2, 3), -1, -2)
    a1k = jnp.swapaxes(a1.transpose(1, 0, 2, 3), -1, -2)

    # per-molecule log-det reduction matrices (lanes -> molecules)
    s0 = (jnp.arange(B * NS0)[:, None] // NS0 == jnp.arange(B)[None, :]).astype(jnp.float32)
    s1 = (jnp.arange(B * NS1)[:, None] // NS1 == jnp.arange(B)[None, :]).astype(jnp.float32)

    operands = (h0, a0k, a1k, p["wself"], p["wrel"], p["bh"], p["wout"],
                p["bout"], p["fmask"], s0, s1)

    def _mm_flops(lanes, ns):
        return 2 * (HID_DIM * DH_ATOM * lanes * (1 + BOND_DIM)
                    + B * BOND_DIM * HID_DIM * ns * ns
                    + D_ATOM * HID_DIM * lanes)
    flops = A_NUM_FLOWS * (_mm_flops(B * NS0, NS0) + _mm_flops(B * NS1, NS1))
    transc = A_NUM_FLOWS * (HID_DIM + 3 * DH_ATOM) * (B * NS0 + B * NS1)
    out_bytes = 4 * (DH_ATOM * B * NS0 + D_ATOM * B * NS1 + B)
    in_bytes = sum(int(np.prod(a.shape)) * a.dtype.itemsize for a in operands)

    kern = functools.partial(_atom_kernel, batch=B, n_flow=A_NUM_FLOWS, n_rel=R)
    z0, z1, ld = pl.pallas_call(
        kern,
        out_shape=(jax.ShapeDtypeStruct((DH_ATOM, B * NS0), jnp.float32),
                   jax.ShapeDtypeStruct((D_ATOM, B * NS1), jnp.float32),
                   jax.ShapeDtypeStruct((1, B), jnp.float32)),
        in_specs=[pl.BlockSpec(memory_space=pltpu.MemorySpace.VMEM)] * len(operands),
        out_specs=(pl.BlockSpec(memory_space=pltpu.MemorySpace.VMEM),) * 3,
        cost_estimate=pl.CostEstimate(flops=int(flops), transcendentals=int(transc),
                                      bytes_accessed=int(in_bytes + out_bytes)),
    )(*operands)

    # multi-scale latents back to (B, n_node, feat): strip pads, undo node perm
    z0_b = jnp.take(z0.reshape(DH_ATOM, B, NS0).transpose(1, 2, 0),
                    NODE_PERM_INV, axis=1)[..., :NODE_DIM]            # (B, 8, 10)
    z1_b = z1.reshape(D_ATOM, B, NS1).transpose(1, 2, 0)
    z1_b = z1_b.reshape(B, NS1, SQUEEZE_FOLD, NODE_PAD)[..., :NODE_DIM]
    z1_b = z1_b.reshape(B, NS1, SQUEEZE_FOLD * NODE_DIM)              # (B, 4, 20)
    return [z0_b, z1_b], ld.reshape(B)


def bond_model_forward(adj_deq, p):
    """CC_Glow-style multi-scale flow on the dequantized adjacency."""
    B = adj_deq.shape[0]
    sq = SQUEEZE_FOLD
    n1 = MAX_SIZE // (sq * sq)                 # 4
    P0 = B * HW0_BOND                          # 128 at B = 2 (lane-dense)
    P1 = B * HW1_BOND                          # 32  at B = 2 (kept padded to P0)

    # ---- XLA layout prep (one shot) ---------------------------------------
    # first squeeze + transpose to (C0, B*HW0) with the second-squeeze phase
    # outermost on lanes so the in-kernel block-1 squeeze is a lane rotation.
    t = adj_deq.reshape(B, BOND_DIM, n1, sq, sq, n1, sq, sq)
    # axes: b, c, y1, dy2, dy1, x1, dx2, dx1
    hcp0 = t.transpose(1, 4, 7, 3, 6, 0, 2, 5).reshape(C0_BOND, P0)

    lanes = jnp.arange(P0)
    s0 = (((lanes % P1) // HW1_BOND)[:, None] == jnp.arange(B)[None, :]).astype(jnp.float32)
    s1 = (((lanes // HW1_BOND)[:, None] == jnp.arange(B)[None, :])
          & (lanes < P1)[:, None]).astype(jnp.float32)

    p0, p1 = p
    operands = (hcp0,
                p0["ascale"], p0["abias"], p0["wct"], p0["w1t"], p0["b1"], p0["w2t"], p0["b2"],
                p1["ascale"], p1["abias"], p1["wct"], p1["w1t"], p1["b1"], p1["w2t"], p1["b2"],
                s0, s1)

    flops = B_NUM_FLOWS * 2 * P0 * (
        C0_BOND * C0_BOND + FILTER_SIZE * (C0_BOND // 2) + C0_BOND * FILTER_SIZE
        + C1_BOND * C1_BOND + FILTER_SIZE * (C1_BOND // 2) + C1_BOND * FILTER_SIZE)
    transc = B_NUM_FLOWS * 3 * P0 * (C0_BOND // 2 + C1_BOND // 2)
    out_bytes = 4 * ((C0_BOND // 2) * P0 + C1_BOND * P0 + B)
    in_bytes = sum(int(np.prod(a.shape)) * a.dtype.itemsize for a in operands)

    kern = functools.partial(_bond_kernel, n_flow=B_NUM_FLOWS, valid_lanes=P1)
    z0, z1, ld = pl.pallas_call(
        kern,
        out_shape=(jax.ShapeDtypeStruct((C0_BOND // 2, P0), jnp.float32),
                   jax.ShapeDtypeStruct((C1_BOND, P0), jnp.float32),
                   jax.ShapeDtypeStruct((1, B), jnp.float32)),
        in_specs=[pl.BlockSpec(memory_space=pltpu.MemorySpace.VMEM)] * len(operands),
        out_specs=(pl.BlockSpec(memory_space=pltpu.MemorySpace.VMEM),) * 3,
        cost_estimate=pl.CostEstimate(flops=int(flops), transcendentals=int(transc),
                                      bytes_accessed=int(in_bytes + out_bytes)),
    )(*operands)

    # multi-scale latents flattened per molecule
    z0_b = (z0.reshape(C0_BOND // 2, sq, sq, B, n1, n1)
            .transpose(3, 0, 1, 2, 4, 5).reshape(B, -1))
    z1_b = z1[:, :P1].reshape(C1_BOND, B, HW1_BOND).transpose(1, 0, 2).reshape(B, -1)
    z_adj = jnp.concatenate([z0_b, z1_b], axis=1)

    # coupling log-det from the kernel + hoisted parameter-only terms
    logdet = ld.reshape(B)
    logdet = logdet + HW0_BOND * (p0["an_sum"] + p0["wc_logdet_sum"]) \
                    + HW1_BOND * (p1["an_sum"] + p1["wc_logdet_sum"])
    return z_adj, logdet


def molhf_forward(params, x, adj, key):
    """Mirrors MolHF.forward (deq_type == 'random')."""
    B = x.shape[0]
    kx, ka = jax.random.split(key)
    x_deq = x + DEQ_SCALE * jax.random.uniform(kx, x.shape, x.dtype)
    adj_deq = adj + DEQ_SCALE * jax.random.uniform(ka, adj.shape, adj.dtype)
    z_x, logdet_x = atom_model_forward(x_deq, adj, params["atom"])
    z_adj, logdet_adj = bond_model_forward(adj_deq, params["bond"])
    z_adj = z_adj.reshape(B, -1)
    out = [z_x, z_adj]
    logdet = [logdet_x, logdet_adj]
    return out, logdet, params["prior_ln_var"]


# ============================ parameter init ============================

def init_molhf_params(key):
    params = {"prior_ln_var": jnp.zeros((1,), jnp.float32)}   # learn_prior=False
    keys = iter(jax.random.split(key, 64))

    def nrm(shape, scale=0.1, dtype=jnp.bfloat16):
        return (scale * jax.random.normal(next(keys), shape, jnp.float32)).astype(dtype)

    # atom (GraphFlow) weights: stacked over (block, flow), pre-transposed for
    # the features-on-sublanes layout, matmul operands stored in bf16.
    params["atom"] = dict(
        wself=nrm((N_BLOCK, A_NUM_FLOWS, HID_DIM, DH_ATOM)),
        wrel=nrm((N_BLOCK, A_NUM_FLOWS, BOND_DIM, HID_DIM, DH_ATOM)),
        bh=jnp.zeros((N_BLOCK, A_NUM_FLOWS, HID_DIM, 1), jnp.float32),
        wout=nrm((N_BLOCK, A_NUM_FLOWS, D_ATOM, HID_DIM)),
        bout=jnp.zeros((N_BLOCK, A_NUM_FLOWS, D_ATOM, 1), jnp.float32),
        fmask=(jnp.arange(DH_ATOM) < NODE_DIM).astype(jnp.float32).reshape(DH_ATOM, 1),
    )

    # bond (CC_Glow) weights: per-block stacks over flows; actnorm scale and the
    # invertible-1x1-conv slogdet are folded / precomputed at init.
    bond = []
    for C in (C0_BOND, C1_BOND):
        ch = C // 2
        wcs = []
        for _ in range(B_NUM_FLOWS):
            q, _ = jnp.linalg.qr(jax.random.normal(next(keys), (C, C), jnp.float32))
            wcs.append(q)
        wc = jnp.stack(wcs)                                    # (F, C, C) f32
        logs = jnp.zeros((B_NUM_FLOWS, C, 1), jnp.float32)     # actnorm log-scale
        bond.append(dict(
            ascale=jnp.exp(logs),                              # exp hoisted to init
            abias=jnp.zeros((B_NUM_FLOWS, C, 1), jnp.float32),
            an_sum=jnp.sum(logs),                              # actnorm logdet term
            wct=wc.transpose(0, 2, 1).astype(jnp.bfloat16),    # for h' = wc^T @ h
            wc_logdet_sum=jnp.sum(jnp.linalg.slogdet(wc)[1]),  # hoisted
            w1t=nrm((B_NUM_FLOWS, FILTER_SIZE, ch)),
            b1=jnp.zeros((B_NUM_FLOWS, FILTER_SIZE, 1), jnp.float32),
            w2t=nrm((B_NUM_FLOWS, C, FILTER_SIZE)),
            b2=jnp.zeros((B_NUM_FLOWS, C, 1), jnp.float32),
        ))
    params["bond"] = bond
    return params


# ============================ main ============================

if __name__ == "__main__":
    key = jax.random.PRNGKey(0)
    kp, kx, ka, kd = jax.random.split(key, 4)
    params = init_molhf_params(kp)

    B = 2
    x = jax.random.uniform(kx, (B, MAX_SIZE, NODE_DIM), jnp.float32)
    adj = jax.random.uniform(ka, (B, BOND_DIM, MAX_SIZE, MAX_SIZE), jnp.float32)
    adj = 0.5 * (adj + jnp.transpose(adj, (0, 1, 3, 2)))   # symmetric bond tensor

    fwd = jax.jit(molhf_forward)
    out, logdet, prior_ln_var = fwd(params, x, adj, kd)
    z_x, z_adj = out
    jax.block_until_ready((z_x, z_adj, logdet, prior_ln_var))

    # sanity: multi-scale flow preserves latent volume
    lat_x = sum(int(z.size) for z in z_x) // B
    assert lat_x == MAX_SIZE * NODE_DIM, (lat_x, MAX_SIZE * NODE_DIM)
    assert z_adj.shape == (B, BOND_DIM * MAX_SIZE * MAX_SIZE), z_adj.shape
    assert logdet[0].shape == (B,) and logdet[1].shape == (B,)
    assert all(bool(jnp.all(jnp.isfinite(z))) for z in z_x)
    assert bool(jnp.all(jnp.isfinite(z_adj)))
    assert bool(jnp.all(jnp.isfinite(logdet[0]))) and bool(jnp.all(jnp.isfinite(logdet[1])))

    print("KERNEL_OK")
</pallas_src>

<mosaic_0001>
module attributes {stable_mosaic.version = 11 : i64} {
  func.func @_bond_kernel(%arg0: memref<16x128xf32, #tpu.memory_space<vmem>>, %arg1: memref<2x16x1xf32, #tpu.memory_space<vmem>>, %arg2: memref<2x16x1xf32, #tpu.memory_space<vmem>>, %arg3: memref<2x16x16xbf16, #tpu.memory_space<vmem>>, %arg4: memref<2x32x8xbf16, #tpu.memory_space<vmem>>, %arg5: memref<2x32x1xf32, #tpu.memory_space<vmem>>, %arg6: memref<2x16x32xbf16, #tpu.memory_space<vmem>>, %arg7: memref<2x16x1xf32, #tpu.memory_space<vmem>>, %arg8: memref<2x32x1xf32, #tpu.memory_space<vmem>>, %arg9: memref<2x32x1xf32, #tpu.memory_space<vmem>>, %arg10: memref<2x32x32xbf16, #tpu.memory_space<vmem>>, %arg11: memref<2x32x16xbf16, #tpu.memory_space<vmem>>, %arg12: memref<2x32x1xf32, #tpu.memory_space<vmem>>, %arg13: memref<2x32x32xbf16, #tpu.memory_space<vmem>>, %arg14: memref<2x32x1xf32, #tpu.memory_space<vmem>>, %arg15: memref<128x2xf32, #tpu.memory_space<vmem>>, %arg16: memref<128x2xf32, #tpu.memory_space<vmem>>, %arg17: memref<8x128xf32, #tpu.memory_space<vmem>>, %arg18: memref<32x128xf32, #tpu.memory_space<vmem>>, %arg19: memref<1x2xf32, #tpu.memory_space<vmem>>) attributes {dimension_semantics = [], scalar_prefetch = 0 : i64, scratch_operands = 0 : i64, tpu.core_type = #tpu.core_type<tc>} {
    %c0 = arith.constant 0 : index
    %c0_0 = arith.constant 0 : index
    %0 = vector.load %arg0[%c0, %c0_0] : memref<16x128xf32, #tpu.memory_space<vmem>>, vector<16x128xf32>
    %cst = arith.constant 0.000000e+00 : f32
    %1 = vector.broadcast %cst : f32 to vector<1x128xf32>
    %c0_1 = arith.constant 0 : index
    %c0_2 = arith.constant 0 : index
    %c0_3 = arith.constant 0 : index
    %2 = vector.load %arg1[%c0_1, %c0_2, %c0_3] : memref<2x16x1xf32, #tpu.memory_space<vmem>>, vector<1x16x1xf32>
    %3 = vector.shape_cast %2 : vector<1x16x1xf32> to vector<16x1xf32>
    %4 = vector.broadcast %3 : vector<16x1xf32> to vector<16x128xf32>
    %5 = arith.mulf %0, %4 : vector<16x128xf32>
    %c0_4 = arith.constant 0 : index
    %c0_5 = arith.constant 0 : index
    %c0_6 = arith.constant 0 : index
    %6 = vector.load %arg2[%c0_4, %c0_5, %c0_6] : memref<2x16x1xf32, #tpu.memory_space<vmem>>, vector<1x16x1xf32>
    %7 = vector.shape_cast %6 : vector<1x16x1xf32> to vector<16x1xf32>
    %8 = vector.broadcast %7 : vector<16x1xf32> to vector<16x128xf32>
    %9 = arith.addf %5, %8 : vector<16x128xf32>
    %c0_7 = arith.constant 0 : index
    %c0_8 = arith.constant 0 : index
    %c0_9 = arith.constant 0 : index
    %10 = vector.load %arg3[%c0_7, %c0_8, %c0_9] : memref<2x16x16xbf16, #tpu.memory_space<vmem>>, vector<1x16x16xbf16>
    %11 = vector.shape_cast %10 : vector<1x16x16xbf16> to vector<16x16xbf16>
    %12 = arith.truncf %9 : vector<16x128xf32> to vector<16x128xbf16>
    %cst_10 = arith.constant dense<0.000000e+00> : vector<16x128xf32>
    %13 = tpu.matmul %11, %12, %cst_10 {dimension_numbers = #tpu.dot_dimension_numbers<[1], [0], [0], [1], [0, 0, 1, 1], [], []>} : vector<16x16xbf16>, vector<16x128xbf16>, vector<16x128xf32> -> vector<16x128xf32>
    %14 = vector.extract_strided_slice %13 {offsets = [0, 0], sizes = [8, 128], strides = [1, 1]} : vector<16x128xf32> to vector<8x128xf32>
    %15 = vector.extract_strided_slice %13 {offsets = [8, 0], sizes = [8, 128], strides = [1, 1]} : vector<16x128xf32> to vector<8x128xf32>
    %c0_11 = arith.constant 0 : index
    %c0_12 = arith.constant 0 : index
    %c0_13 = arith.constant 0 : index
    %16 = vector.load %arg4[%c0_11, %c0_12, %c0_13] : memref<2x32x8xbf16, #tpu.memory_space<vmem>>, vector<1x32x8xbf16>
    %17 = vector.shape_cast %16 : vector<1x32x8xbf16> to vector<32x8xbf16>
    %18 = arith.truncf %14 : vector<8x128xf32> to vector<8x128xbf16>
    %cst_14 = arith.constant dense<0.000000e+00> : vector<32x128xf32>
    %19 = tpu.matmul %17, %18, %cst_14 {dimension_numbers = #tpu.dot_dimension_numbers<[1], [0], [0], [1], [0, 0, 1, 1], [], []>} : vector<32x8xbf16>, vector<8x128xbf16>, vector<32x128xf32> -> vector<32x128xf32>
    %c0_15 = arith.constant 0 : index
    %c0_16 = arith.constant 0 : index
    %c0_17 = arith.constant 0 : index
    %20 = vector.load %arg5[%c0_15, %c0_16, %c0_17] : memref<2x32x1xf32, #tpu.memory_space<vmem>>, vector<1x32x1xf32>
    %21 = vector.shape_cast %20 : vector<1x32x1xf32> to vector<32x1xf32>
    %22 = vector.broadcast %21 : vector<32x1xf32> to vector<32x128xf32>
    %23 = arith.addf %19, %22 : vector<32x128xf32>
    %cst_18 = arith.constant 0.000000e+00 : f32
    %24 = vector.broadcast %cst_18 : f32 to vector<32x128xf32>
    %25 = arith.maximumf %23, %24 : vector<32x128xf32>
    %c0_19 = arith.constant 0 : index
    %c0_20 = arith.constant 0 : index
    %c0_21 = arith.constant 0 : index
    %26 = vector.load %arg6[%c0_19, %c0_20, %c0_21] : memref<2x16x32xbf16, #tpu.memory_space<vmem>>, vector<1x16x32xbf16>
    %27 = vector.shape_cast %26 : vector<1x16x32xbf16> to vector<16x32xbf16>
    %28 = arith.truncf %25 : vector<32x128xf32> to vector<32x128xbf16>
    %cst_22 = arith.constant dense<0.000000e+00> : vector<16x128xf32>
    %29 = tpu.matmul %27, %28, %cst_22 {dimension_numbers = #tpu.dot_dimension_numbers<[1], [0], [0], [1], [0, 0, 1, 1], [], []>} : vector<16x32xbf16>, vector<32x128xbf16>, vector<16x128xf32> -> vector<16x128xf32>
    %c0_23 = arith.constant 0 : index
    %c0_24 = arith.constant 0 : index
    %c0_25 = arith.constant 0 : index
    %30 = vector.load %arg7[%c0_23, %c0_24, %c0_25] : memref<2x16x1xf32, #tpu.memory_space<vmem>>, vector<1x16x1xf32>
    %31 = vector.shape_cast %30 : vector<1x16x1xf32> to vector<16x1xf32>
    %32 = vector.broadcast %31 : vector<16x1xf32> to vector<16x128xf32>
    %33 = arith.addf %29, %32 : vector<16x128xf32>
    %34 = vector.extract_strided_slice %33 {offsets = [0, 0], sizes = [8, 128], strides = [1, 1]} : vector<16x128xf32> to vector<8x128xf32>
    %cst_26 = arith.constant 2.000000e+00 : f32
    %35 = vector.broadcast %cst_26 : f32 to vector<8x128xf32>
    %36 = arith.addf %34, %35 : vector<8x128xf32>
    %cst_27 = arith.constant 0.000000e+00 : f32
    %37 = vector.broadcast %cst_27 : f32 to vector<8x128xf32>
    %38 = arith.subf %37, %36 : vector<8x128xf32>
    %39 = math.exp %38 : vector<8x128xf32>
    %cst_28 = arith.constant 1.000000e+00 : f32
    %40 = vector.broadcast %cst_28 : f32 to vector<8x128xf32>
    %41 = arith.addf %40, %39 : vector<8x128xf32>
    %42 = math.log %41 : vector<8x128xf32>
    %cst_29 = arith.constant 0.000000e+00 : f32
    %43 = vector.broadcast %cst_29 : f32 to vector<8x128xf32>
    %44 = arith.subf %43, %42 : vector<8x128xf32>
    %45 = tpu.reciprocal %41 {approx = true} : vector<8x128xf32> -> vector<8x128xf32>
    %46 = vector.extract_strided_slice %33 {offsets = [8, 0], sizes = [8, 128], strides = [1, 1]} : vector<16x128xf32> to vector<8x128xf32>
    %47 = arith.addf %15, %46 : vector<8x128xf32>
    %48 = arith.mulf %47, %45 : vector<8x128xf32>
    %cst_30 = arith.constant dense<0.000000e+00> : vector<128xf32>
    %49 = vector.multi_reduction <add>, %44, %cst_30 [0] : vector<8x128xf32> to vector<128xf32>
    %50 = vector.shape_cast %49 : vector<128xf32> to vector<1x128xf32>
    %51 = arith.addf %1, %50 : vector<1x128xf32>
    %52 = tpu.concatenate %14, %48 in 0 : vector<8x128xf32>, vector<8x128xf32> -> vector<16x128xf32>
    %c1 = arith.constant 1 : index
    %c0_31 = arith.constant 0 : index
    %c0_32 = arith.constant 0 : index
    %53 = vector.load %arg1[%c1, %c0_31, %c0_32] : memref<2x16x1xf32, #tpu.memory_space<vmem>>, vector<1x16x1xf32>
    %54 = vector.shape_cast %53 : vector<1x16x1xf32> to vector<16x1xf32>
    %55 = vector.broadcast %54 : vector<16x1xf32> to vector<16x128xf32>
    %56 = arith.mulf %52, %55 : vector<16x128xf32>
    %c1_33 = arith.constant 1 : index
    %c0_34 = arith.constant 0 : index
    %c0_35 = arith.constant 0 : index
    %57 = vector.load %arg2[%c1_33, %c0_34, %c0_35] : memref<2x16x1xf32, #tpu.memory_space<vmem>>, vector<1x16x1xf32>
    %58 = vector.shape_cast %57 : vector<1x16x1xf32> to vector<16x1xf32>
    %59 = vector.broadcast %58 : vector<16x1xf32> to vector<16x128xf32>
    %60 = arith.addf %56, %59 : vector<16x128xf32>
    %c1_36 = arith.constant 1 : index
    %c0_37 = arith.constant 0 : index
    %c0_38 = arith.constant 0 : index
    %61 = vector.load %arg3[%c1_36, %c0_37, %c0_38] : memref<2x16x16xbf16, #tpu.memory_space<vmem>>, vector<1x16x16xbf16>
    %62 = vector.shape_cast %61 : vector<1x16x16xbf16> to vector<16x16xbf16>
    %63 = arith.truncf %60 : vector<16x128xf32> to vector<16x128xbf16>
    %cst_39 = arith.constant dense<0.000000e+00> : vector<16x128xf32>
    %64 = tpu.matmul %62, %63, %cst_39 {dimension_numbers = #tpu.dot_dimension_numbers<[1], [0], [0], [1], [0, 0, 1, 1], [], []>} : vector<16x16xbf16>, vector<16x128xbf16>, vector<16x128xf32> -> vector<16x128xf32>
    %65 = vector.extract_strided_slice %64 {offsets = [0, 0], sizes = [8, 128], strides = [1, 1]} : vector<16x128xf32> to vector<8x128xf32>
    %66 = vector.extract_strided_slice %64 {offsets = [8, 0], sizes = [8, 128], strides = [1, 1]} : vector<16x128xf32> to vector<8x128xf32>
    %c1_40 = arith.constant 1 : index
    %c0_41 = arith.constant 0 : index
    %c0_42 = arith.constant 0 : index
    %67 = vector.load %arg4[%c1_40, %c0_41, %c0_42] : memref<2x32x8xbf16, #tpu.memory_space<vmem>>, vector<1x32x8xbf16>
    %68 = vector.shape_cast %67 : vector<1x32x8xbf16> to vector<32x8xbf16>
    %69 = arith.truncf %65 : vector<8x128xf32> to vector<8x128xbf16>
    %cst_43 = arith.constant dense<0.000000e+00> : vector<32x128xf32>
    %70 = tpu.matmul %68, %69, %cst_43 {dimension_numbers = #tpu.dot_dimension_numbers<[1], [0], [0], [1], [0, 0, 1, 1], [], []>} : vector<32x8xbf16>, vector<8x128xbf16>, vector<32x128xf32> -> vector<32x128xf32>
    %c1_44 = arith.constant 1 : index
    %c0_45 = arith.constant 0 : index
    %c0_46 = arith.constant 0 : index
    %71 = vector.load %arg5[%c1_44, %c0_45, %c0_46] : memref<2x32x1xf32, #tpu.memory_space<vmem>>, vector<1x32x1xf32>
    %72 = vector.shape_cast %71 : vector<1x32x1xf32> to vector<32x1xf32>
    %73 = vector.broadcast %72 : vector<32x1xf32> to vector<32x128xf32>
    %74 = arith.addf %70, %73 : vector<32x128xf32>
    %cst_47 = arith.constant 0.000000e+00 : f32
    %75 = vector.broadcast %cst_47 : f32 to vector<32x128xf32>
    %76 = arith.maximumf %74, %75 : vector<32x128xf32>
    %c1_48 = arith.constant 1 : index
    %c0_49 = arith.constant 0 : index
    %c0_50 = arith.constant 0 : index
    %77 = vector.load %arg6[%c1_48, %c0_49, %c0_50] : memref<2x16x32xbf16, #tpu.memory_space<vmem>>, vector<1x16x32xbf16>
    %78 = vector.shape_cast %77 : vector<1x16x32xbf16> to vector<16x32xbf16>
    %79 = arith.truncf %76 : vector<32x128xf32> to vector<32x128xbf16>
    %cst_51 = arith.constant dense<0.000000e+00> : vector<16x128xf32>
    %80 = tpu.matmul %78, %79, %cst_51 {dimension_numbers = #tpu.dot_dimension_numbers<[1], [0], [0], [1], [0, 0, 1, 1], [], []>} : vector<16x32xbf16>, vector<32x128xbf16>, vector<16x128xf32> -> vector<16x128xf32>
    %c1_52 = arith.constant 1 : index
    %c0_53 = arith.constant 0 : index
    %c0_54 = arith.constant 0 : index
    %81 = vector.load %arg7[%c1_52, %c0_53, %c0_54] : memref<2x16x1xf32, #tpu.memory_space<vmem>>, vector<1x16x1xf32>
    %82 = vector.shape_cast %81 : vector<1x16x1xf32> to vector<16x1xf32>
    %83 = vector.broadcast %82 : vector<16x1xf32> to vector<16x128xf32>
    %84 = arith.addf %80, %83 : vector<16x128xf32>
    %85 = vector.extract_strided_slice %84 {offsets = [0, 0], sizes = [8, 128], strides = [1, 1]} : vector<16x128xf32> to vector<8x128xf32>
    %cst_55 = arith.constant 2.000000e+00 : f32
    %86 = vector.broadcast %cst_55 : f32 to vector<8x128xf32>
    %87 = arith.addf %85, %86 : vector<8x128xf32>
    %cst_56 = arith.constant 0.000000e+00 : f32
    %88 = vector.broadcast %cst_56 : f32 to vector<8x128xf32>
    %89 = arith.subf %88, %87 : vector<8x128xf32>
    %90 = math.exp %89 : vector<8x128xf32>
    %cst_57 = arith.constant 1.000000e+00 : f32
    %91 = vector.broadcast %cst_57 : f32 to vector<8x128xf32>
    %92 = arith.addf %91, %90 : vector<8x128xf32>
    %93 = math.log %92 : vector<8x128xf32>
    %cst_58 = arith.constant 0.000000e+00 : f32
    %94 = vector.broadcast %cst_58 : f32 to vector<8x128xf32>
    %95 = arith.subf %94, %93 : vector<8x128xf32>
    %96 = tpu.reciprocal %92 {approx = true} : vector<8x128xf32> -> vector<8x128xf32>
    %97 = vector.extract_strided_slice %84 {offsets = [8, 0], sizes = [8, 128], strides = [1, 1]} : vector<16x128xf32> to vector<8x128xf32>
    %98 = arith.addf %66, %97 : vector<8x128xf32>
    %99 = arith.mulf %98, %96 : vector<8x128xf32>
    %cst_59 = arith.constant dense<0.000000e+00> : vector<128xf32>
    %100 = vector.multi_reduction <add>, %95, %cst_59 [0] : vector<8x128xf32> to vector<128xf32>
    %101 = vector.shape_cast %100 : vector<128xf32> to vector<1x128xf32>
    %102 = arith.addf %51, %101 : vector<1x128xf32>
    %103 = tpu.concatenate %65, %99 in 0 : vector<8x128xf32>, vector<8x128xf32> -> vector<16x128xf32>
    %104 = vector.extract_strided_slice %103 {offsets = [0, 0], sizes = [8, 128], strides = [1, 1]} : vector<16x128xf32> to vector<8x128xf32>
    %c0_60 = arith.constant 0 : index
    %c0_61 = arith.constant 0 : index
    %105 = vector.load %arg17[%c0_60, %c0_61] : memref<8x128xf32, #tpu.memory_space<vmem>>, vector<8x128xf32>
    tpu.vector_store %arg17[%c0_60, %c0_61], %104 {strides = array<i32>} : memref<8x128xf32, #tpu.memory_space<vmem>>, vector<8x128xf32>,
    %106 = vector.extract_strided_slice %103 {offsets = [8, 0], sizes = [8, 128], strides = [1, 1]} : vector<16x128xf32> to vector<8x128xf32>
    %107 = vector.extract_strided_slice %106 {offsets = [0, 32], sizes = [8, 96], strides = [1, 1]} : vector<8x128xf32> to vector<8x96xf32>
    %108 = vector.extract_strided_slice %106 {offsets = [0, 0], sizes = [8, 32], strides = [1, 1]} : vector<8x128xf32> to vector<8x32xf32>
    %109 = tpu.concatenate %107, %108 in 1 : vector<8x96xf32>, vector<8x32xf32> -> vector<8x128xf32>
    %110 = vector.extract_strided_slice %106 {offsets = [0, 64], sizes = [8, 64], strides = [1, 1]} : vector<8x128xf32> to vector<8x64xf32>
    %111 = vector.extract_strided_slice %106 {offsets = [0, 0], sizes = [8, 64], strides = [1, 1]} : vector<8x128xf32> to vector<8x64xf32>
    %112 = tpu.concatenate %110, %111 in 1 : vector<8x64xf32>, vector<8x64xf32> -> vector<8x128xf32>
    %113 = vector.extract_strided_slice %106 {offsets = [0, 96], sizes = [8, 32], strides = [1, 1]} : vector<8x128xf32> to vector<8x32xf32>
    %114 = vector.extract_strided_slice %106 {offsets = [0, 0], sizes = [8, 96], strides = [1, 1]} : vector<8x128xf32> to vector<8x96xf32>
    %115 = tpu.concatenate %113, %114 in 1 : vector<8x32xf32>, vector<8x96xf32> -> vector<8x128xf32>
    %116 = tpu.concatenate %106, %109, %112, %115 in 0 : vector<8x128xf32>, vector<8x128xf32>, vector<8x128xf32>, vector<8x128xf32> -> vector<32x128xf32>
    %117 = tpu.iota {dimensions = array<i32: 1>} : vector<1x128xi32>
    %c32_i32 = arith.constant 32 : i32
    %118 = vector.broadcast %c32_i32 : i32 to vector<1x128xi32>
    %119 = arith.cmpi slt, %117, %118 : vector<1x128xi32>
    %120 = arith.extui %119 : vector<1x128xi1> to vector<1x128xi32>
    %121 = arith.sitofp %120 : vector<1x128xi32> to vector<1x128xf32>
    %122 = vector.broadcast %121 : vector<1x128xf32> to vector<32x128xf32>
    %123 = arith.mulf %116, %122 : vector<32x128xf32>
    %cst_62 = arith.constant 0.000000e+00 : f32
    %124 = vector.broadcast %cst_62 : f32 to vector<1x128xf32>
    %c0_63 = arith.constant 0 : index
    %c0_64 = arith.constant 0 : index
    %c0_65 = arith.constant 0 : index
    %125 = vector.load %arg8[%c0_63, %c0_64, %c0_65] : memref<2x32x1xf32, #tpu.memory_space<vmem>>, vector<1x32x1xf32>
    %126 = vector.shape_cast %125 : vector<1x32x1xf32> to vector<32x1xf32>
    %127 = vector.broadcast %126 : vector<32x1xf32> to vector<32x128xf32>
    %128 = arith.mulf %123, %127 : vector<32x128xf32>
    %c0_66 = arith.constant 0 : index
    %c0_67 = arith.constant 0 : index
    %c0_68 = arith.constant 0 : index
    %129 = vector.load %arg9[%c0_66, %c0_67, %c0_68] : memref<2x32x1xf32, #tpu.memory_space<vmem>>, vector<1x32x1xf32>
    %130 = vector.shape_cast %129 : vector<1x32x1xf32> to vector<32x1xf32>
    %131 = vector.broadcast %130 : vector<32x1xf32> to vector<32x128xf32>
    %132 = arith.addf %128, %131 : vector<32x128xf32>
    %c0_69 = arith.constant 0 : index
    %c0_70 = arith.constant 0 : index
    %c0_71 = arith.constant 0 : index
    %133 = vector.load %arg10[%c0_69, %c0_70, %c0_71] : memref<2x32x32xbf16, #tpu.memory_space<vmem>>, vector<1x32x32xbf16>
    %134 = vector.shape_cast %133 : vector<1x32x32xbf16> to vector<32x32xbf16>
    %135 = arith.truncf %132 : vector<32x128xf32> to vector<32x128xbf16>
    %cst_72 = arith.constant dense<0.000000e+00> : vector<32x128xf32>
    %136 = tpu.matmul %134, %135, %cst_72 {dimension_numbers = #tpu.dot_dimension_numbers<[1], [0], [0], [1], [0, 0, 1, 1], [], []>} : vector<32x32xbf16>, vector<32x128xbf16>, vector<32x128xf32> -> vector<32x128xf32>
    %137 = vector.extract_strided_slice %136 {offsets = [0, 0], sizes = [16, 128], strides = [1, 1]} : vector<32x128xf32> to vector<16x128xf32>
    %138 = vector.extract_strided_slice %136 {offsets = [16, 0], sizes = [16, 128], strides = [1, 1]} : vector<32x128xf32> to vector<16x128xf32>
    %c0_73 = arith.constant 0 : index
    %c0_74 = arith.constant 0 : index
    %c0_75 = arith.constant 0 : index
    %139 = vector.load %arg11[%c0_73, %c0_74, %c0_75] : memref<2x32x16xbf16, #tpu.memory_space<vmem>>, vector<1x32x16xbf16>
    %140 = vector.shape_cast %139 : vector<1x32x16xbf16> to vector<32x16xbf16>
    %141 = arith.truncf %137 : vector<16x128xf32> to vector<16x128xbf16>
    %cst_76 = arith.constant dense<0.000000e+00> : vector<32x128xf32>
    %142 = tpu.matmul %140, %141, %cst_76 {dimension_numbers = #tpu.dot_dimension_numbers<[1], [0], [0], [1], [0, 0, 1, 1], [], []>} : vector<32x16xbf16>, vector<16x128xbf16>, vector<32x128xf32> -> vector<32x128xf32>
    %c0_77 = arith.constant 0 : index
    %c0_78 = arith.constant 0 : index
    %c0_79 = arith.constant 0 : index
    %143 = vector.load %arg12[%c0_77, %c0_78, %c0_79] : memref<2x32x1xf32, #tpu.memory_space<vmem>>, vector<1x32x1xf32>
    %144 = vector.shape_cast %143 : vector<1x32x1xf32> to vector<32x1xf32>
    %145 = vector.broadcast %144 : vector<32x1xf32> to vector<32x128xf32>
    %146 = arith.addf %142, %145 : vector<32x128xf32>
    %cst_80 = arith.constant 0.000000e+00 : f32
    %147 = vector.broadcast %cst_80 : f32 to vector<32x128xf32>
    %148 = arith.maximumf %146, %147 : vector<32x128xf32>
    %c0_81 = arith.constant 0 : index
    %c0_82 = arith.constant 0 : index
    %c0_83 = arith.constant 0 : index
    %149 = vector.load %arg13[%c0_81, %c0_82, %c0_83] : memref<2x32x32xbf16, #tpu.memory_space<vmem>>, vector<1x32x32xbf16>
    %150 = vector.shape_cast %149 : vector<1x32x32xbf16> to vector<32x32xbf16>
    %151 = arith.truncf %148 : vector<32x128xf32> to vector<32x128xbf16>
    %cst_84 = arith.constant dense<0.000000e+00> : vector<32x128xf32>
    %152 = tpu.matmul %150, %151, %cst_84 {dimension_numbers = #tpu.dot_dimension_numbers<[1], [0], [0], [1], [0, 0, 1, 1], [], []>} : vector<32x32xbf16>, vector<32x128xbf16>, vector<32x128xf32> -> vector<32x128xf32>
    %c0_85 = arith.constant 0 : index
    %c0_86 = arith.constant 0 : index
    %c0_87 = arith.constant 0 : index
    %153 = vector.load %arg14[%c0_85, %c0_86, %c0_87] : memref<2x32x1xf32, #tpu.memory_space<vmem>>, vector<1x32x1xf32>
    %154 = vector.shape_cast %153 : vector<1x32x1xf32> to vector<32x1xf32>
    %155 = vector.broadcast %154 : vector<32x1xf32> to vector<32x128xf32>
    %156 = arith.addf %152, %155 : vector<32x128xf32>
    %157 = vector.extract_strided_slice %156 {offsets = [0, 0], sizes = [16, 128], strides = [1, 1]} : vector<32x128xf32> to vector<16x128xf32>
    %cst_88 = arith.constant 2.000000e+00 : f32
    %158 = vector.broadcast %cst_88 : f32 to vector<16x128xf32>
    %159 = arith.addf %157, %158 : vector<16x128xf32>
    %cst_89 = arith.constant 0.000000e+00 : f32
    %160 = vector.broadcast %cst_89 : f32 to vector<16x128xf32>
    %161 = arith.subf %160, %159 : vector<16x128xf32>
    %162 = math.exp %161 : vector<16x128xf32>
    %cst_90 = arith.constant 1.000000e+00 : f32
    %163 = vector.broadcast %cst_90 : f32 to vector<16x128xf32>
    %164 = arith.addf %163, %162 : vector<16x128xf32>
    %165 = math.log %164 : vector<16x128xf32>
    %cst_91 = arith.constant 0.000000e+00 : f32
    %166 = vector.broadcast %cst_91 : f32 to vector<16x128xf32>
    %167 = arith.subf %166, %165 : vector<16x128xf32>
    %168 = tpu.reciprocal %164 {approx = true} : vector<16x128xf32> -> vector<16x128xf32>
    %169 = vector.extract_strided_slice %156 {offsets = [16, 0], sizes = [16, 128], strides = [1, 1]} : vector<32x128xf32> to vector<16x128xf32>
    %170 = arith.addf %138, %169 : vector<16x128xf32>
    %171 = arith.mulf %170, %168 : vector<16x128xf32>
    %cst_92 = arith.constant dense<0.000000e+00> : vector<128xf32>
    %172 = vector.multi_reduction <add>, %167, %cst_92 [0] : vector<16x128xf32> to vector<128xf32>
    %173 = vector.shape_cast %172 : vector<128xf32> to vector<1x128xf32>
    %174 = arith.addf %124, %173 : vector<1x128xf32>
    %175 = tpu.concatenate %137, %171 in 0 : vector<16x128xf32>, vector<16x128xf32> -> vector<32x128xf32>
    %c1_93 = arith.constant 1 : index
    %c0_94 = arith.constant 0 : index
    %c0_95 = arith.constant 0 : index
    %176 = vector.load %arg8[%c1_93, %c0_94, %c0_95] : memref<2x32x1xf32, #tpu.memory_space<vmem>>, vector<1x32x1xf32>
    %177 = vector.shape_cast %176 : vector<1x32x1xf32> to vector<32x1xf32>
    %178 = vector.broadcast %177 : vector<32x1xf32> to vector<32x128xf32>
    %179 = arith.mulf %175, %178 : vector<32x128xf32>
    %c1_96 = arith.constant 1 : index
    %c0_97 = arith.constant 0 : index
    %c0_98 = arith.constant 0 : index
    %180 = vector.load %arg9[%c1_96, %c0_97, %c0_98] : memref<2x32x1xf32, #tpu.memory_space<vmem>>, vector<1x32x1xf32>
    %181 = vector.shape_cast %180 : vector<1x32x1xf32> to vector<32x1xf32>
    %182 = vector.broadcast %181 : vector<32x1xf32> to vector<32x128xf32>
    %183 = arith.addf %179, %182 : vector<32x128xf32>
    %c1_99 = arith.constant 1 : index
    %c0_100 = arith.constant 0 : index
    %c0_101 = arith.constant 0 : index
    %184 = vector.load %arg10[%c1_99, %c0_100, %c0_101] : memref<2x32x32xbf16, #tpu.memory_space<vmem>>, vector<1x32x32xbf16>
    %185 = vector.shape_cast %184 : vector<1x32x32xbf16> to vector<32x32xbf16>
    %186 = arith.truncf %183 : vector<32x128xf32> to vector<32x128xbf16>
    %cst_102 = arith.constant dense<0.000000e+00> : vector<32x128xf32>
    %187 = tpu.matmul %185, %186, %cst_102 {dimension_numbers = #tpu.dot_dimension_numbers<[1], [0], [0], [1], [0, 0, 1, 1], [], []>} : vector<32x32xbf16>, vector<32x128xbf16>, vector<32x128xf32> -> vector<32x128xf32>
    %188 = vector.extract_strided_slice %187 {offsets = [0, 0], sizes = [16, 128], strides = [1, 1]} : vector<32x128xf32> to vector<16x128xf32>
    %189 = vector.extract_strided_slice %187 {offsets = [16, 0], sizes = [16, 128], strides = [1, 1]} : vector<32x128xf32> to vector<16x128xf32>
    %c1_103 = arith.constant 1 : index
    %c0_104 = arith.constant 0 : index
    %c0_105 = arith.constant 0 : index
    %190 = vector.load %arg11[%c1_103, %c0_104, %c0_105] : memref<2x32x16xbf16, #tpu.memory_space<vmem>>, vector<1x32x16xbf16>
    %191 = vector.shape_cast %190 : vector<1x32x16xbf16> to vector<32x16xbf16>
    %192 = arith.truncf %188 : vector<16x128xf32> to vector<16x128xbf16>
    %cst_106 = arith.constant dense<0.000000e+00> : vector<32x128xf32>
    %193 = tpu.matmul %191, %192, %cst_106 {dimension_numbers = #tpu.dot_dimension_numbers<[1], [0], [0], [1], [0, 0, 1, 1], [], []>} : vector<32x16xbf16>, vector<16x128xbf16>, vector<32x128xf32> -> vector<32x128xf32>
    %c1_107 = arith.constant 1 : index
    %c0_108 = arith.constant 0 : index
    %c0_109 = arith.constant 0 : index
    %194 = vector.load %arg12[%c1_107, %c0_108, %c0_109] : memref<2x32x1xf32, #tpu.memory_space<vmem>>, vector<1x32x1xf32>
    %195 = vector.shape_cast %194 : vector<1x32x1xf32> to vector<32x1xf32>
    %196 = vector.broadcast %195 : vector<32x1xf32> to vector<32x128xf32>
    %197 = arith.addf %193, %196 : vector<32x128xf32>
    %cst_110 = arith.constant 0.000000e+00 : f32
    %198 = vector.broadcast %cst_110 : f32 to vector<32x128xf32>
    %199 = arith.maximumf %197, %198 : vector<32x128xf32>
    %c1_111 = arith.constant 1 : index
    %c0_112 = arith.constant 0 : index
    %c0_113 = arith.constant 0 : index
    %200 = vector.load %arg13[%c1_111, %c0_112, %c0_113] : memref<2x32x32xbf16, #tpu.memory_space<vmem>>, vector<1x32x32xbf16>
    %201 = vector.shape_cast %200 : vector<1x32x32xbf16> to vector<32x32xbf16>
    %202 = arith.truncf %199 : vector<32x128xf32> to vector<32x128xbf16>
    %cst_114 = arith.constant dense<0.000000e+00> : vector<32x128xf32>
    %203 = tpu.matmul %201, %202, %cst_114 {dimension_numbers = #tpu.dot_dimension_numbers<[1], [0], [0], [1], [0, 0, 1, 1], [], []>} : vector<32x32xbf16>, vector<32x128xbf16>, vector<32x128xf32> -> vector<32x128xf32>
    %c1_115 = arith.constant 1 : index
    %c0_116 = arith.constant 0 : index
    %c0_117 = arith.constant 0 : index
    %204 = vector.load %arg14[%c1_115, %c0_116, %c0_117] : memref<2x32x1xf32, #tpu.memory_space<vmem>>, vector<1x32x1xf32>
    %205 = vector.shape_cast %204 : vector<1x32x1xf32> to vector<32x1xf32>
    %206 = vector.broadcast %205 : vector<32x1xf32> to vector<32x128xf32>
    %207 = arith.addf %203, %206 : vector<32x128xf32>
    %208 = vector.extract_strided_slice %207 {offsets = [0, 0], sizes = [16, 128], strides = [1, 1]} : vector<32x128xf32> to vector<16x128xf32>
    %cst_118 = arith.constant 2.000000e+00 : f32
    %209 = vector.broadcast %cst_118 : f32 to vector<16x128xf32>
    %210 = arith.addf %208, %209 : vector<16x128xf32>
    %cst_119 = arith.constant 0.000000e+00 : f32
    %211 = vector.broadcast %cst_119 : f32 to vector<16x128xf32>
    %212 = arith.subf %211, %210 : vector<16x128xf32>
    %213 = math.exp %212 : vector<16x128xf32>
    %cst_120 = arith.constant 1.000000e+00 : f32
    %214 = vector.broadcast %cst_120 : f32 to vector<16x128xf32>
    %215 = arith.addf %214, %213 : vector<16x128xf32>
    %216 = math.log %215 : vector<16x128xf32>
    %cst_121 = arith.constant 0.000000e+00 : f32
    %217 = vector.broadcast %cst_121 : f32 to vector<16x128xf32>
    %218 = arith.subf %217, %216 : vector<16x128xf32>
    %219 = tpu.reciprocal %215 {approx = true} : vector<16x128xf32> -> vector<16x128xf32>
    %220 = vector.extract_strided_slice %207 {offsets = [16, 0], sizes = [16, 128], strides = [1, 1]} : vector<32x128xf32> to vector<16x128xf32>
    %221 = arith.addf %189, %220 : vector<16x128xf32>
    %222 = arith.mulf %221, %219 : vector<16x128xf32>
    %cst_122 = arith.constant dense<0.000000e+00> : vector<128xf32>
    %223 = vector.multi_reduction <add>, %218, %cst_122 [0] : vector<16x128xf32> to vector<128xf32>
    %224 = vector.shape_cast %223 : vector<128xf32> to vector<1x128xf32>
    %225 = arith.addf %174, %224 : vector<1x128xf32>
    %226 = tpu.concatenate %188, %222 in 0 : vector<16x128xf32>, vector<16x128xf32> -> vector<32x128xf32>
    %c0_123 = arith.constant 0 : index
    %c0_124 = arith.constant 0 : index
    %227 = vector.load %arg18[%c0_123, %c0_124] : memref<32x128xf32, #tpu.memory_space<vmem>>, vector<32x128xf32>
    tpu.vector_store %arg18[%c0_123, %c0_124], %226 {strides = array<i32>} : memref<32x128xf32, #tpu.memory_space<vmem>>, vector<32x128xf32>,
    %c0_125 = arith.constant 0 : index
    %c0_126 = arith.constant 0 : index
    %228 = vector.load %arg15[%c0_125, %c0_126] : memref<128x2xf32, #tpu.memory_space<vmem>>, vector<128x2xf32>
    %cst_127 = arith.constant dense<0.000000e+00> : vector<1x2xf32>
    %229 = tpu.matmul %102, %228, %cst_127 {dimension_numbers = #tpu.dot_dimension_numbers<[1], [0], [0], [1], [0, 0, 1, 1], [], []>} : vector<1x128xf32>, vector<128x2xf32>, vector<1x2xf32> -> vector<1x2xf32>
    %c0_128 = arith.constant 0 : index
    %c0_129 = arith.constant 0 : index
    %230 = vector.load %arg16[%c0_128, %c0_129] : memref<128x2xf32, #tpu.memory_space<vmem>>, vector<128x2xf32>
    %cst_130 = arith.constant dense<0.000000e+00> : vector<1x2xf32>
    %231 = tpu.matmul %225, %230, %cst_130 {dimension_numbers = #tpu.dot_dimension_numbers<[1], [0], [0], [1], [0, 0, 1, 1], [], []>} : vector<1x128xf32>, vector<128x2xf32>, vector<1x2xf32> -> vector<1x2xf32>
    %232 = arith.addf %229, %231 : vector<1x2xf32>
    %c0_131 = arith.constant 0 : index
    %c0_132 = arith.constant 0 : index
    %233 = vector.load %arg19[%c0_131, %c0_132] : memref<1x2xf32, #tpu.memory_space<vmem>>, vector<1x2xf32>
    tpu.vector_store %arg19[%c0_131, %c0_132], %232 {strides = array<i32>} : memref<1x2xf32, #tpu.memory_space<vmem>>, vector<1x2xf32>,
    return
  }
}

module attributes {stable_mosaic.version = 11 : i64} {
  func.func @_atom_kernel(%arg0: memref<32x16xf32, #tpu.memory_space<vmem>>, %arg1: memref<4x2x8x8xf32, #tpu.memory_space<vmem>>, %arg2: memref<4x2x4x4xf32, #tpu.memory_space<vmem>>, %arg3: memref<2x2x32x16xbf16, #tpu.memory_space<vmem>>, %arg4: memref<2x2x4x32x16xbf16, #tpu.memory_space<vmem>>, %arg5: memref<2x2x32x1xf32, #tpu.memory_space<vmem>>, %arg6: memref<2x2x32x32xbf16, #tpu.memory_space<vmem>>, %arg7: memref<2x2x32x1xf32, #tpu.memory_space<vmem>>, %arg8: memref<16x1xf32, #tpu.memory_space<vmem>>, %arg9: memref<16x2xf32, #tpu.memory_space<vmem>>, %arg10: memref<8x2xf32, #tpu.memory_space<vmem>>, %arg11: memref<16x16xf32, #tpu.memory_space<vmem>>, %arg12: memref<32x8xf32, #tpu.memory_space<vmem>>, %arg13: memref<1x2xf32, #tpu.memory_space<vmem>>) attributes {dimension_semantics = [], scalar_prefetch = 0 : i64, scratch_operands = 0 : i64, tpu.core_type = #tpu.core_type<tc>} {
    %c0 = arith.constant 0 : index
    %c0_0 = arith.constant 0 : index
    %0 = vector.load %arg8[%c0, %c0_0] : memref<16x1xf32, #tpu.memory_space<vmem>>, vector<16x1xf32>
    %c0_1 = arith.constant 0 : index
    %c0_2 = arith.constant 0 : index
    %1 = vector.load %arg0[%c0_1, %c0_2] : memref<32x16xf32, #tpu.memory_space<vmem>>, vector<32x16xf32>
    %cst = arith.constant 0.000000e+00 : f32
    %2 = vector.broadcast %cst : f32 to vector<1x16xf32>
    %3 = vector.extract_strided_slice %1 {offsets = [0, 0], sizes = [16, 16], strides = [1, 1]} : vector<32x16xf32> to vector<16x16xf32>
    %4 = vector.extract_strided_slice %1 {offsets = [16, 0], sizes = [16, 16], strides = [1, 1]} : vector<32x16xf32> to vector<16x16xf32>
    %5 = arith.truncf %3 : vector<16x16xf32> to vector<16x16xbf16>
    %c0_3 = arith.constant 0 : index
    %c0_4 = arith.constant 0 : index
    %c0_5 = arith.constant 0 : index
    %c0_6 = arith.constant 0 : index
    %6 = vector.load %arg3[%c0_3, %c0_4, %c0_5, %c0_6] : memref<2x2x32x16xbf16, #tpu.memory_space<vmem>>, vector<1x1x32x16xbf16>
    %7 = vector.shape_cast %6 : vector<1x1x32x16xbf16> to vector<32x16xbf16>
    %cst_7 = arith.constant dense<0.000000e+00> : vector<32x16xf32>
    %8 = tpu.matmul %7, %5, %cst_7 {dimension_numbers = #tpu.dot_dimension_numbers<[1], [0], [0], [1], [0, 0, 1, 1], [], []>} : vector<32x16xbf16>, vector<16x16xbf16>, vector<32x16xf32> -> vector<32x16xf32>
    %c0_8 = arith.constant 0 : index
    %c0_9 = arith.constant 0 : index
    %c0_10 = arith.constant 0 : index
    %c0_11 = arith.constant 0 : index
    %c0_12 = arith.constant 0 : index
    %9 = vector.load %arg4[%c0_8, %c0_9, %c0_10, %c0_11, %c0_12] : memref<2x2x4x32x16xbf16, #tpu.memory_space<vmem>>, vector<1x1x1x32x16xbf16>
    %10 = vector.shape_cast %9 : vector<1x1x1x32x16xbf16> to vector<32x16xbf16>
    %cst_13 = arith.constant dense<0.000000e+00> : vector<32x16xf32>
    %11 = tpu.matmul %10, %5, %cst_13 {dimension_numbers = #tpu.dot_dimension_numbers<[1], [0], [0], [1], [0, 0, 1, 1], [], []>} : vector<32x16xbf16>, vector<16x16xbf16>, vector<32x16xf32> -> vector<32x16xf32>
    %c0_14 = arith.constant 0 : index
    %c0_15 = arith.constant 0 : index
    %c1 = arith.constant 1 : index
    %c0_16 = arith.constant 0 : index
    %c0_17 = arith.constant 0 : index
    %12 = vector.load %arg4[%c0_14, %c0_15, %c1, %c0_16, %c0_17] : memref<2x2x4x32x16xbf16, #tpu.memory_space<vmem>>, vector<1x1x1x32x16xbf16>
    %13 = vector.shape_cast %12 : vector<1x1x1x32x16xbf16> to vector<32x16xbf16>
    %cst_18 = arith.constant dense<0.000000e+00> : vector<32x16xf32>
    %14 = tpu.matmul %13, %5, %cst_18 {dimension_numbers = #tpu.dot_dimension_numbers<[1], [0], [0], [1], [0, 0, 1, 1], [], []>} : vector<32x16xbf16>, vector<16x16xbf16>, vector<32x16xf32> -> vector<32x16xf32>
    %c0_19 = arith.constant 0 : index
    %c0_20 = arith.constant 0 : index
    %c2 = arith.constant 2 : index
    %c0_21 = arith.constant 0 : index
    %c0_22 = arith.constant 0 : index
    %15 = vector.load %arg4[%c0_19, %c0_20, %c2, %c0_21, %c0_22] : memref<2x2x4x32x16xbf16, #tpu.memory_space<vmem>>, vector<1x1x1x32x16xbf16>
    %16 = vector.shape_cast %15 : vector<1x1x1x32x16xbf16> to vector<32x16xbf16>
    %cst_23 = arith.constant dense<0.000000e+00> : vector<32x16xf32>
    %17 = tpu.matmul %16, %5, %cst_23 {dimension_numbers = #tpu.dot_dimension_numbers<[1], [0], [0], [1], [0, 0, 1, 1], [], []>} : vector<32x16xbf16>, vector<16x16xbf16>, vector<32x16xf32> -> vector<32x16xf32>
    %c0_24 = arith.constant 0 : index
    %c0_25 = arith.constant 0 : index
    %c3 = arith.constant 3 : index
    %c0_26 = arith.constant 0 : index
    %c0_27 = arith.constant 0 : index
    %18 = vector.load %arg4[%c0_24, %c0_25, %c3, %c0_26, %c0_27] : memref<2x2x4x32x16xbf16, #tpu.memory_space<vmem>>, vector<1x1x1x32x16xbf16>
    %19 = vector.shape_cast %18 : vector<1x1x1x32x16xbf16> to vector<32x16xbf16>
    %cst_28 = arith.constant dense<0.000000e+00> : vector<32x16xf32>
    %20 = tpu.matmul %19, %5, %cst_28 {dimension_numbers = #tpu.dot_dimension_numbers<[1], [0], [0], [1], [0, 0, 1, 1], [], []>} : vector<32x16xbf16>, vector<16x16xbf16>, vector<32x16xf32> -> vector<32x16xf32>
    %cst_29 = arith.constant 0.000000e+00 : f32
    %21 = vector.broadcast %cst_29 : f32 to vector<32x8xf32>
    %22 = vector.extract_strided_slice %11 {offsets = [0, 0], sizes = [32, 8], strides = [1, 1]} : vector<32x16xf32> to vector<32x8xf32>
    %c0_30 = arith.constant 0 : index
    %c0_31 = arith.constant 0 : index
    %c0_32 = arith.constant 0 : index
    %c0_33 = arith.constant 0 : index
    %23 = vector.load %arg1[%c0_30, %c0_31, %c0_32, %c0_33] : memref<4x2x8x8xf32, #tpu.memory_space<vmem>>, vector<1x1x8x8xf32>
    %24 = vector.shape_cast %23 : vector<1x1x8x8xf32> to vector<8x8xf32>
    %cst_34 = arith.constant dense<0.000000e+00> : vector<32x8xf32>
    %25 = tpu.matmul %22, %24, %cst_34 {dimension_numbers = #tpu.dot_dimension_numbers<[1], [0], [0], [1], [0, 0, 1, 1], [], []>} : vector<32x8xf32>, vector<8x8xf32>, vector<32x8xf32> -> vector<32x8xf32>
    %26 = arith.addf %21, %25 : vector<32x8xf32>
    %27 = vector.extract_strided_slice %14 {offsets = [0, 0], sizes = [32, 8], strides = [1, 1]} : vector<32x16xf32> to vector<32x8xf32>
    %c1_35 = arith.constant 1 : index
    %c0_36 = arith.constant 0 : index
    %c0_37 = arith.constant 0 : index
    %c0_38 = arith.constant 0 : index
    %28 = vector.load %arg1[%c1_35, %c0_36, %c0_37, %c0_38] : memref<4x2x8x8xf32, #tpu.memory_space<vmem>>, vector<1x1x8x8xf32>
    %29 = vector.shape_cast %28 : vector<1x1x8x8xf32> to vector<8x8xf32>
    %cst_39 = arith.constant dense<0.000000e+00> : vector<32x8xf32>
    %30 = tpu.matmul %27, %29, %cst_39 {dimension_numbers = #tpu.dot_dimension_numbers<[1], [0], [0], [1], [0, 0, 1, 1], [], []>} : vector<32x8xf32>, vector<8x8xf32>, vector<32x8xf32> -> vector<32x8xf32>
    %31 = arith.addf %26, %30 : vector<32x8xf32>
    %32 = vector.extract_strided_slice %17 {offsets = [0, 0], sizes = [32, 8], strides = [1, 1]} : vector<32x16xf32> to vector<32x8xf32>
    %c2_40 = arith.constant 2 : index
    %c0_41 = arith.constant 0 : index
    %c0_42 = arith.constant 0 : index
    %c0_43 = arith.constant 0 : index
    %33 = vector.load %arg1[%c2_40, %c0_41, %c0_42, %c0_43] : memref<4x2x8x8xf32, #tpu.memory_space<vmem>>, vector<1x1x8x8xf32>
    %34 = vector.shape_cast %33 : vector<1x1x8x8xf32> to vector<8x8xf32>
    %cst_44 = arith.constant dense<0.000000e+00> : vector<32x8xf32>
    %35 = tpu.matmul %32, %34, %cst_44 {dimension_numbers = #tpu.dot_dimension_numbers<[1], [0], [0], [1], [0, 0, 1, 1], [], []>} : vector<32x8xf32>, vector<8x8xf32>, vector<32x8xf32> -> vector<32x8xf32>
    %36 = arith.addf %31, %35 : vector<32x8xf32>
    %37 = vector.extract_strided_slice %20 {offsets = [0, 0], sizes = [32, 8], strides = [1, 1]} : vector<32x16xf32> to vector<32x8xf32>
    %c3_45 = arith.constant 3 : index
    %c0_46 = arith.constant 0 : index
    %c0_47 = arith.constant 0 : index
    %c0_48 = arith.constant 0 : index
    %38 = vector.load %arg1[%c3_45, %c0_46, %c0_47, %c0_48] : memref<4x2x8x8xf32, #tpu.memory_space<vmem>>, vector<1x1x8x8xf32>
    %39 = vector.shape_cast %38 : vector<1x1x8x8xf32> to vector<8x8xf32>
    %cst_49 = arith.constant dense<0.000000e+00> : vector<32x8xf32>
    %40 = tpu.matmul %37, %39, %cst_49 {dimension_numbers = #tpu.dot_dimension_numbers<[1], [0], [0], [1], [0, 0, 1, 1], [], []>} : vector<32x8xf32>, vector<8x8xf32>, vector<32x8xf32> -> vector<32x8xf32>
    %41 = arith.addf %36, %40 : vector<32x8xf32>
    %cst_50 = arith.constant 0.000000e+00 : f32
    %42 = vector.broadcast %cst_50 : f32 to vector<32x8xf32>
    %43 = vector.extract_strided_slice %11 {offsets = [0, 8], sizes = [32, 8], strides = [1, 1]} : vector<32x16xf32> to vector<32x8xf32>
    %c0_51 = arith.constant 0 : index
    %c1_52 = arith.constant 1 : index
    %c0_53 = arith.constant 0 : index
    %c0_54 = arith.constant 0 : index
    %44 = vector.load %arg1[%c0_51, %c1_52, %c0_53, %c0_54] : memref<4x2x8x8xf32, #tpu.memory_space<vmem>>, vector<1x1x8x8xf32>
    %45 = vector.shape_cast %44 : vector<1x1x8x8xf32> to vector<8x8xf32>
    %cst_55 = arith.constant dense<0.000000e+00> : vector<32x8xf32>
    %46 = tpu.matmul %43, %45, %cst_55 {dimension_numbers = #tpu.dot_dimension_numbers<[1], [0], [0], [1], [0, 0, 1, 1], [], []>} : vector<32x8xf32>, vector<8x8xf32>, vector<32x8xf32> -> vector<32x8xf32>
    %47 = arith.addf %42, %46 : vector<32x8xf32>
    %48 = vector.extract_strided_slice %14 {offsets = [0, 8], sizes = [32, 8], strides = [1, 1]} : vector<32x16xf32> to vector<32x8xf32>
    %c1_56 = arith.constant 1 : index
    %c1_57 = arith.constant 1 : index
    %c0_58 = arith.constant 0 : index
    %c0_59 = arith.constant 0 : index
    %49 = vector.load %arg1[%c1_56, %c1_57, %c0_58, %c0_59] : memref<4x2x8x8xf32, #tpu.memory_space<vmem>>, vector<1x1x8x8xf32>
    %50 = vector.shape_cast %49 : vector<1x1x8x8xf32> to vector<8x8xf32>
    %cst_60 = arith.constant dense<0.000000e+00> : vector<32x8xf32>
    %51 = tpu.matmul %48, %50, %cst_60 {dimension_numbers = #tpu.dot_dimension_numbers<[1], [0], [0], [1], [0, 0, 1, 1], [], []>} : vector<32x8xf32>, vector<8x8xf32>, vector<32x8xf32> -> vector<32x8xf32>
    %52 = arith.addf %47, %51 : vector<32x8xf32>
    %53 = vector.extract_strided_slice %17 {offsets = [0, 8], sizes = [32, 8], strides = [1, 1]} : vector<32x16xf32> to vector<32x8xf32>
    %c2_61 = arith.constant 2 : index
    %c1_62 = arith.constant 1 : index
    %c0_63 = arith.constant 0 : index
    %c0_64 = arith.constant 0 : index
    %54 = vector.load %arg1[%c2_61, %c1_62, %c0_63, %c0_64] : memref<4x2x8x8xf32, #tpu.memory_space<vmem>>, vector<1x1x8x8xf32>
    %55 = vector.shape_cast %54 : vector<1x1x8x8xf32> to vector<8x8xf32>
    %cst_65 = arith.constant dense<0.000000e+00> : vector<32x8xf32>
    %56 = tpu.matmul %53, %55, %cst_65 {dimension_numbers = #tpu.dot_dimension_numbers<[1], [0], [0], [1], [0, 0, 1, 1], [], []>} : vector<32x8xf32>, vector<8x8xf32>, vector<32x8xf32> -> vector<32x8xf32>
    %57 = arith.addf %52, %56 : vector<32x8xf32>
    %58 = vector.extract_strided_slice %20 {offsets = [0, 8], sizes = [32, 8], strides = [1, 1]} : vector<32x16xf32> to vector<32x8xf32>
    %c3_66 = arith.constant 3 : index
    %c1_67 = arith.constant 1 : index
    %c0_68 = arith.constant 0 : index
    %c0_69 = arith.constant 0 : index
    %59 = vector.load %arg1[%c3_66, %c1_67, %c0_68, %c0_69] : memref<4x2x8x8xf32, #tpu.memory_space<vmem>>, vector<1x1x8x8xf32>
    %60 = vector.shape_cast %59 : vector<1x1x8x8xf32> to vector<8x8xf32>
    %cst_70 = arith.constant dense<0.000000e+00> : vector<32x8xf32>
    %61 = tpu.matmul %58, %60, %cst_70 {dimension_numbers = #tpu.dot_dimension_numbers<[1], [0], [0], [1], [0, 0, 1, 1], [], []>} : vector<32x8xf32>, vector<8x8xf32>, vector<32x8xf32> -> vector<32x8xf32>
    %62 = arith.addf %57, %61 : vector<32x8xf32>
    %63 = tpu.concatenate %41, %62 in 1 : vector<32x8xf32>, vector<32x8xf32> -> vector<32x16xf32>
    %64 = arith.addf %8, %63 : vector<32x16xf32>
    %c0_71 = arith.constant 0 : index
    %c0_72 = arith.constant 0 : index
    %c0_73 = arith.constant 0 : index
    %c0_74 = arith.constant 0 : index
    %65 = vector.load %arg5[%c0_71, %c0_72, %c0_73, %c0_74] : memref<2x2x32x1xf32, #tpu.memory_space<vmem>>, vector<1x1x32x1xf32>
    %66 = vector.shape_cast %65 : vector<1x1x32x1xf32> to vector<32x1xf32>
    %67 = vector.broadcast %66 : vector<32x1xf32> to vector<32x16xf32>
    %68 = arith.addf %64, %67 : vector<32x16xf32>
    %69 = math.tanh %68 : vector<32x16xf32>
    %c0_75 = arith.constant 0 : index
    %c0_76 = arith.constant 0 : index
    %c0_77 = arith.constant 0 : index
    %c0_78 = arith.constant 0 : index
    %70 = vector.load %arg6[%c0_75, %c0_76, %c0_77, %c0_78] : memref<2x2x32x32xbf16, #tpu.memory_space<vmem>>, vector<1x1x32x32xbf16>
    %71 = vector.shape_cast %70 : vector<1x1x32x32xbf16> to vector<32x32xbf16>
    %72 = arith.truncf %69 : vector<32x16xf32> to vector<32x16xbf16>
    %cst_79 = arith.constant dense<0.000000e+00> : vector<32x16xf32>
    %73 = tpu.matmul %71, %72, %cst_79 {dimension_numbers = #tpu.dot_dimension_numbers<[1], [0], [0], [1], [0, 0, 1, 1], [], []>} : vector<32x32xbf16>, vector<32x16xbf16>, vector<32x16xf32> -> vector<32x16xf32>
    %c0_80 = arith.constant 0 : index
    %c0_81 = arith.constant 0 : index
    %c0_82 = arith.constant 0 : index
    %c0_83 = arith.constant 0 : index
    %74 = vector.load %arg7[%c0_80, %c0_81, %c0_82, %c0_83] : memref<2x2x32x1xf32, #tpu.memory_space<vmem>>, vector<1x1x32x1xf32>
    %75 = vector.shape_cast %74 : vector<1x1x32x1xf32> to vector<32x1xf32>
    %76 = vector.broadcast %75 : vector<32x1xf32> to vector<32x16xf32>
    %77 = arith.addf %73, %76 : vector<32x16xf32>
    %78 = vector.extract_strided_slice %77 {offsets = [0, 0], sizes = [16, 16], strides = [1, 1]} : vector<32x16xf32> to vector<16x16xf32>
    %cst_84 = arith.constant 2.000000e+00 : f32
    %79 = vector.broadcast %cst_84 : f32 to vector<16x16xf32>
    %80 = arith.addf %78, %79 : vector<16x16xf32>
    %cst_85 = arith.constant 0.000000e+00 : f32
    %81 = vector.broadcast %cst_85 : f32 to vector<16x16xf32>
    %82 = arith.subf %81, %80 : vector<16x16xf32>
    %83 = math.exp %82 : vector<16x16xf32>
    %cst_86 = arith.constant 1.000000e+00 : f32
    %84 = vector.broadcast %cst_86 : f32 to vector<16x16xf32>
    %85 = arith.addf %84, %83 : vector<16x16xf32>
    %86 = math.log %85 : vector<16x16xf32>
    %cst_87 = arith.constant 0.000000e+00 : f32
    %87 = vector.broadcast %cst_87 : f32 to vector<16x16xf32>
    %88 = arith.subf %87, %86 : vector<16x16xf32>
    %89 = tpu.reciprocal %85 {approx = true} : vector<16x16xf32> -> vector<16x16xf32>
    %90 = vector.extract_strided_slice %77 {offsets = [16, 0], sizes = [16, 16], strides = [1, 1]} : vector<32x16xf32> to vector<16x16xf32>
    %91 = arith.addf %4, %90 : vector<16x16xf32>
    %92 = arith.mulf %91, %89 : vector<16x16xf32>
    %93 = vector.broadcast %0 : vector<16x1xf32> to vector<16x16xf32>
    %94 = arith.mulf %92, %93 : vector<16x16xf32>
    %95 = vector.broadcast %0 : vector<16x1xf32> to vector<16x16xf32>
    %96 = arith.mulf %88, %95 : vector<16x16xf32>
    %cst_88 = arith.constant dense<0.000000e+00> : vector<16xf32>
    %97 = vector.multi_reduction <add>, %96, %cst_88 [0] : vector<16x16xf32> to vector<16xf32>
    %98 = vector.shape_cast %97 : vector<16xf32> to vector<1x16xf32>
    %99 = arith.addf %2, %98 : vector<1x16xf32>
    %100 = tpu.concatenate %3, %94 in 0 : vector<16x16xf32>, vector<16x16xf32> -> vector<32x16xf32>
    %101 = vector.extract_strided_slice %100 {offsets = [0, 0], sizes = [16, 16], strides = [1, 1]} : vector<32x16xf32> to vector<16x16xf32>
    %102 = vector.extract_strided_slice %100 {offsets = [16, 0], sizes = [16, 16], strides = [1, 1]} : vector<32x16xf32> to vector<16x16xf32>
    %103 = arith.truncf %102 : vector<16x16xf32> to vector<16x16xbf16>
    %c0_89 = arith.constant 0 : index
    %c1_90 = arith.constant 1 : index
    %c0_91 = arith.constant 0 : index
    %c0_92 = arith.constant 0 : index
    %104 = vector.load %arg3[%c0_89, %c1_90, %c0_91, %c0_92] : memref<2x2x32x16xbf16, #tpu.memory_space<vmem>>, vector<1x1x32x16xbf16>
    %105 = vector.shape_cast %104 : vector<1x1x32x16xbf16> to vector<32x16xbf16>
    %cst_93 = arith.constant dense<0.000000e+00> : vector<32x16xf32>
    %106 = tpu.matmul %105, %103, %cst_93 {dimension_numbers = #tpu.dot_dimension_numbers<[1], [0], [0], [1], [0, 0, 1, 1], [], []>} : vector<32x16xbf16>, vector<16x16xbf16>, vector<32x16xf32> -> vector<32x16xf32>
    %c0_94 = arith.constant 0 : index
    %c1_95 = arith.constant 1 : index
    %c0_96 = arith.constant 0 : index
    %c0_97 = arith.constant 0 : index
    %c0_98 = arith.constant 0 : index
    %107 = vector.load %arg4[%c0_94, %c1_95, %c0_96, %c0_97, %c0_98] : memref<2x2x4x32x16xbf16, #tpu.memory_space<vmem>>, vector<1x1x1x32x16xbf16>
    %108 = vector.shape_cast %107 : vector<1x1x1x32x16xbf16> to vector<32x16xbf16>
    %cst_99 = arith.constant dense<0.000000e+00> : vector<32x16xf32>
    %109 = tpu.matmul %108, %103, %cst_99 {dimension_numbers = #tpu.dot_dimension_numbers<[1], [0], [0], [1], [0, 0, 1, 1], [], []>} : vector<32x16xbf16>, vector<16x16xbf16>, vector<32x16xf32> -> vector<32x16xf32>
    %c0_100 = arith.constant 0 : index
    %c1_101 = arith.constant 1 : index
    %c1_102 = arith.constant 1 : index
    %c0_103 = arith.constant 0 : index
    %c0_104 = arith.constant 0 : index
    %110 = vector.load %arg4[%c0_100, %c1_101, %c1_102, %c0_103, %c0_104] : memref<2x2x4x32x16xbf16, #tpu.memory_space<vmem>>, vector<1x1x1x32x16xbf16>
    %111 = vector.shape_cast %110 : vector<1x1x1x32x16xbf16> to vector<32x16xbf16>
    %cst_105 = arith.constant dense<0.000000e+00> : vector<32x16xf32>
    %112 = tpu.matmul %111, %103, %cst_105 {dimension_numbers = #tpu.dot_dimension_numbers<[1], [0], [0], [1], [0, 0, 1, 1], [], []>} : vector<32x16xbf16>, vector<16x16xbf16>, vector<32x16xf32> -> vector<32x16xf32>
    %c0_106 = arith.constant 0 : index
    %c1_107 = arith.constant 1 : index
    %c2_108 = arith.constant 2 : index
    %c0_109 = arith.constant 0 : index
    %c0_110 = arith.constant 0 : index
    %113 = vector.load %arg4[%c0_106, %c1_107, %c2_108, %c0_109, %c0_110] : memref<2x2x4x32x16xbf16, #tpu.memory_space<vmem>>, vector<1x1x1x32x16xbf16>
    %114 = vector.shape_cast %113 : vector<1x1x1x32x16xbf16> to vector<32x16xbf16>
    %cst_111 = arith.constant dense<0.000000e+00> : vector<32x16xf32>
    %115 = tpu.matmul %114, %103, %cst_111 {dimension_numbers = #tpu.dot_dimension_numbers<[1], [0], [0], [1], [0, 0, 1, 1], [], []>} : vector<32x16xbf16>, vector<16x16xbf16>, vector<32x16xf32> -> vector<32x16xf32>
    %c0_112 = arith.constant 0 : index
    %c1_113 = arith.constant 1 : index
    %c3_114 = arith.constant 3 : index
    %c0_115 = arith.constant 0 : index
    %c0_116 = arith.constant 0 : index
    %116 = vector.load %arg4[%c0_112, %c1_113, %c3_114, %c0_115, %c0_116] : memref<2x2x4x32x16xbf16, #tpu.memory_space<vmem>>, vector<1x1x1x32x16xbf16>
    %117 = vector.shape_cast %116 : vector<1x1x1x32x16xbf16> to vector<32x16xbf16>
    %cst_117 = arith.constant dense<0.000000e+00> : vector<32x16xf32>
    %118 = tpu.matmul %117, %103, %cst_117 {dimension_numbers = #tpu.dot_dimension_numbers<[1], [0], [0], [1], [0, 0, 1, 1], [], []>} : vector<32x16xbf16>, vector<16x16xbf16>, vector<32x16xf32> -> vector<32x16xf32>
    %cst_118 = arith.constant 0.000000e+00 : f32
    %119 = vector.broadcast %cst_118 : f32 to vector<32x8xf32>
    %120 = vector.extract_strided_slice %109 {offsets = [0, 0], sizes = [32, 8], strides = [1, 1]} : vector<32x16xf32> to vector<32x8xf32>
    %c0_119 = arith.constant 0 : index
    %c0_120 = arith.constant 0 : index
    %c0_121 = arith.constant 0 : index
    %c0_122 = arith.constant 0 : index
    %121 = vector.load %arg1[%c0_119, %c0_120, %c0_121, %c0_122] : memref<4x2x8x8xf32, #tpu.memory_space<vmem>>, vector<1x1x8x8xf32>
    %122 = vector.shape_cast %121 : vector<1x1x8x8xf32> to vector<8x8xf32>
    %cst_123 = arith.constant dense<0.000000e+00> : vector<32x8xf32>
    %123 = tpu.matmul %120, %122, %cst_123 {dimension_numbers = #tpu.dot_dimension_numbers<[1], [0], [0], [1], [0, 0, 1, 1], [], []>} : vector<32x8xf32>, vector<8x8xf32>, vector<32x8xf32> -> vector<32x8xf32>
    %124 = arith.addf %119, %123 : vector<32x8xf32>
    %125 = vector.extract_strided_slice %112 {offsets = [0, 0], sizes = [32, 8], strides = [1, 1]} : vector<32x16xf32> to vector<32x8xf32>
    %c1_124 = arith.constant 1 : index
    %c0_125 = arith.constant 0 : index
    %c0_126 = arith.constant 0 : index
    %c0_127 = arith.constant 0 : index
    %126 = vector.load %arg1[%c1_124, %c0_125, %c0_126, %c0_127] : memref<4x2x8x8xf32, #tpu.memory_space<vmem>>, vector<1x1x8x8xf32>
    %127 = vector.shape_cast %126 : vector<1x1x8x8xf32> to vector<8x8xf32>
    %cst_128 = arith.constant dense<0.000000e+00> : vector<32x8xf32>
    %128 = tpu.matmul %125, %127, %cst_128 {dimension_numbers = #tpu.dot_dimension_numbers<[1], [0], [0], [1], [0, 0, 1, 1], [], []>} : vector<32x8xf32>, vector<8x8xf32>, vector<32x8xf32> -> vector<32x8xf32>
    %129 = arith.addf %124, %128 : vector<32x8xf32>
    %130 = vector.extract_strided_slice %115 {offsets = [0, 0], sizes = [32, 8], strides = [1, 1]} : vector<32x16xf32> to vector<32x8xf32>
    %c2_129 = arith.constant 2 : index
    %c0_130 = arith.constant 0 : index
    %c0_131 = arith.constant 0 : index
    %c0_132 = arith.constant 0 : index
    %131 = vector.load %arg1[%c2_129, %c0_130, %c0_131, %c0_132] : memref<4x2x8x8xf32, #tpu.memory_space<vmem>>, vector<1x1x8x8xf32>
    %132 = vector.shape_cast %131 : vector<1x1x8x8xf32> to vector<8x8xf32>
    %cst_133 = arith.constant dense<0.000000e+00> : vector<32x8xf32>
    %133 = tpu.matmul %130, %132, %cst_133 {dimension_numbers = #tpu.dot_dimension_numbers<[1], [0], [0], [1], [0, 0, 1, 1], [], []>} : vector<32x8xf32>, vector<8x8xf32>, vector<32x8xf32> -> vector<32x8xf32>
    %134 = arith.addf %129, %133 : vector<32x8xf32>
    %135 = vector.extract_strided_slice %118 {offsets = [0, 0], sizes = [32, 8], strides = [1, 1]} : vector<32x16xf32> to vector<32x8xf32>
    %c3_134 = arith.constant 3 : index
    %c0_135 = arith.constant 0 : index
    %c0_136 = arith.constant 0 : index
    %c0_137 = arith.constant 0 : index
    %136 = vector.load %arg1[%c3_134, %c0_135, %c0_136, %c0_137] : memref<4x2x8x8xf32, #tpu.memory_space<vmem>>, vector<1x1x8x8xf32>
    %137 = vector.shape_cast %136 : vector<1x1x8x8xf32> to vector<8x8xf32>
    %cst_138 = arith.constant dense<0.000000e+00> : vector<32x8xf32>
    %138 = tpu.matmul %135, %137, %cst_138 {dimension_numbers = #tpu.dot_dimension_numbers<[1], [0], [0], [1], [0, 0, 1, 1], [], []>} : vector<32x8xf32>, vector<8x8xf32>, vector<32x8xf32> -> vector<32x8xf32>
    %139 = arith.addf %134, %138 : vector<32x8xf32>
    %cst_139 = arith.constant 0.000000e+00 : f32
    %140 = vector.broadcast %cst_139 : f32 to vector<32x8xf32>
    %141 = vector.extract_strided_slice %109 {offsets = [0, 8], sizes = [32, 8], strides = [1, 1]} : vector<32x16xf32> to vector<32x8xf32>
    %c0_140 = arith.constant 0 : index
    %c1_141 = arith.constant 1 : index
    %c0_142 = arith.constant 0 : index
    %c0_143 = arith.constant 0 : index
    %142 = vector.load %arg1[%c0_140, %c1_141, %c0_142, %c0_143] : memref<4x2x8x8xf32, #tpu.memory_space<vmem>>, vector<1x1x8x8xf32>
    %143 = vector.shape_cast %142 : vector<1x1x8x8xf32> to vector<8x8xf32>
    %cst_144 = arith.constant dense<0.000000e+00> : vector<32x8xf32>
    %144 = tpu.matmul %141, %143, %cst_144 {dimension_numbers = #tpu.dot_dimension_numbers<[1], [0], [0], [1], [0, 0, 1, 1], [], []>} : vector<32x8xf32>, vector<8x8xf32>, vector<32x8xf32> -> vector<32x8xf32>
    %145 = arith.addf %140, %144 : vector<32x8xf32>
    %146 = vector.extract_strided_slice %112 {offsets = [0, 8], sizes = [32, 8], strides = [1, 1]} : vector<32x16xf32> to vector<32x8xf32>
    %c1_145 = arith.constant 1 : index
    %c1_146 = arith.constant 1 : index
    %c0_147 = arith.constant 0 : index
    %c0_148 = arith.constant 0 : index
    %147 = vector.load %arg1[%c1_145, %c1_146, %c0_147, %c0_148] : memref<4x2x8x8xf32, #tpu.memory_space<vmem>>, vector<1x1x8x8xf32>
    %148 = vector.shape_cast %147 : vector<1x1x8x8xf32> to vector<8x8xf32>
    %cst_149 = arith.constant dense<0.000000e+00> : vector<32x8xf32>
    %149 = tpu.matmul %146, %148, %cst_149 {dimension_numbers = #tpu.dot_dimension_numbers<[1], [0], [0], [1], [0, 0, 1, 1], [], []>} : vector<32x8xf32>, vector<8x8xf32>, vector<32x8xf32> -> vector<32x8xf32>
    %150 = arith.addf %145, %149 : vector<32x8xf32>
    %151 = vector.extract_strided_slice %115 {offsets = [0, 8], sizes = [32, 8], strides = [1, 1]} : vector<32x16xf32> to vector<32x8xf32>
    %c2_150 = arith.constant 2 : index
    %c1_151 = arith.constant 1 : index
    %c0_152 = arith.constant 0 : index
    %c0_153 = arith.constant 0 : index
    %152 = vector.load %arg1[%c2_150, %c1_151, %c0_152, %c0_153] : memref<4x2x8x8xf32, #tpu.memory_space<vmem>>, vector<1x1x8x8xf32>
    %153 = vector.shape_cast %152 : vector<1x1x8x8xf32> to vector<8x8xf32>
    %cst_154 = arith.constant dense<0.000000e+00> : vector<32x8xf32>
    %154 = tpu.matmul %151, %153, %cst_154 {dimension_numbers = #tpu.dot_dimension_numbers<[1], [0], [0], [1], [0, 0, 1, 1], [], []>} : vector<32x8xf32>, vector<8x8xf32>, vector<32x8xf32> -> vector<32x8xf32>
    %155 = arith.addf %150, %154 : vector<32x8xf32>
    %156 = vector.extract_strided_slice %118 {offsets = [0, 8], sizes = [32, 8], strides = [1, 1]} : vector<32x16xf32> to vector<32x8xf32>
    %c3_155 = arith.constant 3 : index
    %c1_156 = arith.constant 1 : index
    %c0_157 = arith.constant 0 : index
    %c0_158 = arith.constant 0 : index
    %157 = vector.load %arg1[%c3_155, %c1_156, %c0_157, %c0_158] : memref<4x2x8x8xf32, #tpu.memory_space<vmem>>, vector<1x1x8x8xf32>
    %158 = vector.shape_cast %157 : vector<1x1x8x8xf32> to vector<8x8xf32>
    %cst_159 = arith.constant dense<0.000000e+00> : vector<32x8xf32>
    %159 = tpu.matmul %156, %158, %cst_159 {dimension_numbers = #tpu.dot_dimension_numbers<[1], [0], [0], [1], [0, 0, 1, 1], [], []>} : vector<32x8xf32>, vector<8x8xf32>, vector<32x8xf32> -> vector<32x8xf32>
    %160 = arith.addf %155, %159 : vector<32x8xf32>
    %161 = tpu.concatenate %139, %160 in 1 : vector<32x8xf32>, vector<32x8xf32> -> vector<32x16xf32>
    %162 = arith.addf %106, %161 : vector<32x16xf32>
    %c0_160 = arith.constant 0 : index
    %c1_161 = arith.constant 1 : index
    %c0_162 = arith.constant 0 : index
    %c0_163 = arith.constant 0 : index
    %163 = vector.load %arg5[%c0_160, %c1_161, %c0_162, %c0_163] : memref<2x2x32x1xf32, #tpu.memory_space<vmem>>, vector<1x1x32x1xf32>
    %164 = vector.shape_cast %163 : vector<1x1x32x1xf32> to vector<32x1xf32>
    %165 = vector.broadcast %164 : vector<32x1xf32> to vector<32x16xf32>
    %166 = arith.addf %162, %165 : vector<32x16xf32>
    %167 = math.tanh %166 : vector<32x16xf32>
    %c0_164 = arith.constant 0 : index
    %c1_165 = arith.constant 1 : index
    %c0_166 = arith.constant 0 : index
    %c0_167 = arith.constant 0 : index
    %168 = vector.load %arg6[%c0_164, %c1_165, %c0_166, %c0_167] : memref<2x2x32x32xbf16, #tpu.memory_space<vmem>>, vector<1x1x32x32xbf16>
    %169 = vector.shape_cast %168 : vector<1x1x32x32xbf16> to vector<32x32xbf16>
    %170 = arith.truncf %167 : vector<32x16xf32> to vector<32x16xbf16>
    %cst_168 = arith.constant dense<0.000000e+00> : vector<32x16xf32>
    %171 = tpu.matmul %169, %170, %cst_168 {dimension_numbers = #tpu.dot_dimension_numbers<[1], [0], [0], [1], [0, 0, 1, 1], [], []>} : vector<32x32xbf16>, vector<32x16xbf16>, vector<32x16xf32> -> vector<32x16xf32>
    %c0_169 = arith.constant 0 : index
    %c1_170 = arith.constant 1 : index
    %c0_171 = arith.constant 0 : index
    %c0_172 = arith.constant 0 : index
    %172 = vector.load %arg7[%c0_169, %c1_170, %c0_171, %c0_172] : memref<2x2x32x1xf32, #tpu.memory_space<vmem>>, vector<1x1x32x1xf32>
    %173 = vector.shape_cast %172 : vector<1x1x32x1xf32> to vector<32x1xf32>
    %174 = vector.broadcast %173 : vector<32x1xf32> to vector<32x16xf32>
    %175 = arith.addf %171, %174 : vector<32x16xf32>
    %176 = vector.extract_strided_slice %175 {offsets = [0, 0], sizes = [16, 16], strides = [1, 1]} : vector<32x16xf32> to vector<16x16xf32>
    %cst_173 = arith.constant 2.000000e+00 : f32
    %177 = vector.broadcast %cst_173 : f32 to vector<16x16xf32>
    %178 = arith.addf %176, %177 : vector<16x16xf32>
    %cst_174 = arith.constant 0.000000e+00 : f32
    %179 = vector.broadcast %cst_174 : f32 to vector<16x16xf32>
    %180 = arith.subf %179, %178 : vector<16x16xf32>
    %181 = math.exp %180 : vector<16x16xf32>
    %cst_175 = arith.constant 1.000000e+00 : f32
    %182 = vector.broadcast %cst_175 : f32 to vector<16x16xf32>
    %183 = arith.addf %182, %181 : vector<16x16xf32>
    %184 = math.log %183 : vector<16x16xf32>
    %cst_176 = arith.constant 0.000000e+00 : f32
    %185 = vector.broadcast %cst_176 : f32 to vector<16x16xf32>
    %186 = arith.subf %185, %184 : vector<16x16xf32>
    %187 = tpu.reciprocal %183 {approx = true} : vector<16x16xf32> -> vector<16x16xf32>
    %188 = vector.extract_strided_slice %175 {offsets = [16, 0], sizes = [16, 16], strides = [1, 1]} : vector<32x16xf32> to vector<16x16xf32>
    %189 = arith.addf %101, %188 : vector<16x16xf32>
    %190 = arith.mulf %189, %187 : vector<16x16xf32>
    %191 = vector.broadcast %0 : vector<16x1xf32> to vector<16x16xf32>
    %192 = arith.mulf %190, %191 : vector<16x16xf32>
    %193 = vector.broadcast %0 : vector<16x1xf32> to vector<16x16xf32>
    %194 = arith.mulf %186, %193 : vector<16x16xf32>
    %cst_177 = arith.constant dense<0.000000e+00> : vector<16xf32>
    %195 = vector.multi_reduction <add>, %194, %cst_177 [0] : vector<16x16xf32> to vector<16xf32>
    %196 = vector.shape_cast %195 : vector<16xf32> to vector<1x16xf32>
    %197 = arith.addf %99, %196 : vector<1x16xf32>
    %198 = tpu.concatenate %192, %102 in 0 : vector<16x16xf32>, vector<16x16xf32> -> vector<32x16xf32>
    %199 = vector.extract_strided_slice %198 {offsets = [0, 0], sizes = [16, 16], strides = [1, 1]} : vector<32x16xf32> to vector<16x16xf32>
    %c0_178 = arith.constant 0 : index
    %c0_179 = arith.constant 0 : index
    %200 = vector.load %arg11[%c0_178, %c0_179] : memref<16x16xf32, #tpu.memory_space<vmem>>, vector<16x16xf32>
    tpu.vector_store %arg11[%c0_178, %c0_179], %199 {strides = array<i32>} : memref<16x16xf32, #tpu.memory_space<vmem>>, vector<16x16xf32>,
    %201 = vector.extract_strided_slice %198 {offsets = [16, 0], sizes = [16, 16], strides = [1, 1]} : vector<32x16xf32> to vector<16x16xf32>
    %202 = vector.extract_strided_slice %201 {offsets = [0, 0], sizes = [16, 4], strides = [1, 1]} : vector<16x16xf32> to vector<16x4xf32>
    %203 = vector.extract_strided_slice %201 {offsets = [0, 8], sizes = [16, 4], strides = [1, 1]} : vector<16x16xf32> to vector<16x4xf32>
    %204 = tpu.concatenate %202, %203 in 1 : vector<16x4xf32>, vector<16x4xf32> -> vector<16x8xf32>
    %205 = vector.extract_strided_slice %201 {offsets = [0, 4], sizes = [16, 4], strides = [1, 1]} : vector<16x16xf32> to vector<16x4xf32>
    %206 = vector.extract_strided_slice %201 {offsets = [0, 12], sizes = [16, 4], strides = [1, 1]} : vector<16x16xf32> to vector<16x4xf32>
    %207 = tpu.concatenate %205, %206 in 1 : vector<16x4xf32>, vector<16x4xf32> -> vector<16x8xf32>
    %208 = tpu.concatenate %204, %207 in 0 : vector<16x8xf32>, vector<16x8xf32> -> vector<32x8xf32>
    %cst_180 = arith.constant 0.000000e+00 : f32
    %209 = vector.broadcast %cst_180 : f32 to vector<1x8xf32>
    %210 = vector.extract_strided_slice %208 {offsets = [0, 0], sizes = [16, 8], strides = [1, 1]} : vector<32x8xf32> to vector<16x8xf32>
    %211 = vector.extract_strided_slice %208 {offsets = [16, 0], sizes = [16, 8], strides = [1, 1]} : vector<32x8xf32> to vector<16x8xf32>
    %212 = arith.truncf %210 : vector<16x8xf32> to vector<16x8xbf16>
    %c1_181 = arith.constant 1 : index
    %c0_182 = arith.constant 0 : index
    %c0_183 = arith.constant 0 : index
    %c0_184 = arith.constant 0 : index
    %213 = vector.load %arg3[%c1_181, %c0_182, %c0_183, %c0_184] : memref<2x2x32x16xbf16, #tpu.memory_space<vmem>>, vector<1x1x32x16xbf16>
    %214 = vector.shape_cast %213 : vector<1x1x32x16xbf16> to vector<32x16xbf16>
    %cst_185 = arith.constant dense<0.000000e+00> : vector<32x8xf32>
    %215 = tpu.matmul %214, %212, %cst_185 {dimension_numbers = #tpu.dot_dimension_numbers<[1], [0], [0], [1], [0, 0, 1, 1], [], []>} : vector<32x16xbf16>, vector<16x8xbf16>, vector<32x8xf32> -> vector<32x8xf32>
    %c1_186 = arith.constant 1 : index
    %c0_187 = arith.constant 0 : index
    %c0_188 = arith.constant 0 : index
    %c0_189 = arith.constant 0 : index
    %c0_190 = arith.constant 0 : index
    %216 = vector.load %arg4[%c1_186, %c0_187, %c0_188, %c0_189, %c0_190] : memref<2x2x4x32x16xbf16, #tpu.memory_space<vmem>>, vector<1x1x1x32x16xbf16>
    %217 = vector.shape_cast %216 : vector<1x1x1x32x16xbf16> to vector<32x16xbf16>
    %cst_191 = arith.constant dense<0.000000e+00> : vector<32x8xf32>
    %218 = tpu.matmul %217, %212, %cst_191 {dimension_numbers = #tpu.dot_dimension_numbers<[1], [0], [0], [1], [0, 0, 1, 1], [], []>} : vector<32x16xbf16>, vector<16x8xbf16>, vector<32x8xf32> -> vector<32x8xf32>
    %c1_192 = arith.constant 1 : index
    %c0_193 = arith.constant 0 : index
    %c1_194 = arith.constant 1 : index
    %c0_195 = arith.constant 0 : index
    %c0_196 = arith.constant 0 : index
    %219 = vector.load %arg4[%c1_192, %c0_193, %c1_194, %c0_195, %c0_196] : memref<2x2x4x32x16xbf16, #tpu.memory_space<vmem>>, vector<1x1x1x32x16xbf16>
    %220 = vector.shape_cast %219 : vector<1x1x1x32x16xbf16> to vector<32x16xbf16>
    %cst_197 = arith.constant dense<0.000000e+00> : vector<32x8xf32>
    %221 = tpu.matmul %220, %212, %cst_197 {dimension_numbers = #tpu.dot_dimension_numbers<[1], [0], [0], [1], [0, 0, 1, 1], [], []>} : vector<32x16xbf16>, vector<16x8xbf16>, vector<32x8xf32> -> vector<32x8xf32>
    %c1_198 = arith.constant 1 : index
    %c0_199 = arith.constant 0 : index
    %c2_200 = arith.constant 2 : index
    %c0_201 = arith.constant 0 : index
    %c0_202 = arith.constant 0 : index
    %222 = vector.load %arg4[%c1_198, %c0_199, %c2_200, %c0_201, %c0_202] : memref<2x2x4x32x16xbf16, #tpu.memory_space<vmem>>, vector<1x1x1x32x16xbf16>
    %223 = vector.shape_cast %222 : vector<1x1x1x32x16xbf16> to vector<32x16xbf16>
    %cst_203 = arith.constant dense<0.000000e+00> : vector<32x8xf32>
    %224 = tpu.matmul %223, %212, %cst_203 {dimension_numbers = #tpu.dot_dimension_numbers<[1], [0], [0], [1], [0, 0, 1, 1], [], []>} : vector<32x16xbf16>, vector<16x8xbf16>, vector<32x8xf32> -> vector<32x8xf32>
    %c1_204 = arith.constant 1 : index
    %c0_205 = arith.constant 0 : index
    %c3_206 = arith.constant 3 : index
    %c0_207 = arith.constant 0 : index
    %c0_208 = arith.constant 0 : index
    %225 = vector.load %arg4[%c1_204, %c0_205, %c3_206, %c0_207, %c0_208] : memref<2x2x4x32x16xbf16, #tpu.memory_space<vmem>>, vector<1x1x1x32x16xbf16>
    %226 = vector.shape_cast %225 : vector<1x1x1x32x16xbf16> to vector<32x16xbf16>
    %cst_209 = arith.constant dense<0.000000e+00> : vector<32x8xf32>
    %227 = tpu.matmul %226, %212, %cst_209 {dimension_numbers = #tpu.dot_dimension_numbers<[1], [0], [0], [1], [0, 0, 1, 1], [], []>} : vector<32x16xbf16>, vector<16x8xbf16>, vector<32x8xf32> -> vector<32x8xf32>
    %cst_210 = arith.constant 0.000000e+00 : f32
    %228 = vector.broadcast %cst_210 : f32 to vector<32x4xf32>
    %229 = vector.extract_strided_slice %218 {offsets = [0, 0], sizes = [32, 4], strides = [1, 1]} : vector<32x8xf32> to vector<32x4xf32>
    %c0_211 = arith.constant 0 : index
    %c0_212 = arith.constant 0 : index
    %c0_213 = arith.constant 0 : index
    %c0_214 = arith.constant 0 : index
    %230 = vector.load %arg2[%c0_211, %c0_212, %c0_213, %c0_214] : memref<4x2x4x4xf32, #tpu.memory_space<vmem>>, vector<1x1x4x4xf32>
    %231 = vector.shape_cast %230 : vector<1x1x4x4xf32> to vector<4x4xf32>
    %cst_215 = arith.constant dense<0.000000e+00> : vector<32x4xf32>
    %232 = tpu.matmul %229, %231, %cst_215 {dimension_numbers = #tpu.dot_dimension_numbers<[1], [0], [0], [1], [0, 0, 1, 1], [], []>} : vector<32x4xf32>, vector<4x4xf32>, vector<32x4xf32> -> vector<32x4xf32>
    %233 = arith.addf %228, %232 : vector<32x4xf32>
    %234 = vector.extract_strided_slice %221 {offsets = [0, 0], sizes = [32, 4], strides = [1, 1]} : vector<32x8xf32> to vector<32x4xf32>
    %c1_216 = arith.constant 1 : index
    %c0_217 = arith.constant 0 : index
    %c0_218 = arith.constant 0 : index
    %c0_219 = arith.constant 0 : index
    %235 = vector.load %arg2[%c1_216, %c0_217, %c0_218, %c0_219] : memref<4x2x4x4xf32, #tpu.memory_space<vmem>>, vector<1x1x4x4xf32>
    %236 = vector.shape_cast %235 : vector<1x1x4x4xf32> to vector<4x4xf32>
    %cst_220 = arith.constant dense<0.000000e+00> : vector<32x4xf32>
    %237 = tpu.matmul %234, %236, %cst_220 {dimension_numbers = #tpu.dot_dimension_numbers<[1], [0], [0], [1], [0, 0, 1, 1], [], []>} : vector<32x4xf32>, vector<4x4xf32>, vector<32x4xf32> -> vector<32x4xf32>
    %238 = arith.addf %233, %237 : vector<32x4xf32>
    %239 = vector.extract_strided_slice %224 {offsets = [0, 0], sizes = [32, 4], strides = [1, 1]} : vector<32x8xf32> to vector<32x4xf32>
    %c2_221 = arith.constant 2 : index
    %c0_222 = arith.constant 0 : index
    %c0_223 = arith.constant 0 : index
    %c0_224 = arith.constant 0 : index
    %240 = vector.load %arg2[%c2_221, %c0_222, %c0_223, %c0_224] : memref<4x2x4x4xf32, #tpu.memory_space<vmem>>, vector<1x1x4x4xf32>
    %241 = vector.shape_cast %240 : vector<1x1x4x4xf32> to vector<4x4xf32>
    %cst_225 = arith.constant dense<0.000000e+00> : vector<32x4xf32>
    %242 = tpu.matmul %239, %241, %cst_225 {dimension_numbers = #tpu.dot_dimension_numbers<[1], [0], [0], [1], [0, 0, 1, 1], [], []>} : vector<32x4xf32>, vector<4x4xf32>, vector<32x4xf32> -> vector<32x4xf32>
    %243 = arith.addf %238, %242 : vector<32x4xf32>
    %244 = vector.extract_strided_slice %227 {offsets = [0, 0], sizes = [32, 4], strides = [1, 1]} : vector<32x8xf32> to vector<32x4xf32>
    %c3_226 = arith.constant 3 : index
    %c0_227 = arith.constant 0 : index
    %c0_228 = arith.constant 0 : index
    %c0_229 = arith.constant 0 : index
    %245 = vector.load %arg2[%c3_226, %c0_227, %c0_228, %c0_229] : memref<4x2x4x4xf32, #tpu.memory_space<vmem>>, vector<1x1x4x4xf32>
    %246 = vector.shape_cast %245 : vector<1x1x4x4xf32> to vector<4x4xf32>
    %cst_230 = arith.constant dense<0.000000e+00> : vector<32x4xf32>
    %247 = tpu.matmul %244, %246, %cst_230 {dimension_numbers = #tpu.dot_dimension_numbers<[1], [0], [0], [1], [0, 0, 1, 1], [], []>} : vector<32x4xf32>, vector<4x4xf32>, vector<32x4xf32> -> vector<32x4xf32>
    %248 = arith.addf %243, %247 : vector<32x4xf32>
    %cst_231 = arith.constant 0.000000e+00 : f32
    %249 = vector.broadcast %cst_231 : f32 to vector<32x4xf32>
    %250 = vector.extract_strided_slice %218 {offsets = [0, 4], sizes = [32, 4], strides = [1, 1]} : vector<32x8xf32> to vector<32x4xf32>
    %c0_232 = arith.constant 0 : index
    %c1_233 = arith.constant 1 : index
    %c0_234 = arith.constant 0 : index
    %c0_235 = arith.constant 0 : index
    %251 = vector.load %arg2[%c0_232, %c1_233, %c0_234, %c0_235] : memref<4x2x4x4xf32, #tpu.memory_space<vmem>>, vector<1x1x4x4xf32>
    %252 = vector.shape_cast %251 : vector<1x1x4x4xf32> to vector<4x4xf32>
    %cst_236 = arith.constant dense<0.000000e+00> : vector<32x4xf32>
    %253 = tpu.matmul %250, %252, %cst_236 {dimension_numbers = #tpu.dot_dimension_numbers<[1], [0], [0], [1], [0, 0, 1, 1], [], []>} : vector<32x4xf32>, vector<4x4xf32>, vector<32x4xf32> -> vector<32x4xf32>
    %254 = arith.addf %249, %253 : vector<32x4xf32>
    %255 = vector.extract_strided_slice %221 {offsets = [0, 4], sizes = [32, 4], strides = [1, 1]} : vector<32x8xf32> to vector<32x4xf32>
    %c1_237 = arith.constant 1 : index
    %c1_238 = arith.constant 1 : index
    %c0_239 = arith.constant 0 : index
    %c0_240 = arith.constant 0 : index
    %256 = vector.load %arg2[%c1_237, %c1_238, %c0_239, %c0_240] : memref<4x2x4x4xf32, #tpu.memory_space<vmem>>, vector<1x1x4x4xf32>
    %257 = vector.shape_cast %256 : vector<1x1x4x4xf32> to vector<4x4xf32>
    %cst_241 = arith.constant dense<0.000000e+00> : vector<32x4xf32>
    %258 = tpu.matmul %255, %257, %cst_241 {dimension_numbers = #tpu.dot_dimension_numbers<[1], [0], [0], [1], [0, 0, 1, 1], [], []>} : vector<32x4xf32>, vector<4x4xf32>, vector<32x4xf32> -> vector<32x4xf32>
    %259 = arith.addf %254, %258 : vector<32x4xf32>
    %260 = vector.extract_strided_slice %224 {offsets = [0, 4], sizes = [32, 4], strides = [1, 1]} : vector<32x8xf32> to vector<32x4xf32>
    %c2_242 = arith.constant 2 : index
    %c1_243 = arith.constant 1 : index
    %c0_244 = arith.constant 0 : index
    %c0_245 = arith.constant 0 : index
    %261 = vector.load %arg2[%c2_242, %c1_243, %c0_244, %c0_245] : memref<4x2x4x4xf32, #tpu.memory_space<vmem>>, vector<1x1x4x4xf32>
    %262 = vector.shape_cast %261 : vector<1x1x4x4xf32> to vector<4x4xf32>
    %cst_246 = arith.constant dense<0.000000e+00> : vector<32x4xf32>
    %263 = tpu.matmul %260, %262, %cst_246 {dimension_numbers = #tpu.dot_dimension_numbers<[1], [0], [0], [1], [0, 0, 1, 1], [], []>} : vector<32x4xf32>, vector<4x4xf32>, vector<32x4xf32> -> vector<32x4xf32>
    %264 = arith.addf %259, %263 : vector<32x4xf32>
    %265 = vector.extract_strided_slice %227 {offsets = [0, 4], sizes = [32, 4], strides = [1, 1]} : vector<32x8xf32> to vector<32x4xf32>
    %c3_247 = arith.constant 3 : index
    %c1_248 = arith.constant 1 : index
    %c0_249 = arith.constant 0 : index
    %c0_250 = arith.constant 0 : index
    %266 = vector.load %arg2[%c3_247, %c1_248, %c0_249, %c0_250] : memref<4x2x4x4xf32, #tpu.memory_space<vmem>>, vector<1x1x4x4xf32>
    %267 = vector.shape_cast %266 : vector<1x1x4x4xf32> to vector<4x4xf32>
    %cst_251 = arith.constant dense<0.000000e+00> : vector<32x4xf32>
    %268 = tpu.matmul %265, %267, %cst_251 {dimension_numbers = #tpu.dot_dimension_numbers<[1], [0], [0], [1], [0, 0, 1, 1], [], []>} : vector<32x4xf32>, vector<4x4xf32>, vector<32x4xf32> -> vector<32x4xf32>
    %269 = arith.addf %264, %268 : vector<32x4xf32>
    %270 = tpu.concatenate %248, %269 in 1 : vector<32x4xf32>, vector<32x4xf32> -> vector<32x8xf32>
    %271 = arith.addf %215, %270 : vector<32x8xf32>
    %c1_252 = arith.constant 1 : index
    %c0_253 = arith.constant 0 : index
    %c0_254 = arith.constant 0 : index
    %c0_255 = arith.constant 0 : index
    %272 = vector.load %arg5[%c1_252, %c0_253, %c0_254, %c0_255] : memref<2x2x32x1xf32, #tpu.memory_space<vmem>>, vector<1x1x32x1xf32>
    %273 = vector.shape_cast %272 : vector<1x1x32x1xf32> to vector<32x1xf32>
    %274 = vector.broadcast %273 : vector<32x1xf32> to vector<32x8xf32>
    %275 = arith.addf %271, %274 : vector<32x8xf32>
    %276 = math.tanh %275 : vector<32x8xf32>
    %c1_256 = arith.constant 1 : index
    %c0_257 = arith.constant 0 : index
    %c0_258 = arith.constant 0 : index
    %c0_259 = arith.constant 0 : index
    %277 = vector.load %arg6[%c1_256, %c0_257, %c0_258, %c0_259] : memref<2x2x32x32xbf16, #tpu.memory_space<vmem>>, vector<1x1x32x32xbf16>
    %278 = vector.shape_cast %277 : vector<1x1x32x32xbf16> to vector<32x32xbf16>
    %279 = arith.truncf %276 : vector<32x8xf32> to vector<32x8xbf16>
    %cst_260 = arith.constant dense<0.000000e+00> : vector<32x8xf32>
    %280 = tpu.matmul %278, %279, %cst_260 {dimension_numbers = #tpu.dot_dimension_numbers<[1], [0], [0], [1], [0, 0, 1, 1], [], []>} : vector<32x32xbf16>, vector<32x8xbf16>, vector<32x8xf32> -> vector<32x8xf32>
    %c1_261 = arith.constant 1 : index
    %c0_262 = arith.constant 0 : index
    %c0_263 = arith.constant 0 : index
    %c0_264 = arith.constant 0 : index
    %281 = vector.load %arg7[%c1_261, %c0_262, %c0_263, %c0_264] : memref<2x2x32x1xf32, #tpu.memory_space<vmem>>, vector<1x1x32x1xf32>
    %282 = vector.shape_cast %281 : vector<1x1x32x1xf32> to vector<32x1xf32>
    %283 = vector.broadcast %282 : vector<32x1xf32> to vector<32x8xf32>
    %284 = arith.addf %280, %283 : vector<32x8xf32>
    %285 = vector.extract_strided_slice %284 {offsets = [0, 0], sizes = [16, 8], strides = [1, 1]} : vector<32x8xf32> to vector<16x8xf32>
    %cst_265 = arith.constant 2.000000e+00 : f32
    %286 = vector.broadcast %cst_265 : f32 to vector<16x8xf32>
    %287 = arith.addf %285, %286 : vector<16x8xf32>
    %cst_266 = arith.constant 0.000000e+00 : f32
    %288 = vector.broadcast %cst_266 : f32 to vector<16x8xf32>
    %289 = arith.subf %288, %287 : vector<16x8xf32>
    %290 = math.exp %289 : vector<16x8xf32>
    %cst_267 = arith.constant 1.000000e+00 : f32
    %291 = vector.broadcast %cst_267 : f32 to vector<16x8xf32>
    %292 = arith.addf %291, %290 : vector<16x8xf32>
    %293 = math.log %292 : vector<16x8xf32>
    %cst_268 = arith.constant 0.000000e+00 : f32
    %294 = vector.broadcast %cst_268 : f32 to vector<16x8xf32>
    %295 = arith.subf %294, %293 : vector<16x8xf32>
    %296 = tpu.reciprocal %292 {approx = true} : vector<16x8xf32> -> vector<16x8xf32>
    %297 = vector.extract_strided_slice %284 {offsets = [16, 0], sizes = [16, 8], strides = [1, 1]} : vector<32x8xf32> to vector<16x8xf32>
    %298 = arith.addf %211, %297 : vector<16x8xf32>
    %299 = arith.mulf %298, %296 : vector<16x8xf32>
    %300 = vector.broadcast %0 : vector<16x1xf32> to vector<16x8xf32>
    %301 = arith.mulf %299, %300 : vector<16x8xf32>
    %302 = vector.broadcast %0 : vector<16x1xf32> to vector<16x8xf32>
    %303 = arith.mulf %295, %302 : vector<16x8xf32>
    %cst_269 = arith.constant dense<0.000000e+00> : vector<8xf32>
    %304 = vector.multi_reduction <add>, %303, %cst_269 [0] : vector<16x8xf32> to vector<8xf32>
    %305 = vector.shape_cast %304 : vector<8xf32> to vector<1x8xf32>
    %306 = arith.addf %209, %305 : vector<1x8xf32>
    %307 = tpu.concatenate %210, %301 in 0 : vector<16x8xf32>, vector<16x8xf32> -> vector<32x8xf32>
    %308 = vector.extract_strided_slice %307 {offsets = [0, 0], sizes = [16, 8], strides = [1, 1]} : vector<32x8xf32> to vector<16x8xf32>
    %309 = vector.extract_strided_slice %307 {offsets = [16, 0], sizes = [16, 8], strides = [1, 1]} : vector<32x8xf32> to vector<16x8xf32>
    %310 = arith.truncf %309 : vector<16x8xf32> to vector<16x8xbf16>
    %c1_270 = arith.constant 1 : index
    %c1_271 = arith.constant 1 : index
    %c0_272 = arith.constant 0 : index
    %c0_273 = arith.constant 0 : index
    %311 = vector.load %arg3[%c1_270, %c1_271, %c0_272, %c0_273] : memref<2x2x32x16xbf16, #tpu.memory_space<vmem>>, vector<1x1x32x16xbf16>
    %312 = vector.shape_cast %311 : vector<1x1x32x16xbf16> to vector<32x16xbf16>
    %cst_274 = arith.constant dense<0.000000e+00> : vector<32x8xf32>
    %313 = tpu.matmul %312, %310, %cst_274 {dimension_numbers = #tpu.dot_dimension_numbers<[1], [0], [0], [1], [0, 0, 1, 1], [], []>} : vector<32x16xbf16>, vector<16x8xbf16>, vector<32x8xf32> -> vector<32x8xf32>
    %c1_275 = arith.constant 1 : index
    %c1_276 = arith.constant 1 : index
    %c0_277 = arith.constant 0 : index
    %c0_278 = arith.constant 0 : index
    %c0_279 = arith.constant 0 : index
    %314 = vector.load %arg4[%c1_275, %c1_276, %c0_277, %c0_278, %c0_279] : memref<2x2x4x32x16xbf16, #tpu.memory_space<vmem>>, vector<1x1x1x32x16xbf16>
    %315 = vector.shape_cast %314 : vector<1x1x1x32x16xbf16> to vector<32x16xbf16>
    %cst_280 = arith.constant dense<0.000000e+00> : vector<32x8xf32>
    %316 = tpu.matmul %315, %310, %cst_280 {dimension_numbers = #tpu.dot_dimension_numbers<[1], [0], [0], [1], [0, 0, 1, 1], [], []>} : vector<32x16xbf16>, vector<16x8xbf16>, vector<32x8xf32> -> vector<32x8xf32>
    %c1_281 = arith.constant 1 : index
    %c1_282 = arith.constant 1 : index
    %c1_283 = arith.constant 1 : index
    %c0_284 = arith.constant 0 : index
    %c0_285 = arith.constant 0 : index
    %317 = vector.load %arg4[%c1_281, %c1_282, %c1_283, %c0_284, %c0_285] : memref<2x2x4x32x16xbf16, #tpu.memory_space<vmem>>, vector<1x1x1x32x16xbf16>
    %318 = vector.shape_cast %317 : vector<1x1x1x32x16xbf16> to vector<32x16xbf16>
    %cst_286 = arith.constant dense<0.000000e+00> : vector<32x8xf32>
    %319 = tpu.matmul %318, %310, %cst_286 {dimension_numbers = #tpu.dot_dimension_numbers<[1], [0], [0], [1], [0, 0, 1, 1], [], []>} : vector<32x16xbf16>, vector<16x8xbf16>, vector<32x8xf32> -> vector<32x8xf32>
    %c1_287 = arith.constant 1 : index
    %c1_288 = arith.constant 1 : index
    %c2_289 = arith.constant 2 : index
    %c0_290 = arith.constant 0 : index
    %c0_291 = arith.constant 0 : index
    %320 = vector.load %arg4[%c1_287, %c1_288, %c2_289, %c0_290, %c0_291] : memref<2x2x4x32x16xbf16, #tpu.memory_space<vmem>>, vector<1x1x1x32x16xbf16>
    %321 = vector.shape_cast %320 : vector<1x1x1x32x16xbf16> to vector<32x16xbf16>
    %cst_292 = arith.constant dense<0.000000e+00> : vector<32x8xf32>
    %322 = tpu.matmul %321, %310, %cst_292 {dimension_numbers = #tpu.dot_dimension_numbers<[1], [0], [0], [1], [0, 0, 1, 1], [], []>} : vector<32x16xbf16>, vector<16x8xbf16>, vector<32x8xf32> -> vector<32x8xf32>
    %c1_293 = arith.constant 1 : index
    %c1_294 = arith.constant 1 : index
    %c3_295 = arith.constant 3 : index
    %c0_296 = arith.constant 0 : index
    %c0_297 = arith.constant 0 : index
    %323 = vector.load %arg4[%c1_293, %c1_294, %c3_295, %c0_296, %c0_297] : memref<2x2x4x32x16xbf16, #tpu.memory_space<vmem>>, vector<1x1x1x32x16xbf16>
    %324 = vector.shape_cast %323 : vector<1x1x1x32x16xbf16> to vector<32x16xbf16>
    %cst_298 = arith.constant dense<0.000000e+00> : vector<32x8xf32>
    %325 = tpu.matmul %324, %310, %cst_298 {dimension_numbers = #tpu.dot_dimension_numbers<[1], [0], [0], [1], [0, 0, 1, 1], [], []>} : vector<32x16xbf16>, vector<16x8xbf16>, vector<32x8xf32> -> vector<32x8xf32>
    %cst_299 = arith.constant 0.000000e+00 : f32
    %326 = vector.broadcast %cst_299 : f32 to vector<32x4xf32>
    %327 = vector.extract_strided_slice %316 {offsets = [0, 0], sizes = [32, 4], strides = [1, 1]} : vector<32x8xf32> to vector<32x4xf32>
    %c0_300 = arith.constant 0 : index
    %c0_301 = arith.constant 0 : index
    %c0_302 = arith.constant 0 : index
    %c0_303 = arith.constant 0 : index
    %328 = vector.load %arg2[%c0_300, %c0_301, %c0_302, %c0_303] : memref<4x2x4x4xf32, #tpu.memory_space<vmem>>, vector<1x1x4x4xf32>
    %329 = vector.shape_cast %328 : vector<1x1x4x4xf32> to vector<4x4xf32>
    %cst_304 = arith.constant dense<0.000000e+00> : vector<32x4xf32>
    %330 = tpu.matmul %327, %329, %cst_304 {dimension_numbers = #tpu.dot_dimension_numbers<[1], [0], [0], [1], [0, 0, 1, 1], [], []>} : vector<32x4xf32>, vector<4x4xf32>, vector<32x4xf32> -> vector<32x4xf32>
    %331 = arith.addf %326, %330 : vector<32x4xf32>
    %332 = vector.extract_strided_slice %319 {offsets = [0, 0], sizes = [32, 4], strides = [1, 1]} : vector<32x8xf32> to vector<32x4xf32>
    %c1_305 = arith.constant 1 : index
    %c0_306 = arith.constant 0 : index
    %c0_307 = arith.constant 0 : index
    %c0_308 = arith.constant 0 : index
    %333 = vector.load %arg2[%c1_305, %c0_306, %c0_307, %c0_308] : memref<4x2x4x4xf32, #tpu.memory_space<vmem>>, vector<1x1x4x4xf32>
    %334 = vector.shape_cast %333 : vector<1x1x4x4xf32> to vector<4x4xf32>
    %cst_309 = arith.constant dense<0.000000e+00> : vector<32x4xf32>
    %335 = tpu.matmul %332, %334, %cst_309 {dimension_numbers = #tpu.dot_dimension_numbers<[1], [0], [0], [1], [0, 0, 1, 1], [], []>} : vector<32x4xf32>, vector<4x4xf32>, vector<32x4xf32> -> vector<32x4xf32>
    %336 = arith.addf %331, %335 : vector<32x4xf32>
    %337 = vector.extract_strided_slice %322 {offsets = [0, 0], sizes = [32, 4], strides = [1, 1]} : vector<32x8xf32> to vector<32x4xf32>
    %c2_310 = arith.constant 2 : index
    %c0_311 = arith.constant 0 : index
    %c0_312 = arith.constant 0 : index
    %c0_313 = arith.constant 0 : index
    %338 = vector.load %arg2[%c2_310, %c0_311, %c0_312, %c0_313] : memref<4x2x4x4xf32, #tpu.memory_space<vmem>>, vector<1x1x4x4xf32>
    %339 = vector.shape_cast %338 : vector<1x1x4x4xf32> to vector<4x4xf32>
    %cst_314 = arith.constant dense<0.000000e+00> : vector<32x4xf32>
    %340 = tpu.matmul %337, %339, %cst_314 {dimension_numbers = #tpu.dot_dimension_numbers<[1], [0], [0], [1], [0, 0, 1, 1], [], []>} : vector<32x4xf32>, vector<4x4xf32>, vector<32x4xf32> -> vector<32x4xf32>
    %341 = arith.addf %336, %340 : vector<32x4xf32>
    %342 = vector.extract_strided_slice %325 {offsets = [0, 0], sizes = [32, 4], strides = [1, 1]} : vector<32x8xf32> to vector<32x4xf32>
    %c3_315 = arith.constant 3 : index
    %c0_316 = arith.constant 0 : index
    %c0_317 = arith.constant 0 : index
    %c0_318 = arith.constant 0 : index
    %343 = vector.load %arg2[%c3_315, %c0_316, %c0_317, %c0_318] : memref<4x2x4x4xf32, #tpu.memory_space<vmem>>, vector<1x1x4x4xf32>
    %344 = vector.shape_cast %343 : vector<1x1x4x4xf32> to vector<4x4xf32>
    %cst_319 = arith.constant dense<0.000000e+00> : vector<32x4xf32>
    %345 = tpu.matmul %342, %344, %cst_319 {dimension_numbers = #tpu.dot_dimension_numbers<[1], [0], [0], [1], [0, 0, 1, 1], [], []>} : vector<32x4xf32>, vector<4x4xf32>, vector<32x4xf32> -> vector<32x4xf32>
    %346 = arith.addf %341, %345 : vector<32x4xf32>
    %cst_320 = arith.constant 0.000000e+00 : f32
    %347 = vector.broadcast %cst_320 : f32 to vector<32x4xf32>
    %348 = vector.extract_strided_slice %316 {offsets = [0, 4], sizes = [32, 4], strides = [1, 1]} : vector<32x8xf32> to vector<32x4xf32>
    %c0_321 = arith.constant 0 : index
    %c1_322 = arith.constant 1 : index
    %c0_323 = arith.constant 0 : index
    %c0_324 = arith.constant 0 : index
    %349 = vector.load %arg2[%c0_321, %c1_322, %c0_323, %c0_324] : memref<4x2x4x4xf32, #tpu.memory_space<vmem>>, vector<1x1x4x4xf32>
    %350 = vector.shape_cast %349 : vector<1x1x4x4xf32> to vector<4x4xf32>
    %cst_325 = arith.constant dense<0.000000e+00> : vector<32x4xf32>
    %351 = tpu.matmul %348, %350, %cst_325 {dimension_numbers = #tpu.dot_dimension_numbers<[1], [0], [0], [1], [0, 0, 1, 1], [], []>} : vector<32x4xf32>, vector<4x4xf32>, vector<32x4xf32> -> vector<32x4xf32>
    %352 = arith.addf %347, %351 : vector<32x4xf32>
    %353 = vector.extract_strided_slice %319 {offsets = [0, 4], sizes = [32, 4], strides = [1, 1]} : vector<32x8xf32> to vector<32x4xf32>
    %c1_326 = arith.constant 1 : index
    %c1_327 = arith.constant 1 : index
    %c0_328 = arith.constant 0 : index
    %c0_329 = arith.constant 0 : index
    %354 = vector.load %arg2[%c1_326, %c1_327, %c0_328, %c0_329] : memref<4x2x4x4xf32, #tpu.memory_space<vmem>>, vector<1x1x4x4xf32>
    %355 = vector.shape_cast %354 : vector<1x1x4x4xf32> to vector<4x4xf32>
    %cst_330 = arith.constant dense<0.000000e+00> : vector<32x4xf32>
    %356 = tpu.matmul %353, %355, %cst_330 {dimension_numbers = #tpu.dot_dimension_numbers<[1], [0], [0], [1], [0, 0, 1, 1], [], []>} : vector<32x4xf32>, vector<4x4xf32>, vector<32x4xf32> -> vector<32x4xf32>
    %357 = arith.addf %352, %356 : vector<32x4xf32>
    %358 = vector.extract_strided_slice %322 {offsets = [0, 4], sizes = [32, 4], strides = [1, 1]} : vector<32x8xf32> to vector<32x4xf32>
    %c2_331 = arith.constant 2 : index
    %c1_332 = arith.constant 1 : index
    %c0_333 = arith.constant 0 : index
    %c0_334 = arith.constant 0 : index
    %359 = vector.load %arg2[%c2_331, %c1_332, %c0_333, %c0_334] : memref<4x2x4x4xf32, #tpu.memory_space<vmem>>, vector<1x1x4x4xf32>
    %360 = vector.shape_cast %359 : vector<1x1x4x4xf32> to vector<4x4xf32>
    %cst_335 = arith.constant dense<0.000000e+00> : vector<32x4xf32>
    %361 = tpu.matmul %358, %360, %cst_335 {dimension_numbers = #tpu.dot_dimension_numbers<[1], [0], [0], [1], [0, 0, 1, 1], [], []>} : vector<32x4xf32>, vector<4x4xf32>, vector<32x4xf32> -> vector<32x4xf32>
    %362 = arith.addf %357, %361 : vector<32x4xf32>
    %363 = vector.extract_strided_slice %325 {offsets = [0, 4], sizes = [32, 4], strides = [1, 1]} : vector<32x8xf32> to vector<32x4xf32>
    %c3_336 = arith.constant 3 : index
    %c1_337 = arith.constant 1 : index
    %c0_338 = arith.constant 0 : index
    %c0_339 = arith.constant 0 : index
    %364 = vector.load %arg2[%c3_336, %c1_337, %c0_338, %c0_339] : memref<4x2x4x4xf32, #tpu.memory_space<vmem>>, vector<1x1x4x4xf32>
    %365 = vector.shape_cast %364 : vector<1x1x4x4xf32> to vector<4x4xf32>
    %cst_340 = arith.constant dense<0.000000e+00> : vector<32x4xf32>
    %366 = tpu.matmul %363, %365, %cst_340 {dimension_numbers = #tpu.dot_dimension_numbers<[1], [0], [0], [1], [0, 0, 1, 1], [], []>} : vector<32x4xf32>, vector<4x4xf32>, vector<32x4xf32> -> vector<32x4xf32>
    %367 = arith.addf %362, %366 : vector<32x4xf32>
    %368 = tpu.concatenate %346, %367 in 1 : vector<32x4xf32>, vector<32x4xf32> -> vector<32x8xf32>
    %369 = arith.addf %313, %368 : vector<32x8xf32>
    %c1_341 = arith.constant 1 : index
    %c1_342 = arith.constant 1 : index
    %c0_343 = arith.constant 0 : index
    %c0_344 = arith.constant 0 : index
    %370 = vector.load %arg5[%c1_341, %c1_342, %c0_343, %c0_344] : memref<2x2x32x1xf32, #tpu.memory_space<vmem>>, vector<1x1x32x1xf32>
    %371 = vector.shape_cast %370 : vector<1x1x32x1xf32> to vector<32x1xf32>
    %372 = vector.broadcast %371 : vector<32x1xf32> to vector<32x8xf32>
    %373 = arith.addf %369, %372 : vector<32x8xf32>
    %374 = math.tanh %373 : vector<32x8xf32>
    %c1_345 = arith.constant 1 : index
    %c1_346 = arith.constant 1 : index
    %c0_347 = arith.constant 0 : index
    %c0_348 = arith.constant 0 : index
    %375 = vector.load %arg6[%c1_345, %c1_346, %c0_347, %c0_348] : memref<2x2x32x32xbf16, #tpu.memory_space<vmem>>, vector<1x1x32x32xbf16>
    %376 = vector.shape_cast %375 : vector<1x1x32x32xbf16> to vector<32x32xbf16>
    %377 = arith.truncf %374 : vector<32x8xf32> to vector<32x8xbf16>
    %cst_349 = arith.constant dense<0.000000e+00> : vector<32x8xf32>
    %378 = tpu.matmul %376, %377, %cst_349 {dimension_numbers = #tpu.dot_dimension_numbers<[1], [0], [0], [1], [0, 0, 1, 1], [], []>} : vector<32x32xbf16>, vector<32x8xbf16>, vector<32x8xf32> -> vector<32x8xf32>
    %c1_350 = arith.constant 1 : index
    %c1_351 = arith.constant 1 : index
    %c0_352 = arith.constant 0 : index
    %c0_353 = arith.constant 0 : index
    %379 = vector.load %arg7[%c1_350, %c1_351, %c0_352, %c0_353] : memref<2x2x32x1xf32, #tpu.memory_space<vmem>>, vector<1x1x32x1xf32>
    %380 = vector.shape_cast %379 : vector<1x1x32x1xf32> to vector<32x1xf32>
    %381 = vector.broadcast %380 : vector<32x1xf32> to vector<32x8xf32>
    %382 = arith.addf %378, %381 : vector<32x8xf32>
    %383 = vector.extract_strided_slice %382 {offsets = [0, 0], sizes = [16, 8], strides = [1, 1]} : vector<32x8xf32> to vector<16x8xf32>
    %cst_354 = arith.constant 2.000000e+00 : f32
    %384 = vector.broadcast %cst_354 : f32 to vector<16x8xf32>
    %385 = arith.addf %383, %384 : vector<16x8xf32>
    %cst_355 = arith.constant 0.000000e+00 : f32
    %386 = vector.broadcast %cst_355 : f32 to vector<16x8xf32>
    %387 = arith.subf %386, %385 : vector<16x8xf32>
    %388 = math.exp %387 : vector<16x8xf32>
    %cst_356 = arith.constant 1.000000e+00 : f32
    %389 = vector.broadcast %cst_356 : f32 to vector<16x8xf32>
    %390 = arith.addf %389, %388 : vector<16x8xf32>
    %391 = math.log %390 : vector<16x8xf32>
    %cst_357 = arith.constant 0.000000e+00 : f32
    %392 = vector.broadcast %cst_357 : f32 to vector<16x8xf32>
    %393 = arith.subf %392, %391 : vector<16x8xf32>
    %394 = tpu.reciprocal %390 {approx = true} : vector<16x8xf32> -> vector<16x8xf32>
    %395 = vector.extract_strided_slice %382 {offsets = [16, 0], sizes = [16, 8], strides = [1, 1]} : vector<32x8xf32> to vector<16x8xf32>
    %396 = arith.addf %308, %395 : vector<16x8xf32>
    %397 = arith.mulf %396, %394 : vector<16x8xf32>
    %398 = vector.broadcast %0 : vector<16x1xf32> to vector<16x8xf32>
    %399 = arith.mulf %397, %398 : vector<16x8xf32>
    %400 = vector.broadcast %0 : vector<16x1xf32> to vector<16x8xf32>
    %401 = arith.mulf %393, %400 : vector<16x8xf32>
    %cst_358 = arith.constant dense<0.000000e+00> : vector<8xf32>
    %402 = vector.multi_reduction <add>, %401, %cst_358 [0] : vector<16x8xf32> to vector<8xf32>
    %403 = vector.shape_cast %402 : vector<8xf32> to vector<1x8xf32>
    %404 = arith.addf %306, %403 : vector<1x8xf32>
    %405 = tpu.concatenate %399, %309 in 0 : vector<16x8xf32>, vector<16x8xf32> -> vector<32x8xf32>
    %c0_359 = arith.constant 0 : index
    %c0_360 = arith.constant 0 : index
    %406 = vector.load %arg12[%c0_359, %c0_360] : memref<32x8xf32, #tpu.memory_space<vmem>>, vector<32x8xf32>
    tpu.vector_store %arg12[%c0_359, %c0_360], %405 {strides = array<i32>} : memref<32x8xf32, #tpu.memory_space<vmem>>, vector<32x8xf32>,
    %c0_361 = arith.constant 0 : index
    %c0_362 = arith.constant 0 : index
    %407 = vector.load %arg9[%c0_361, %c0_362] : memref<16x2xf32, #tpu.memory_space<vmem>>, vector<16x2xf32>
    %cst_363 = arith.constant dense<0.000000e+00> : vector<1x2xf32>
    %408 = tpu.matmul %197, %407, %cst_363 {dimension_numbers = #tpu.dot_dimension_numbers<[1], [0], [0], [1], [0, 0, 1, 1], [], []>} : vector<1x16xf32>, vector<16x2xf32>, vector<1x2xf32> -> vector<1x2xf32>
    %c0_364 = arith.constant 0 : index
    %c0_365 = arith.constant 0 : index
    %409 = vector.load %arg10[%c0_364, %c0_365] : memref<8x2xf32, #tpu.memory_space<vmem>>, vector<8x2xf32>
    %cst_366 = arith.constant dense<0.000000e+00> : vector<1x2xf32>
    %410 = tpu.matmul %404, %409, %cst_366 {dimension_numbers = #tpu.dot_dimension_numbers<[1], [0], [0], [1], [0, 0, 1, 1], [], []>} : vector<1x8xf32>, vector<8x2xf32>, vector<1x2xf32> -> vector<1x2xf32>
    %411 = arith.addf %408, %410 : vector<1x2xf32>
    %c0_367 = arith.constant 0 : index
    %c0_368 = arith.constant 0 : index
    %412 = vector.load %arg13[%c0_367, %c0_368] : memref<1x2xf32, #tpu.memory_space<vmem>>, vector<1x2xf32>
    tpu.vector_store %arg13[%c0_367, %c0_368], %411 {strides = array<i32>} : memref<1x2xf32, #tpu.memory_space<vmem>>, vector<1x2xf32>,
    return
  }
}

</mosaic_0001>

<bundles_post_ra>
// kernel: molhf_forward.5
= control target key start
LH: loop header
LB: loop body
LE: loop exit
PB: predicated region body
PF: predicated region fallthrough
CT: control target
= control target key end

     0   :  { %v1282_v0 = vmov 0   ;;  %vm98_vm0 = vcmask 130048   ;;  %vm162_vm1 = vcmask 1043456   ;;  %vm155_vm2 = vcmask 64512   ;;  %s1284_s26 = smov 64   ;;  %s1285_s29 = smov 96   ;;  %s1766_s2 = inlined_call_operand.vmem [shape: f32[2,16,1], index: 2, kind: input, shape index: {}]   ;;  %s1767_s1 = inlined_call_operand.vmem [shape: f32[2,16,1], index: 1, kind: input, shape index: {}]   ;;  %s1768_s5 = inlined_call_operand.vmem [shape: f32[2,32,1], index: 5, kind: input, shape index: {}]   ;;  %s1769_s7 = inlined_call_operand.vmem [shape: f32[2,16,1], index: 7, kind: input, shape index: {}]   ;;  %s1770_s8 = inlined_call_operand.vmem [shape: f32[2,32,1], index: 8, kind: input, shape index: {}]   ;;  %s1771_s9 = inlined_call_operand.vmem [shape: f32[2,32,1], index: 9, kind: input, shape index: {}]   ;;  %s1772_s12 = inlined_call_operand.vmem [shape: f32[2,32,1], index: 12, kind: input, shape index: {}]   ;;  %s1773_s14 = inlined_call_operand.vmem [shape: f32[2,32,1], index: 14, kind: input, shape index: {}]   ;;  %s1774_s0 = inlined_call_operand.vmem [shape: f32[16,128], index: 0, kind: input, shape index: {}]   ;;  %s1775_s3 = inlined_call_operand.vmem [shape: bf16[2,16,16], index: 3, kind: input, shape index: {}]   ;;  %s1776_s4 = inlined_call_operand.vmem [shape: bf16[2,32,8], index: 4, kind: input, shape index: {}]   ;;  %s1777_s6 = inlined_call_operand.vmem [shape: bf16[2,16,32], index: 6, kind: input, shape index: {}]   ;;  %s1778_s17 = inlined_call_operand.vmem [shape: f32[8,128], index: 17, kind: output, shape index: {0}]   ;;  %s1779_s10 = inlined_call_operand.vmem [shape: bf16[2,32,32], index: 10, kind: input, shape index: {}]   ;;  %s1780_s11 = inlined_call_operand.vmem [shape: bf16[2,32,16], index: 11, kind: input, shape index: {}]   ;;  %s1781_s13 = inlined_call_operand.vmem [shape: bf16[2,32,32], index: 13, kind: input, shape index: {}]   ;;  %s1782_s15 = inlined_call_operand.vmem [shape: f32[128,2], index: 15, kind: input, shape index: {}]   ;;  %s1783_s18 = inlined_call_operand.vmem [shape: f32[32,128], index: 18, kind: output, shape index: {1}]   ;;  %s1784_s16 = inlined_call_operand.vmem [shape: f32[128,2], index: 16, kind: input, shape index: {}]   ;;  %s1785_s19 = inlined_call_operand.vmem [shape: f32[1,2], index: 19, kind: output, shape index: {2}]  }
   0x1   :  { %1790 = sst [smem:[#allocation2_spill]] %s1766_s2  ;;  %1244 = vset.pattern.permute.xlu1 %v1282_v0  ;;  %1243 = vset.pattern.permute.xlu0 %v1282_v0  ;;  %v455_v15 = vld [vmem:[%s1770_s8 + $0x10] sm:$0xff]  ;;  %v453_v16 = vld [vmem:[%s1770_s8] sm:$0xff]  ;;  %v454_v18 = vld [vmem:[%s1770_s8 + $0x8] sm:$0xff]  ;;  %vm210_vm3 = vcmask 261120   ;;  %vm1056_vm5 = vcmask 8192  }
   0x2   :  { %1791 = sst [smem:[#allocation3_spill]] %s1767_s1  ;;  %1245 = vset.pattern.permute.xlu2 %v1282_v0  ;;  %v483_v17 = vld [vmem:[%s1771_s9 + $0x10] sm:$0xff]  ;;  %v556_v20 = vld [vmem:[%s1772_s12 + $0x8] sm:$0xff]  ;;  %v1162_v22 = vld [vmem:[%s1770_s8 + $0x38] sm:$0xff] }
   0x3   :  { %1792 = sst [smem:[#allocation4_spill]] %s1768_s5  ;;  %v557_v19 = vld [vmem:[%s1772_s12 + $0x10] sm:$0xff]  ;;  %v1159_v23 = vld [vmem:[%s1770_s8 + $0x20] sm:$0xff]  ;;  %v1164_v26 = vld [vmem:[%s1771_s9 + $0x28] sm:$0xff] }
   0x4   :  { %1793 = sst [smem:[#allocation5_spill]] %s1769_s7  ;;  %v626_v21 = vld [vmem:[%s1773_s14 + $0x10] sm:$0xff]  ;;  %v60_v27 = vld [vmem:[%s1774_s0] sm:$0xff]  ;;  %v61_v28 = vld [vmem:[%s1774_s0 + $0x8] sm:$0xff] }
   0x5   :  { %s1794_s20 = sld [smem:[#allocation2_spill]]  ;;  %v1185_v33 = vld [vmem:[%s1772_s12 + $0x20] sm:$0xff]  ;;  %v1204_v38 = vld [vmem:[%s1773_s14 + $0x28] sm:$0xff]  ;;  %v456_v50 = vld [vmem:[%s1770_s8 + $0x18] sm:$0xff] }
   0x6   :  { %s1795_s22 = sld [smem:[#allocation3_spill]]  ;;  %v1217_v37 = vld [vmem:[%s1775_s3] sm:$0xff]  ;;  %v1219_v49 = vld [vmem:[%s1776_s4 + $0x8] sm:$0xff]  ;;  %v484_v51 = vld [vmem:[%s1771_s9 + $0x18] sm:$0xff] }
   0x7   :  { %s1796_s27 = sld [smem:[#allocation4_spill]]  ;;  %v1218_v48 = vld [vmem:[%s1776_s4] sm:$0xff] }
   0x8   :  { %s1797_s5 = sld [smem:[#allocation5_spill]] }
   0xb   :  { %v76_v1 = vld [vmem:[%s1794_s20] sm:$0xff]  ;;  %v77_v3 = vld [vmem:[%s1794_s20 + $0x8] sm:$0xff]  ;;  %v1093_v9 = vld [vmem:[%s1794_s20 + $0x18] sm:$0xff] }
   0xc   :  { %v62_v2 = vld [vmem:[%s1795_s22] sm:$0xff]  ;;  %80 = vperm.xlu1 %1244, %v76_v1   ;;  %v63_v4 = vld [vmem:[%s1795_s22 + $0x8] sm:$0xff]  ;;  %v1090_v7 = vld [vmem:[%s1795_s22 + $0x10] sm:$0xff] }
   0xd   :  { %66 = vperm.xlu0 %1243, %v62_v2   ;;  %v122_v5 = vld [vmem:[%s1796_s27 + $0x8] sm:$0xff]  ;;  %v121_v6 = vld [vmem:[%s1796_s27] sm:$0xff]  ;;  %v1092_v10 = vld [vmem:[%s1794_s20 + $0x10] sm:$0xff] }
   0xe   :  { %v194_v8 = vld [vmem:[%s1797_s5 + $0x8] sm:$0xff]  ;;  %v1105_v11 = vld [vmem:[%s1796_s27 + $0x20] sm:$0xff]  ;;  %v1108_v12 = vld [vmem:[%s1796_s27 + $0x38] sm:$0xff] }
   0xf   :  { %v1122_v13 = vld [vmem:[%s1797_s5 + $0x18] sm:$0xff]  ;;  %v1121_v14 = vld [vmem:[%s1797_s5 + $0x10] sm:$0xff]  ;;  %v193_v41 = vld [vmem:[%s1797_s5] sm:$0xff] }
  0x10   :  { %v123_v39 = vld [vmem:[%s1796_s27 + $0x10] sm:$0xff]  ;;  %v124_v40 = vld [vmem:[%s1796_s27 + $0x18] sm:$0xff]  ;;  %v1106_v44 = vld [vmem:[%s1796_s27 + $0x28] sm:$0xff] }
  0x11   :  { %137 = vperm.xlu2 %1245, %v123_v39   ;;  %v1091_v42 = vld [vmem:[%s1795_s22 + $0x18] sm:$0xff]  ;;  %v1107_v43 = vld [vmem:[%s1796_s27 + $0x30] sm:$0xff] }
  0x14   :  { %85 = vperm.xlu1 %1244, %v77_v3  }
  0x15   :  { %71 = vperm.xlu0 %1243, %v63_v4  }
  0x19   :  { %142 = vperm.xlu2 %1245, %v124_v40  }
  0x1c   :  { %132 = vperm.xlu1 %1244, %v122_v5  }
  0x1d   :  { %127 = vperm.xlu0 %1243, %v121_v6   ;;  %v1220_v6 = vld [vmem:[%s1777_s6] sm:$0xff] }
  0x21   :  { %197 = vperm.xlu2 %1245, %v193_v41  }
  0x24   :  { %251 = vperm.xlu1 %1244, %v1090_v7  }
  0x25   :  { %202 = vperm.xlu0 %1243, %v194_v8  }
  0x29   :  { %256 = vperm.xlu2 %1245, %v1091_v42  }
  0x2c   :  { %271 = vperm.xlu1 %1244, %v1093_v9  }
  0x2d   :  { %266 = vperm.xlu0 %1243, %v1092_v10  }
  0x31   :  { %325 = vperm.xlu2 %1245, %v1107_v43  }
  0x34   :  { %315 = vperm.xlu1 %1244, %v1105_v11  }
  0x35   :  { %330 = vperm.xlu0 %1243, %v1108_v12  }
  0x39   :  { %320 = vperm.xlu2 %1245, %v1106_v44  }
  0x3c   :  { %390 = vperm.xlu1 %1244, %v1122_v13  }
  0x3d   :  { %385 = vperm.xlu0 %1243, %v1121_v14  }
  0x41   :  { %474 = vperm.xlu2 %1245, %v456_v50  }
  0x44   :  { %469 = vperm.xlu1 %1244, %v455_v15  }
  0x45   :  { %459 = vperm.xlu0 %1243, %v453_v16  }
  0x49   :  { %502 = vperm.xlu2 %1245, %v484_v51  }
  0x4c   :  { %497 = vperm.xlu1 %1244, %v483_v17  }
  0x54   :  { %464 = vperm.xlu1 %1244, %v454_v18  }
  0x5c   :  { %571 = vperm.xlu1 %1244, %v557_v19  }
  0x64   :  { %566 = vperm.xlu1 %1244, %v556_v20  }
  0x6b   :  { %v138_v53 = vpop.permute.xlu2 %137 }
  0x6c   :  { %640 = vperm.xlu1 %1244, %v626_v21  }
  0x73   :  { %v143_v58 = vpop.permute.xlu2 %142 }
  0x74   :  { %735 = vperm.xlu1 %1244, %v1162_v22  }
  0x7b   :  { %v198_v7 = vpop.permute.xlu2 %197 }
  0x7c   :  { %720 = vperm.xlu1 %1244, %v1159_v23  }
  0x7e   :  { %v81_v24 = vpop.permute.xlu1 %80 }
  0x7f   :  { %v67_v25 = vpop.permute.xlu0 %66 }
  0x80   :  { %v74_v29 = vmul.f32 %v67_v25, %v60_v27 }
  0x82   :  { %v88_v34 = vadd.f32 %v81_v24, %v74_v29 }
  0x83   :  { %v257_v24 = vpop.permute.xlu2 %256 }
  0x84   :  { %754 = vperm.xlu1 %1244, %v1164_v26  }
  0x86   :  { %v86_v32 = vpop.permute.xlu1 %85 }
  0x87   :  { %v72_v30 = vpop.permute.xlu0 %71 }
  0x88   :  { %v75_v31 = vmul.f32 %v72_v30, %v61_v28 }
  0x8a   :  { %v89_v35 = vadd.f32 %v86_v32, %v75_v31  ;;  %v1221_v31 = vld [vmem:[%s1775_s3 + $0x8] sm:$0xff] }
  0x8b   :  { %v326_v39 = vpop.permute.xlu2 %325 }
  0x8c   :  { %v92_v36 = vpack.c.bf16 %v89_v35, %v88_v34  ;;  %826 = vperm.xlu1 %1244, %v1185_v33   ;;  %v1222_v35 = vld [vmem:[%s1776_s4 + $0x10] sm:$0xff] }
  0x8e   :  { %109 = vmatpush.bf16.msra.mxu0 %v92_v36  ;;  %v133_v56 = vpop.permute.xlu1 %132  ;;  %v1223_v36 = vld [vmem:[%s1776_s4 + $0x18] sm:$0xff] }
  0x8f   :  { %v128_v62 = vpop.permute.xlu0 %127 }
  0x91   :  { %1074 = vmatmul.msk.bf16.vlgmr.msra.gmra.mxu0 %vm98_vm0, %v1217_v37 }
  0x93   :  { %v321_v43 = vpop.permute.xlu2 %320 }
  0x94   :  { %902 = vperm.xlu1 %1244, %v1204_v38  }
  0x96   :  { %v252_v16 = vpop.permute.xlu1 %251 }
  0x97   :  { %v203_v17 = vpop.permute.xlu0 %202 }
  0x9e   :  { %v272_v26 = vpop.permute.xlu1 %271 }
  0x9f   :  { %v267_v27 = vpop.permute.xlu0 %266 }
  0xa7   :  { %v331_v41 = vpop.permute.xlu0 %330 }
 0x10e   :  { %v111_v45 = vpop.f32.mrf.mxu0 }
 0x10f   :  { %v120_v46 = vpack.c.bf16 %v111_v45, %v111_v45  ;;  %v259_v22 = vmul.f32 %v252_v16, %v111_v45 }
 0x111   :  { %v164_v47 = vsel %vm162_vm1, %v120_v46, 0  ;;  %v274_v28 = vadd.f32 %v267_v27, %v259_v22  ;;  %v558_v27 = vld [vmem:[%s1772_s12 + $0x18] sm:$0xff] }
 0x112   :  { %173 = vmatpush.bf16.msra.mxu1 %v164_v47  ;;  %1237 = vmatpush.bf16.msra.mxu3 %v164_v47  ;;  %v316_v47 = vpop.permute.xlu1 %315 }
 0x115   :  { %1083 = vmatmul.msk.bf16.vlgmr.msra.gmra.mxu1 %vm155_vm2, %v1218_v48  ;;  %1084 = vmatmul.msk.bf16.vlgmr.msra.gmra.mxu3 %vm155_vm2, %v1219_v49 }
 0x116   :  { %v113_v19 = vpop.f32.mrf.mxu0 }
 0x192   :  { %v175_v52 = vpop.f32.mrf.mxu1 }
 0x193   :  { %v176_v63 = vadd.f32 %v175_v52, %v128_v62 }
 0x195   :  { %v185_v4 = vmax.f32 %v176_v63, 0.0 }
 0x198   :  { %v180_v54 = vpop.f32.mrf.mxu3 }
 0x199   :  { %v181_v57 = vadd.f32 %v180_v54, %v138_v53 }
 0x19a   :  { %v177_v55 = vpop.f32.mrf.mxu1 }
 0x19b   :  { %v178_v60 = vadd.f32 %v177_v55, %v133_v56  ;;  %v187_v0 = vmax.f32 %v181_v57, 0.0  ;;  %v1224_v55 = vld [vmem:[%s1777_s6 + $0x8] sm:$0xff]  ;;  %v386_v57 = vpop.permute.xlu0 %385  ;;  %s1283_s6 = smov 32  }
 0x19d   :  { %v186_v2 = vmax.f32 %v178_v60, 0.0 }
 0x19f   :  { %v191_v5 = vpack.c.bf16 %v186_v2, %v185_v4 }
 0x1a0   :  { %v182_v59 = vpop.f32.mrf.mxu3 }
 0x1a1   :  { %v183_v61 = vadd.f32 %v182_v59, %v143_v58 }
 0x1a3   :  { %v188_v1 = vmax.f32 %v183_v61, 0.0 }
 0x1a5   :  { %v192_v3 = vpack.c.bf16 %v188_v1, %v187_v0 }
 0x1a7   :  { %220 = vmatpush.bf16.msra.mxu2 %v192_v3 }
 0x1ab   :  { %221 = vmatpush.bf16.msra.mxu2 %v191_v5  ;;  %v391_v5 = vpop.permute.xlu1 %390 }
 0x1ae   :  { %1089 = vmatmul.msk.bf16.vlgmr.msra.gmra.mxu2 %vm210_vm3, %v1220_v6 }
 0x231   :  { %v223_v8 = vpop.f32.mrf.mxu2 }
 0x232   :  { %v224_v9 = vadd.f32 %v223_v8, %v198_v7 }
 0x234   :  { %v228_v10 = vadd.f32 2.0, %v224_v9 }
 0x236   :  { %v229_v11 = vsub.f32 0.0, %v228_v10 }
 0x238   :  { %v230_v12 = vmul.f32 1.442695, %v229_v11 }
 0x239   :  { %v225_v15 = vpop.f32.mrf.mxu2 }
 0x23a   :  { %1246 = vpow2.f32 %v230_v12  ;;  %v226_v18 = vadd.f32 %v225_v15, %v203_v17 }
 0x23c   :  { %v237_v20 = vadd.f32 %v226_v18, %v113_v19 }
 0x240   :  { %v1247_v13 = vpop.eup %1246 }
 0x241   :  { %v232_v14 = vadd.f32 1.0, %v1247_v13 }
 0x243   :  { %1248 = vrcp.f32 %v232_v14 }
 0x244   :  { %1250 = vlog2.f32 %v232_v14 }
 0x249   :  { %v1249_v21 = vpop.eup %1248 }
 0x24a   :  { %v238_v23 = vmul.f32 %v1249_v21, %v237_v20  ;;  %v1251_v63 = vpop.eup %1250  ;;  %v481_v20 = vld [vmem:[%s1771_s9] sm:$0xff] }
 0x24b   :  { %v234_v0 = vmul.f32 0.6931472, %v1251_v63 }
 0x24c   :  { %v260_v25 = vmul.f32 %v257_v24, %v238_v23 }
 0x24d   :  { %v235_v2 = vsub.f32 0.0, %v234_v0 }
 0x24e   :  { %v275_v29 = vadd.f32 %v272_v26, %v260_v25  ;;  %v482_v26 = vld [vmem:[%s1771_s9 + $0x8] sm:$0xff] }
 0x24f   :  { %v239_v6 = vrot.slane %v235_v2, 4 }
 0x250   :  { %v279_v30 = vpack.c.bf16 %v275_v29, %v274_v28  ;;  %v555_v29 = vld [vmem:[%s1772_s12] sm:$0xff] }
 0x251   :  { %v240_v8 = vadd.f32 %v239_v6, %v235_v2 }
 0x252   :  { %295 = vmatpush.bf16.msrb.mxu3 %v279_v30  ;;  %v624_v30 = vld [vmem:[%s1773_s14] sm:$0xff] }
 0x253   :  { %v241_v14 = vrot.slane %v240_v8, 2 }
 0x255   :  { %1100 = vmatmul.msk.bf16.vlgmr.msrb.gmra.mxu3 %vm98_vm0, %v1221_v31  ;;  %v242_v18 = vadd.f32 %v241_v14, %v240_v8  ;;  %v625_v31 = vld [vmem:[%s1773_s14 + $0x8] sm:$0xff] }
 0x256   :  { %v1228_v14 = vld [vmem:[%s1780_s11 + $0x8] sm:$0xff] }
 0x257   :  { %v243_v21 = vrot.slane %v242_v18, 1 }
 0x259   :  { %v244_v24 = vadd.f32 %v243_v21, %v242_v18 }
 0x2d8   :  { %v297_v32 = vpop.f32.mrf.mxu3 }
 0x2d9   :  { %v307_v33 = vpack.c.bf16 %v297_v32, %v297_v32  ;;  %433 = vst [vmem:[%s1778_s17] sm:$0xff] %v297_v32  ;;  %v627_v32 = vld [vmem:[%s1773_s14 + $0x18] sm:$0xff] }
 0x2db   :  { %v350_v34 = vsel %vm162_vm1, %v307_v33, 0  ;;  %v1161_v33 = vld [vmem:[%s1770_s8 + $0x30] sm:$0xff] }
 0x2dc   :  { %359 = vmatpush.bf16.msrb.mxu0 %v350_v34  ;;  %v1165_v34 = vld [vmem:[%s1771_s9 + $0x30] sm:$0xff] }
 0x2df   :  { %1117 = vmatmul.msk.bf16.vlgmr.msrb.gmra.mxu0 %vm155_vm2, %v1222_v35  ;;  %v1166_v35 = vld [vmem:[%s1771_s9 + $0x38] sm:$0xff] }
 0x2e0   :  { %v299_v56 = vpop.f32.mrf.mxu3 }
 0x2ef   :  { %1118 = vmatmul.msk.bf16.gmra.mxu0 %vm155_vm2, %v1223_v36  ;;  %v1160_v36 = vld [vmem:[%s1770_s8 + $0x28] sm:$0xff] }
 0x35c   :  { %v361_v37 = vpop.f32.mrf.mxu0 }
 0x35d   :  { %v362_v48 = vadd.f32 %v361_v37, %v316_v47  ;;  %v1163_v37 = vld [vmem:[%s1771_s9 + $0x20] sm:$0xff] }
 0x35f   :  { %v371_v53 = vmax.f32 %v362_v48, 0.0  ;;  %v460_v48 = vpop.permute.xlu0 %459 }
 0x364   :  { %v363_v38 = vpop.f32.mrf.mxu0 }
 0x365   :  { %v364_v45 = vadd.f32 %v363_v38, %v321_v43  ;;  %v1187_v38 = vld [vmem:[%s1772_s12 + $0x30] sm:$0xff]  ;;  %v1206_v43 = vld [vmem:[%s1773_s14 + $0x38] sm:$0xff] }
 0x367   :  { %v372_v51 = vmax.f32 %v364_v45, 0.0  ;;  %v444_v45 = vlaneseq }
 0x369   :  { %v378_v54 = vpack.c.bf16 %v372_v51, %v371_v53  ;;  %v445_v47 = vand.u32 127, %v444_v45  ;;  %v1286_v51 = vmov 0.0  }
 0x36b   :  { %vm446_vm4 = vcmp.lt.s32.totalorder %v445_v47, 32 }
 0x36c   :  { %v366_v40 = vpop.f32.mrf.mxu0 }
 0x36d   :  { %v367_v42 = vadd.f32 %v366_v40, %v326_v39  ;;  %v1188_v39 = vld [vmem:[%s1772_s12 + $0x38] sm:$0xff]  ;;  %v1186_v40 = vld [vmem:[%s1772_s12 + $0x28] sm:$0xff] }
 0x36f   :  { %v373_v49 = vmax.f32 %v367_v42, 0.0  ;;  %v1205_v42 = vld [vmem:[%s1773_s14 + $0x30] sm:$0xff] }
 0x374   :  { %v368_v44 = vpop.f32.mrf.mxu0 }
 0x375   :  { %v369_v46 = vadd.f32 %v368_v44, %v331_v41  ;;  %v1203_v41 = vld [vmem:[%s1773_s14 + $0x20] sm:$0xff]  ;;  %v475_v44 = vpop.permute.xlu2 %474 }
 0x377   :  { %v374_v50 = vmax.f32 %v369_v46, 0.0 }
 0x379   :  { %v379_v52 = vpack.c.bf16 %v374_v50, %v373_v49  ;;  %v470_v49 = vpop.permute.xlu1 %469 }
 0x37b   :  { %407 = vmatpush.bf16.msra.mxu3 %v379_v52  ;;  %v1128_v52 = vsel %vm446_vm4, 1.0, %v1286_v51 }
 0x37d   :  { %v503_v46 = vpop.permute.xlu2 %502 }
 0x37f   :  { %408 = vmatpush.bf16.msra.mxu3 %v378_v54 }
 0x382   :  { %1127 = vmatmul.msk.bf16.vlgmr.msra.gmra.mxu3 %vm210_vm3, %v1224_v55 }
 0x405   :  { %v410_v58 = vpop.f32.mrf.mxu3 }
 0x406   :  { %v411_v59 = vadd.f32 %v410_v58, %v386_v57  ;;  %v498_v58 = vpop.permute.xlu1 %497 }
 0x408   :  { %v415_v60 = vadd.f32 2.0, %v411_v59 }
 0x40a   :  { %v416_v61 = vsub.f32 0.0, %v415_v60 }
 0x40c   :  { %v417_v62 = vmul.f32 1.442695, %v416_v61 }
 0x40d   :  { %v412_v4 = vpop.f32.mrf.mxu3 }
 0x40e   :  { %1252 = vpow2.f32 %v417_v62  ;;  %v413_v7 = vadd.f32 %v412_v4, %v391_v5 }
 0x410   :  { %v424_v10 = vadd.f32 %v413_v7, %v299_v56 }
 0x414   :  { %v1253_v1 = vpop.eup %1252 }
 0x415   :  { %v419_v3 = vadd.f32 1.0, %v1253_v1  ;;  %v465_v1 = vpop.permute.xlu1 %464 }
 0x417   :  { %1254 = vlog2.f32 %v419_v3 }
 0x418   :  { %1256 = vrcp.f32 %v419_v3 }
 0x41d   :  { %v1255_v9 = vpop.eup %1254  ;;  %v572_v18 = vpop.permute.xlu1 %571 }
 0x41e   :  { %v1257_v11 = vpop.eup %1256  ;;  %v421_v12 = vmul.f32 0.6931472, %v1255_v9  ;;  %v1225_v9 = vld [vmem:[%s1779_s10] sm:$0xff] }
 0x41f   :  { %v1532_v13 = vmul.f32 %v1257_v11, %v424_v10 }
 0x420   :  { %v422_v15 = vsub.f32 0.0, %v421_v12 }
 0x421   :  { %441 = vrot.lane.b32.xlu0 %v1532_v13, %s1283_s6  ;;  %438 = vrot.lane.b32.xlu2 %v1532_v13, %s1284_s26  ;;  %v449_v63 = vmul.f32 %v1128_v52, %v1532_v13 }
 0x422   :  { %v426_v16 = vrot.slane %v422_v15, 4 }
 0x423   :  { %v477_v3 = vmul.f32 %v460_v48, %v449_v63 }
 0x424   :  { %v427_v17 = vadd.f32 %v426_v16, %v422_v15  ;;  %v1226_v16 = vld [vmem:[%s1779_s10 + $0x8] sm:$0xff] }
 0x426   :  { %v428_v19 = vrot.slane %v427_v17, 2 }
 0x428   :  { %v429_v22 = vadd.f32 %v428_v19, %v427_v17 }
 0x429   :  { %435 = vrot.lane.b32.xlu0 %v1532_v13, %s1285_s29  ;;  %487 = vperm.xlu2 %1245, %v481_v20   ;;  %v1227_v13 = vld [vmem:[%s1780_s11] sm:$0xff]  ;;  %v567_v20 = vpop.permute.xlu1 %566 }
 0x42a   :  { %v430_v23 = vrot.slane %v429_v22, 1 }
 0x42c   :  { %v431_v25 = vadd.f32 %v430_v23, %v429_v22 }
 0x42e   :  { %v1546_v28 = vadd.f32 %v431_v25, %v244_v24 }
 0x431   :  { %492 = vperm.xlu0 %1243, %v482_v26   ;;  %576 = vperm.xlu2 %1245, %v558_v27   ;;  %v641_v45 = vpop.permute.xlu1 %640 }
 0x439   :  { %561 = vperm.xlu0 %1243, %v555_v29   ;;  %630 = vperm.xlu2 %1245, %v624_v30  }
 0x441   :  { %635 = vperm.xlu0 %1243, %v625_v31   ;;  %645 = vperm.xlu2 %1245, %v627_v32  }
 0x449   :  { %730 = vperm.xlu0 %1243, %v1161_v33   ;;  %759 = vperm.xlu2 %1245, %v1165_v34  }
 0x451   :  { %764 = vperm.xlu0 %1243, %v1166_v35   ;;  %725 = vperm.xlu2 %1245, %v1160_v36   ;;  %v1229_v35 = vld [vmem:[%s1781_s13] sm:$0xff]  ;;  %v1230_v36 = vld [vmem:[%s1781_s13 + $0x8] sm:$0xff] }
 0x459   :  { %749 = vperm.xlu0 %1243, %v1163_v37   ;;  %836 = vperm.xlu2 %1245, %v1187_v38  }
 0x461   :  { %841 = vperm.xlu0 %1243, %v1188_v39   ;;  %831 = vperm.xlu2 %1245, %v1186_v40  }
 0x469   :  { %897 = vperm.xlu0 %1243, %v1203_v41   ;;  %907 = vperm.xlu2 %1245, %v1205_v42  }
 0x471   :  { %912 = vperm.xlu0 %1243, %v1206_v43  }
 0x47b   :  { %v439_v50 = vpop.permute.xlu2 %438 }
 0x47c   :  { %v451_v53 = vmul.f32 %v1128_v52, %v439_v50 }
 0x47e   :  { %v479_v55 = vmul.f32 %v470_v49, %v451_v53 }
 0x480   :  { %v507_v59 = vadd.f32 %v498_v58, %v479_v55 }
 0x483   :  { %v488_v2 = vpop.permute.xlu2 %487 }
 0x484   :  { %v505_v6 = vadd.f32 %v488_v2, %v477_v3 }
 0x48b   :  { %v577_v22 = vpop.permute.xlu2 %576 }
 0x493   :  { %v442_v54 = vpop.permute.xlu0 %441  ;;  %v631_v37 = vpop.permute.xlu2 %630 }
 0x494   :  { %v452_v56 = vmul.f32 %v1128_v52, %v442_v54  ;;  %v736_v54 = vpop.permute.xlu1 %735 }
 0x496   :  { %v480_v57 = vmul.f32 %v475_v44, %v452_v56 }
 0x498   :  { %v508_v60 = vadd.f32 %v503_v46, %v480_v57 }
 0x49a   :  { %v514_v61 = vpack.c.bf16 %v508_v60, %v507_v59 }
 0x49b   :  { %v436_v62 = vpop.permute.xlu0 %435  ;;  %v646_v50 = vpop.permute.xlu2 %645 }
 0x49c   :  { %537 = vmatpush.bf16.msrb.mxu2 %v514_v61  ;;  %v450_v0 = vmul.f32 %v1128_v52, %v436_v62  ;;  %v721_v2 = vpop.permute.xlu1 %720 }
 0x49e   :  { %v478_v4 = vmul.f32 %v465_v1, %v450_v0 }
 0x4a3   :  { %v493_v5 = vpop.permute.xlu0 %492  ;;  %v760_v60 = vpop.permute.xlu2 %759 }
 0x4a4   :  { %v506_v7 = vadd.f32 %v493_v5, %v478_v4 }
 0x4a6   :  { %v513_v8 = vpack.c.bf16 %v506_v7, %v505_v6 }
 0x4a8   :  { %538 = vmatpush.bf16.msrb.mxu2 %v513_v8 }
 0x4ab   :  { %1137 = vmatmul.msk.bf16.vlgmr.msrb.gmra.mxu2 %vm210_vm3, %v1225_v9  ;;  %v562_v26 = vpop.permute.xlu0 %561 }
 0x4b3   :  { %v636_v43 = vpop.permute.xlu0 %635 }
 0x4bb   :  { %1138 = vmatmul.msk.bf16.gmra.mxu2 %vm210_vm3, %v1226_v16  ;;  %v731_v55 = vpop.permute.xlu0 %730 }
 0x4c3   :  { %v765_v4 = vpop.permute.xlu0 %764 }
 0x52e   :  { %v1598_v10 = vpop.f32.mrf.mxu2 }
 0x536   :  { %v1600_v11 = vpop.f32.mrf.mxu2 }
 0x537   :  { %v554_v12 = vpack.c.bf16 %v1600_v11, %v1598_v10 }
 0x539   :  { %602 = vmatpush.bf16.msrb.mxu1 %v554_v12 }
 0x53c   :  { %1147 = vmatmul.msk.bf16.vlgmr.msrb.gmra.mxu1 %vm98_vm0, %v1227_v13 }
 0x53e   :  { %v545_v56 = vpop.f32.mrf.mxu2 }
 0x546   :  { %v547_v6 = vpop.f32.mrf.mxu2 }
 0x54c   :  { %1148 = vmatmul.msk.bf16.gmra.mxu1 %vm98_vm0, %v1228_v14 }
 0x5b9   :  { %v604_v15 = vpop.f32.mrf.mxu1 }
 0x5ba   :  { %v605_v27 = vadd.f32 %v604_v15, %v562_v26  ;;  %v726_v15 = vpop.permute.xlu2 %725 }
 0x5bc   :  { %v614_v33 = vmax.f32 %v605_v27, 0.0  ;;  %v750_v27 = vpop.permute.xlu0 %749 }
 0x5c1   :  { %v606_v17 = vpop.f32.mrf.mxu1 }
 0x5c2   :  { %v607_v24 = vadd.f32 %v606_v17, %v567_v20 }
 0x5c4   :  { %v615_v31 = vmax.f32 %v607_v24, 0.0  ;;  %v755_v24 = vpop.permute.xlu1 %754 }
 0x5c6   :  { %v622_v34 = vpack.c.bf16 %v615_v31, %v614_v33  ;;  %v999_v31 = vld [vmem:[%s1782_s15 + $0x78] sm:$0xff]  ;;  %v996_v33 = vld [vmem:[%s1782_s15 + $0x60] sm:$0xff] }
 0x5c9   :  { %v609_v19 = vpop.f32.mrf.mxu1 }
 0x5ca   :  { %v610_v21 = vadd.f32 %v609_v19, %v572_v18  ;;  %v739_v18 = vmul.f32 %v726_v15, %v1600_v11  ;;  %v1231_v11 = vld [vmem:[%s1779_s10 + $0x10] sm:$0xff] }
 0x5cc   :  { %v616_v29 = vmax.f32 %v610_v21, 0.0  ;;  %v738_v21 = vmul.f32 %v721_v2, %v1598_v10  ;;  %v998_v10 = vld [vmem:[%s1782_s15 + $0x70] sm:$0xff] }
 0x5d1   :  { %v611_v23 = vpop.f32.mrf.mxu1 }
 0x5d2   :  { %v612_v25 = vadd.f32 %v611_v23, %v577_v22 }
 0x5d4   :  { %v617_v30 = vmax.f32 %v612_v25, 0.0  ;;  %v768_v25 = vadd.f32 %v755_v24, %v739_v18  ;;  %v1009_v18 = vld [vmem:[%s1784_s16 + $0x48] sm:$0xff] }
 0x5d6   :  { %v623_v32 = vpack.c.bf16 %v617_v30, %v616_v29  ;;  %v767_v29 = vadd.f32 %v750_v27, %v738_v21  ;;  %v1008_v21 = vld [vmem:[%s1784_s16 + $0x40] sm:$0xff]  ;;  %v1006_v27 = vld [vmem:[%s1784_s16 + $0x30] sm:$0xff] }
 0x5d8   :  { %670 = vmatpush.bf16.msrb.mxu3 %v623_v32  ;;  %v776_v30 = vpack.c.bf16 %v768_v25, %v767_v29  ;;  %v997_v32 = vld [vmem:[%s1782_s15 + $0x68] sm:$0xff] }
 0x5dc   :  { %671 = vmatpush.bf16.msrb.mxu3 %v622_v34  ;;  %v995_v34 = vld [vmem:[%s1782_s15 + $0x58] sm:$0xff] }
 0x5df   :  { %1157 = vmatmul.msk.bf16.vlgmr.msrb.gmra.mxu3 %vm210_vm3, %v1229_v35  ;;  %v994_v35 = vld [vmem:[%s1782_s15 + $0x50] sm:$0xff] }
 0x5ef   :  { %1158 = vmatmul.msk.bf16.gmra.mxu3 %vm210_vm3, %v1230_v36  ;;  %v993_v36 = vld [vmem:[%s1782_s15 + $0x48] sm:$0xff] }
 0x662   :  { %v673_v38 = vpop.f32.mrf.mxu3 }
 0x663   :  { %v674_v39 = vadd.f32 %v673_v38, %v631_v37  ;;  %v992_v37 = vld [vmem:[%s1782_s15 + $0x40] sm:$0xff]  ;;  %v1232_v38 = vld [vmem:[%s1779_s10 + $0x18] sm:$0xff] }
 0x665   :  { %v683_v40 = vadd.f32 2.0, %v674_v39  ;;  %v991_v39 = vld [vmem:[%s1782_s15 + $0x38] sm:$0xff] }
 0x667   :  { %v685_v41 = vsub.f32 0.0, %v683_v40  ;;  %v990_v40 = vld [vmem:[%s1782_s15 + $0x30] sm:$0xff] }
 0x669   :  { %v687_v42 = vmul.f32 1.442695, %v685_v41  ;;  %v989_v41 = vld [vmem:[%s1782_s15 + $0x28] sm:$0xff] }
 0x66a   :  { %v675_v44 = vpop.f32.mrf.mxu3 }
 0x66b   :  { %1258 = vpow2.f32 %v687_v42  ;;  %v676_v46 = vadd.f32 %v675_v44, %v636_v43  ;;  %v988_v42 = vld [vmem:[%s1782_s15 + $0x20] sm:$0xff]  ;;  %v987_v43 = vld [vmem:[%s1782_s15 + $0x18] sm:$0xff]  ;;  %v986_v44 = vld [vmem:[%s1782_s15 + $0x10] sm:$0xff] }
 0x66d   :  { %v684_v47 = vadd.f32 2.0, %v676_v46  ;;  %v984_v46 = vld [vmem:[%s1782_s15] sm:$0xff] }
 0x66f   :  { %v686_v48 = vsub.f32 0.0, %v684_v47 }
 0x671   :  { %v1259_v49 = vpop.eup %1258  ;;  %v689_v51 = vmul.f32 1.442695, %v686_v48 }
 0x672   :  { %v678_v52 = vpop.f32.mrf.mxu3  ;;  %v691_v53 = vadd.f32 1.0, %v1259_v49 }
 0x673   :  { %1260 = vpow2.f32 %v689_v51  ;;  %v679_v59 = vadd.f32 %v678_v52, %v641_v45  ;;  %v985_v45 = vld [vmem:[%s1782_s15 + $0x8] sm:$0xff] }
 0x674   :  { %1262 = vrcp.f32 %v691_v53 }
 0x675   :  { %1264 = vlog2.f32 %v691_v53  ;;  %v701_v0 = vadd.f32 %v679_v59, %v545_v56  ;;  %v837_v53 = vpop.permute.xlu2 %836 }
 0x679   :  { %v1261_v57 = vpop.eup %1260 }
 0x67a   :  { %v692_v58 = vadd.f32 1.0, %v1261_v57  ;;  %v680_v61 = vpop.f32.mrf.mxu3  ;;  %v1263_v62 = vpop.eup %1262 }
 0x67b   :  { %v1265_v63 = vpop.eup %1264  ;;  %v681_v1 = vadd.f32 %v680_v61, %v646_v50  ;;  %v703_v3 = vmul.f32 %v1263_v62, %v701_v0  ;;  %v1233_v50 = vld [vmem:[%s1780_s11 + $0x10] sm:$0xff]  ;;  %v842_v57 = vpop.permute.xlu0 %841 }
 0x67c   :  { %1266 = vlog2.f32 %v692_v58  ;;  %v694_v5 = vmul.f32 0.6931472, %v1265_v63  ;;  %v827_v61 = vpop.permute.xlu1 %826 }
 0x67d   :  { %1268 = vrcp.f32 %v692_v58  ;;  %v702_v8 = vadd.f32 %v681_v1, %v547_v6  ;;  %v740_v13 = vmul.f32 %v731_v55, %v703_v3  ;;  %v832_v55 = vpop.permute.xlu2 %831  ;;  %v1236_v6 = vld [vmem:[%s1781_s13 + $0x18] sm:$0xff] }
 0x67e   :  { %v697_v16 = vsub.f32 0.0, %v694_v5  ;;  %v1235_v5 = vld [vmem:[%s1781_s13 + $0x10] sm:$0xff] }
 0x67f   :  { %v769_v22 = vadd.f32 %v760_v60, %v740_v13  ;;  %v1011_v13 = vld [vmem:[%s1784_s16 + $0x58] sm:$0xff] }
 0x682   :  { %v1267_v7 = vpop.eup %1266 }
 0x683   :  { %v1269_v9 = vpop.eup %1268  ;;  %v696_v12 = vmul.f32 0.6931472, %v1267_v7  ;;  %v1015_v7 = vld [vmem:[%s1784_s16 + $0x78] sm:$0xff] }
 0x684   :  { %v704_v14 = vmul.f32 %v1269_v9, %v702_v8  ;;  %1016 = vmatpush.msra.mxu3 %v1015_v7  ;;  %v1014_v8 = vld [vmem:[%s1784_s16 + $0x70] sm:$0xff]  ;;  %v1013_v9 = vld [vmem:[%s1784_s16 + $0x68] sm:$0xff]  ;;  %v903_v25 = vpop.permute.xlu1 %902 }
 0x685   :  { %v698_v17 = vsub.f32 0.0, %v696_v12  ;;  %v1012_v12 = vld [vmem:[%s1784_s16 + $0x60] sm:$0xff] }
 0x686   :  { %v741_v19 = vmul.f32 %v736_v54, %v704_v14  ;;  %1017 = vmatpush.msra.mxu3 %v1014_v8  ;;  %v898_v14 = vpop.permute.xlu0 %897 }
 0x687   :  { %v1625_v20 = vadd.f32 %v698_v17, %v697_v16  ;;  %v1010_v16 = vld [vmem:[%s1784_s16 + $0x50] sm:$0xff] }
 0x688   :  { %v770_v23 = vadd.f32 %v765_v4, %v741_v19  ;;  %1018 = vmatpush.msra.mxu3 %v1013_v9 }
 0x68a   :  { %v777_v26 = vpack.c.bf16 %v770_v23, %v769_v22  ;;  %1019 = vmatpush.msra.mxu3 %v1012_v12  ;;  %v1007_v23 = vld [vmem:[%s1784_s16 + $0x38] sm:$0xff] }
 0x68c   :  { %800 = vmatpush.bf16.msra.mxu0 %v777_v26  ;;  %1020 = vmatpush.msra.mxu3 %v1011_v13 }
 0x68e   :  { %1021 = vmatpush.msra.mxu3 %v1010_v16 }
 0x690   :  { %801 = vmatpush.bf16.msra.mxu0 %v776_v30  ;;  %1022 = vmatpush.msra.mxu3 %v1009_v18  ;;  %v1005_v30 = vld [vmem:[%s1784_s16 + $0x28] sm:$0xff] }
 0x692   :  { %1023 = vmatpush.msra.mxu3 %v1008_v21 }
 0x693   :  { %1179 = vmatmul.msk.bf16.vlgmr.msra.gmra.mxu0 %vm210_vm3, %v1231_v11 }
 0x694   :  { %1036 = vmatpush.msrb.mxu0 %v999_v31  ;;  %1024 = vmatpush.msra.mxu3 %v1007_v23  ;;  %v1004_v31 = vld [vmem:[%s1784_s16 + $0x20] sm:$0xff] }
 0x696   :  { %1037 = vmatpush.msrb.mxu0 %v998_v10  ;;  %1025 = vmatpush.msra.mxu3 %v1006_v27  ;;  %v1003_v10 = vld [vmem:[%s1784_s16 + $0x18] sm:$0xff] }
 0x698   :  { %1038 = vmatpush.msrb.mxu0 %v997_v32  ;;  %1026 = vmatpush.msra.mxu3 %v1005_v30 }
 0x69a   :  { %1039 = vmatpush.msrb.mxu0 %v996_v33  ;;  %1027 = vmatpush.msra.mxu3 %v1004_v31  ;;  %v1002_v33 = vld [vmem:[%s1784_s16 + $0x10] sm:$0xff] }
 0x69c   :  { %1040 = vmatpush.msrb.mxu0 %v995_v34  ;;  %1028 = vmatpush.msra.mxu3 %v1003_v10 }
 0x69e   :  { %1041 = vmatpush.msrb.mxu0 %v994_v35  ;;  %1029 = vmatpush.msra.mxu3 %v1002_v33 }
 0x6a0   :  { %1042 = vmatpush.msrb.mxu0 %v993_v36 }
 0x6a2   :  { %1043 = vmatpush.msrb.mxu0 %v992_v37 }
 0x6a3   :  { %1180 = vmatmul.msk.bf16.gmra.mxu0 %vm210_vm3, %v1232_v38  ;;  %v1001_v38 = vld [vmem:[%s1784_s16 + $0x8] sm:$0xff] }
 0x6a4   :  { %1044 = vmatpush.msrb.mxu0 %v991_v39  ;;  %v1000_v39 = vld [vmem:[%s1784_s16] sm:$0xff]  ;;  %1030 = vmatpush.msra.mxu3 %v1001_v38 }
 0x6a6   :  { %1045 = vmatpush.msrb.mxu0 %v990_v40  ;;  %v908_v40 = vpop.permute.xlu2 %907  ;;  %1031 = vmatpush.msra.mxu3 %v1000_v39 }
 0x6a8   :  { %1046 = vmatpush.msrb.mxu0 %v989_v41 }
 0x6aa   :  { %1047 = vmatpush.msrb.mxu0 %v988_v42 }
 0x6ac   :  { %1048 = vmatpush.msrb.mxu0 %v987_v43 }
 0x6ae   :  { %1049 = vmatpush.msrb.mxu0 %v986_v44 }
 0x6b0   :  { %1050 = vmatpush.msrb.mxu0 %v985_v45 }
 0x6b2   :  { %1051 = vmatpush.msrb.mxu0 %v984_v46 }
 0x6b3   :  { %1052 = vmatmul.f32.vlgmr.msrb.gmra.mxu0 %v1546_v28  ;;  %v1234_v28 = vld [vmem:[%s1780_s11 + $0x18] sm:$0xff] }
 0x710   :  { %v803_v47 = vpop.f32.mrf.mxu0 }
 0x711   :  { %980 = vst [vmem:[%s1783_s18] sm:$0xff] %v803_v47 }
 0x718   :  { %v805_v48 = vpop.f32.mrf.mxu0 }
 0x719   :  { %v818_v49 = vpack.c.bf16 %v805_v48, %v803_v47  ;;  %981 = vst [vmem:[%s1783_s18 + $0x8] sm:$0xff] %v805_v48 }
 0x71b   :  { %867 = vmatpush.bf16.msra.mxu2 %v818_v49  ;;  %v913_v49 = vpop.permute.xlu0 %912 }
 0x71e   :  { %1197 = vmatmul.msk.bf16.vlgmr.msra.gmra.mxu2 %vm98_vm0, %v1233_v50 }
 0x720   :  { %v808_v42 = vpop.f32.mrf.mxu0 }
 0x72e   :  { %1198 = vmatmul.msk.bf16.gmra.mxu2 %vm98_vm0, %v1234_v28 }
 0x7a1   :  { %v869_v51 = vpop.f32.mrf.mxu2 }
 0x7a2   :  { %v870_v62 = vadd.f32 %v869_v51, %v827_v61  ;;  %v706_v51 = vrot.slane %v1625_v20, 4 }
 0x7a4   :  { %v879_v3 = vmax.f32 %v870_v62, 0.0 }
 0x7a9   :  { %v871_v52 = vpop.f32.mrf.mxu2 }
 0x7aa   :  { %v872_v59 = vadd.f32 %v871_v52, %v832_v55  ;;  %v810_v52 = vpop.f32.mrf.mxu0 }
 0x7ac   :  { %v880_v1 = vmax.f32 %v872_v59, 0.0 }
 0x7ae   :  { %v888_v4 = vpack.c.bf16 %v880_v1, %v879_v3 }
 0x7b1   :  { %v874_v54 = vpop.f32.mrf.mxu2 }
 0x7b2   :  { %v875_v56 = vadd.f32 %v874_v54, %v837_v53  ;;  %v1053_v9 = vpop.f32.mrf.mxu0 }
 0x7b4   :  { %v881_v63 = vmax.f32 %v875_v56, 0.0 }
 0x7b9   :  { %v876_v58 = vpop.f32.mrf.mxu2 }
 0x7ba   :  { %v877_v60 = vadd.f32 %v876_v58, %v842_v57  ;;  %v707_v57 = vadd.f32 %v706_v51, %v1625_v20 }
 0x7bc   :  { %v882_v0 = vmax.f32 %v877_v60, 0.0 }
 0x7be   :  { %v889_v2 = vpack.c.bf16 %v882_v0, %v881_v63  ;;  %v708_v63 = vrot.slane %v707_v57, 2 }
 0x7c0   :  { %937 = vmatpush.bf16.msra.mxu1 %v889_v2  ;;  %v709_v2 = vadd.f32 %v708_v63, %v707_v57 }
 0x7c4   :  { %938 = vmatpush.bf16.msra.mxu1 %v888_v4  ;;  %v710_v4 = vrot.slane %v709_v2, 1 }
 0x7c6   :  { %v711_v7 = vadd.f32 %v710_v4, %v709_v2 }
 0x7c7   :  { %1215 = vmatmul.msk.bf16.vlgmr.msra.gmra.mxu1 %vm210_vm3, %v1235_v5 }
 0x7d7   :  { %1216 = vmatmul.msk.bf16.gmra.mxu1 %vm210_vm3, %v1236_v6 }
 0x844   :  { %v940_v15 = vpop.f32.mrf.mxu1 }
 0x845   :  { %v941_v17 = vadd.f32 %v940_v15, %v898_v14 }
 0x847   :  { %v950_v19 = vadd.f32 2.0, %v941_v17 }
 0x849   :  { %v952_v22 = vsub.f32 0.0, %v950_v19 }
 0x84b   :  { %v954_v24 = vmul.f32 1.442695, %v952_v22 }
 0x84c   :  { %v942_v26 = vpop.f32.mrf.mxu1 }
 0x84d   :  { %1270 = vpow2.f32 %v954_v24  ;;  %v943_v29 = vadd.f32 %v942_v26, %v903_v25 }
 0x84f   :  { %v951_v11 = vadd.f32 2.0, %v943_v29 }
 0x851   :  { %v953_v32 = vsub.f32 0.0, %v951_v11 }
 0x853   :  { %v1271_v34 = vpop.eup %1270  ;;  %v956_v35 = vmul.f32 1.442695, %v953_v32 }
 0x854   :  { %v958_v36 = vadd.f32 1.0, %v1271_v34  ;;  %v945_v37 = vpop.f32.mrf.mxu1 }
 0x855   :  { %1272 = vpow2.f32 %v956_v35  ;;  %v946_v41 = vadd.f32 %v945_v37, %v908_v40 }
 0x856   :  { %1274 = vrcp.f32 %v958_v36 }
 0x857   :  { %1276 = vlog2.f32 %v958_v36  ;;  %v968_v45 = vadd.f32 %v946_v41, %v808_v42 }
 0x85b   :  { %v1273_v43 = vpop.eup %1272 }
 0x85c   :  { %v959_v44 = vadd.f32 1.0, %v1273_v43  ;;  %v1275_v46 = vpop.eup %1274  ;;  %v947_v47 = vpop.f32.mrf.mxu1 }
 0x85d   :  { %v970_v48 = vmul.f32 %v1275_v46, %v968_v45  ;;  %v1277_v50 = vpop.eup %1276  ;;  %v948_v28 = vadd.f32 %v947_v47, %v913_v49 }
 0x85e   :  { %1278 = vlog2.f32 %v959_v44  ;;  %v961_v53 = vmul.f32 0.6931472, %v1277_v50 }
 0x85f   :  { %1280 = vrcp.f32 %v959_v44  ;;  %982 = vst [vmem:[%s1783_s18 + $0x10] sm:$0xff] %v970_v48  ;;  %v969_v55 = vadd.f32 %v948_v28, %v810_v52 }
 0x860   :  { %v964_v60 = vsub.f32 0.0, %v961_v53 }
 0x864   :  { %v1279_v54 = vpop.eup %1278 }
 0x865   :  { %v1281_v56 = vpop.eup %1280  ;;  %v963_v58 = vmul.f32 0.6931472, %v1279_v54 }
 0x866   :  { %v971_v59 = vmul.f32 %v1281_v56, %v969_v55 }
 0x867   :  { %v965_v61 = vsub.f32 0.0, %v963_v58 }
 0x868   :  { %983 = vst [vmem:[%s1783_s18 + $0x18] sm:$0xff] %v971_v59 }
 0x869   :  { %v972_v62 = vadd.f32 %v965_v61, %v964_v60 }
 0x86b   :  { %v973_v0 = vrot.slane %v972_v62, 4 }
 0x86d   :  { %v974_v1 = vadd.f32 %v973_v0, %v972_v62 }
 0x86f   :  { %v975_v3 = vrot.slane %v974_v1, 2 }
 0x871   :  { %v976_v5 = vadd.f32 %v975_v3, %v974_v1 }
 0x873   :  { %v977_v6 = vrot.slane %v976_v5, 1 }
 0x875   :  { %v978_v8 = vadd.f32 %v977_v6, %v976_v5 }
 0x877   :  { %v979_v20 = vadd.f32 %v978_v8, %v711_v7 }
 0x879   :  { %1032 = vmatmul.f32.vlgmr.msra.gmra.mxu3 %v979_v20 }
 0x8fc   :  { %v1033_v12 = vpop.f32.mrf.mxu3 }
 0x8fd   :  { %v1054_v13 = vadd.f32 %v1053_v9, %v1033_v12 }
 0x8ff   :  { %1057 = vst.msk [vmem:[%s1785_s19] sm:$0x1] %vm1056_vm5, %v1054_v13 }

// kernel: molhf_forward.4
= control target key start
LH: loop header
LB: loop body
LE: loop exit
PB: predicated region body
PF: predicated region fallthrough
CT: control target
= control target key end

     0   :  { %vm68_vm0 = vcmask 130048   ;;  %s4689_s0 = inlined_call_operand.vmem [shape: f32[32,16], index: 0, kind: input, shape index: {}]   ;;  %s4690_s1 = inlined_call_operand.vmem [shape: f32[4,2,8,8], index: 1, kind: input, shape index: {}]   ;;  %s4691_s2 = inlined_call_operand.vmem [shape: f32[4,2,4,4], index: 2, kind: input, shape index: {}]   ;;  %s4692_s3 = inlined_call_operand.vmem [shape: bf16[2,2,32,16], index: 3, kind: input, shape index: {}]   ;;  %s4693_s4 = inlined_call_operand.vmem [shape: bf16[2,2,4,32,16], index: 4, kind: input, shape index: {}]   ;;  %s4694_s5 = inlined_call_operand.vmem [shape: f32[2,2,32,1], index: 5, kind: input, shape index: {}]   ;;  %s4695_s6 = inlined_call_operand.vmem [shape: bf16[2,2,32,32], index: 6, kind: input, shape index: {}]   ;;  %s4696_s7 = inlined_call_operand.vmem [shape: f32[2,2,32,1], index: 7, kind: input, shape index: {}]   ;;  %s4697_s8 = inlined_call_operand.vmem [shape: f32[16,1], index: 8, kind: input, shape index: {}]   ;;  %s4698_s9 = inlined_call_operand.vmem [shape: f32[16,2], index: 9, kind: input, shape index: {}]   ;;  %s4699_s10 = inlined_call_operand.vmem [shape: f32[8,2], index: 10, kind: input, shape index: {}]   ;;  %s4700_s11 = inlined_call_operand.vmem [shape: f32[16,16], index: 11, kind: output, shape index: {0}]   ;;  %s4701_s12 = inlined_call_operand.vmem [shape: f32[32,8], index: 12, kind: output, shape index: {1}]   ;;  %s4702_s13 = inlined_call_operand.hbm [shape: f32[1,2], index: 13, kind: output, shape index: {2}]  }
   0x1   :  { %v45_v0 = vld [vmem:[%s4689_s0] sm:$0xff]  ;;  %v46_v1 = vld [vmem:[%s4689_s0 + $0x8] sm:$0xff]  ;;  %v3592_v4 = vld [vmem:[%s4693_s4 + $0x10] sm:$0xff] }
   0x2   :  { %v3835_v2 = vpack.c.bf16 %v46_v1, %v45_v0  ;;  %v3590_v3 = vld [vmem:[%s4693_s4] sm:$0xff]  ;;  %v3596_v6 = vld [vmem:[%s4693_s4 + $0x30] sm:$0xff] }
   0x3   :  { %v3594_v5 = vld [vmem:[%s4693_s4 + $0x20] sm:$0xff] }
   0x4   :  { %82 = vmatpush.bf16.msra.mxu0 %v3835_v2  ;;  %122 = vmatpush.bf16.msra.mxu1 %v3835_v2 }
   0x5   :  { %19 = vsyncpa [#allocation3], 0  ;;  %162 = vmatpush.bf16.msra.mxu2 %v3835_v2  ;;  %202 = vmatpush.bf16.msra.mxu3 %v3835_v2  ;;  %v3591_v7 = vld [vmem:[%s4693_s4 + $0x8] sm:$0xff]  ;;  %v3593_v8 = vld [vmem:[%s4693_s4 + $0x18] sm:$0xff]  ;;  %vm217_vm1 = vcmask 64512   ;;  %s3753_s19 = smov 120  }
   0x6   :  { %v3595_v9 = vld [vmem:[%s4693_s4 + $0x28] sm:$0xff]  ;;  %v3597_v10 = vld [vmem:[%s4693_s4 + $0x38] sm:$0xff]  ;;  %v3876_v11 = vld [vmem:[%s4690_s1 + $0x10] sm:$0xff]  ;;  %s3755_s25 = smov 8   ;;  %vm717_vm2 = vcmask 261120   ;;  %s3756_s16 = smov 124  }
   0x7   :  { %3088 = vmatmul.msk.bf16.vlgmr.msra.gmra.mxu0 %vm68_vm0, %v3590_v3  ;;  %3102 = vmatmul.msk.bf16.vlgmr.msra.gmra.mxu1 %vm68_vm0, %v3592_v4  ;;  %v3881_v12 = vld [vmem:[%s4690_s1] sm:$0xff]  ;;  %v3893_v14 = vld [vmem:[%s4690_s1 + $0x30] sm:$0xff]  ;;  %v3932_v31 = vld [vmem:[%s4690_s1 + $0x28] sm:$0xff]  ;;  %vm1516_vm3 = vcmask 31744   ;;  %vm1708_vm4 = vcmask 1043456   ;;  %s3757_s29 = smov 4  }
   0x8   :  { %3116 = vmatmul.msk.bf16.vlgmr.msra.gmra.mxu2 %vm68_vm0, %v3594_v5  ;;  %3130 = vmatmul.msk.bf16.vlgmr.msra.gmra.mxu3 %vm68_vm0, %v3596_v6  ;;  %v3888_v13 = vld [vmem:[%s4690_s1 + $0x20] sm:$0xff]  ;;  %v3938_v32 = vld [vmem:[%s4690_s1 + $0x18] sm:$0xff]  ;;  %v3943_v33 = vld [vmem:[%s4690_s1 + $0x8] sm:$0xff]  ;;  %s3067_s14 = sshll.u32 %s4702_s13, 4  ;;  %vm3054_vm5 = vcmask 8192   ;;  %s3068_s14 = int_to_ptr.hbm [resolvable:$true] %s3067_s14 }
   0x9   :  { %245 = vmatpush.msrb.mxu0 %v3876_v11  ;;  %286 = vmatpush.msrb.mxu1 %v3881_v12  ;;  %v3951_v34 = vld [vmem:[%s4690_s1 + $0x38] sm:$0xff]  ;;  %v3588_v4 = vld [vmem:[%s4692_s3] sm:$0xff]  ;;  %v3589_v6 = vld [vmem:[%s4692_s3 + $0x8] sm:$0xff] }
   0xa   :  { %329 = vmatpush.msrb.mxu2 %v3888_v13  ;;  %376 = vmatpush.msrb.mxu3 %v3893_v14 }
   0xb   :  { %429 = vmatpush.msra.mxu0 %v3938_v32  ;;  %474 = vmatpush.msra.mxu1 %v3943_v33 }
   0xc   :  { %521 = vmatpush.msra.mxu2 %v3932_v31  ;;  %572 = vmatpush.msra.mxu3 %v3951_v34 }
  0x17   :  { %3089 = vmatmul.msk.bf16.gmra.mxu0 %vm68_vm0, %v3591_v7  ;;  %3103 = vmatmul.msk.bf16.gmra.mxu1 %vm68_vm0, %v3593_v8  ;;  %v647_v7 = vld [vmem:[%s4694_s5 + $0x10] sm:$0xff]  ;;  %v3754_v8 = vmov 0  }
  0x18   :  { %3117 = vmatmul.msk.bf16.gmra.mxu2 %vm68_vm0, %v3595_v9  ;;  %3131 = vmatmul.msk.bf16.gmra.mxu3 %vm68_vm0, %v3597_v10  ;;  %v646_v9 = vld [vmem:[%s4694_s5 + $0x8] sm:$0xff]  ;;  %v648_v10 = vld [vmem:[%s4694_s5 + $0x18] sm:$0xff] }
  0x19   :  { %3642 = vset.pattern.permute.xlu0 %v3754_v8  ;;  %3643 = vset.pattern.permute.xlu1 %v3754_v8 }
  0x1a   :  { %3644 = vset.pattern.permute.xlu2 %v3754_v8 }
  0x84   :  { %v84_v15 = vpop.f32.mrf.mxu0  ;;  %v124_v16 = vpop.f32.mrf.mxu1 }
  0x85   :  { %398 = vrot.lane.b32.xlu1 %v124_v16, %s3753_s19  ;;  %3133 = vmatmul.msk.f32.vlgmr.msrb.gmra.mxu0 %vm217_vm1, %v124_v16 }
  0x86   :  { %3137 = vmatmul.msk.f32.vlgmr.msrb.gmra.mxu1 %vm217_vm1, %v84_v15  ;;  %633 = vmatpush.bf16.msrb.mxu0 %v3835_v2 }
  0x8b   :  { %v164_v17 = vpop.f32.mrf.mxu2  ;;  %v204_v18 = vpop.f32.mrf.mxu3 }
  0x8c   :  { %3147 = vmatmul.msk.f32.vlgmr.msrb.gmra.mxu3 %vm217_vm1, %v204_v18  ;;  %490 = vrot.lane.b32.xlu0 %v164_v17, %s3753_s19  ;;  %v86_v19 = vpop.f32.mrf.mxu0  ;;  %v126_v20 = vpop.f32.mrf.mxu1 }
  0x8d   :  { %3142 = vmatmul.msk.f32.vlgmr.msrb.gmra.mxu2 %vm217_vm1, %v164_v17  ;;  %3134 = vmatmul.msk.f32.gmra.mxu0 %vm217_vm1, %v126_v20 }
  0x8e   :  { %443 = vrot.lane.b32.xlu1 %v84_v15, %s3753_s19  ;;  %3138 = vmatmul.msk.f32.gmra.mxu1 %vm217_vm1, %v86_v19  ;;  %v685_v15 = vld [vmem:[%s4696_s7 + $0x10] sm:$0xff] }
  0x93   :  { %v166_v21 = vpop.f32.mrf.mxu2  ;;  %v206_v22 = vpop.f32.mrf.mxu3 }
  0x94   :  { %3148 = vmatmul.msk.f32.gmra.mxu3 %vm217_vm1, %v206_v22  ;;  %541 = vrot.lane.b32.xlu0 %v204_v18, %s3753_s19  ;;  %v89_v23 = vpop.f32.mrf.mxu0  ;;  %v129_v24 = vpop.f32.mrf.mxu1 }
  0x95   :  { %492 = vrot.lane.b32.xlu2 %v166_v21, %s3753_s19  ;;  %3143 = vmatmul.msk.f32.gmra.mxu2 %vm217_vm1, %v166_v21 }
  0x96   :  { %445 = vrot.lane.b32.xlu1 %v86_v19, %s3753_s19  ;;  %3135 = vmatmul.msk.f32.gmra.mxu0 %vm217_vm1, %v129_v24  ;;  %v44_v19 = vld [vmem:[%s4697_s8 + $0x8] sm:$0xff] }
  0x97   :  { %3139 = vmatmul.msk.f32.gmra.mxu1 %vm217_vm1, %v89_v23 }
  0x9b   :  { %v169_v25 = vpop.f32.mrf.mxu2  ;;  %v209_v26 = vpop.f32.mrf.mxu3 }
  0x9c   :  { %3149 = vmatmul.msk.f32.gmra.mxu3 %vm217_vm1, %v209_v26  ;;  %400 = vrot.lane.b32.xlu0 %v126_v20, %s3753_s19  ;;  %v91_v27 = vpop.f32.mrf.mxu0  ;;  %v131_v28 = vpop.f32.mrf.mxu1 }
  0x9d   :  { %543 = vrot.lane.b32.xlu2 %v206_v22, %s3753_s19  ;;  %3144 = vmatmul.msk.f32.gmra.mxu2 %vm217_vm1, %v169_v25 }
  0x9e   :  { %402 = vrot.lane.b32.xlu1 %v129_v24, %s3753_s19  ;;  %3136 = vmatmul.msk.f32.gmra.mxu0 %vm217_vm1, %v131_v28 }
  0x9f   :  { %3140 = vmatmul.msk.f32.gmra.mxu1 %vm217_vm1, %v91_v27 }
  0xa3   :  { %v171_v29 = vpop.f32.mrf.mxu2  ;;  %v211_v30 = vpop.f32.mrf.mxu3 }
  0xa4   :  { %3150 = vmatmul.msk.f32.gmra.mxu3 %vm217_vm1, %v211_v30  ;;  %545 = vrot.lane.b32.xlu0 %v209_v26, %s3753_s19 }
  0xa5   :  { %494 = vrot.lane.b32.xlu2 %v169_v25, %s3753_s19  ;;  %3145 = vmatmul.msk.f32.gmra.mxu2 %vm217_vm1, %v171_v29 }
  0xa6   :  { %547 = vrot.lane.b32.xlu1 %v211_v30, %s3753_s19 }
  0xac   :  { %496 = vrot.lane.b32.xlu0 %v171_v29, %s3753_s19 }
  0xad   :  { %447 = vrot.lane.b32.xlu2 %v89_v23, %s3753_s19 }
  0xae   :  { %666 = vperm.xlu1 %3643, %v648_v10  }
  0xb4   :  { %449 = vrot.lane.b32.xlu0 %v91_v27, %s3753_s19 }
  0xb5   :  { %404 = vrot.lane.b32.xlu2 %v131_v28, %s3753_s19 }
  0xbc   :  { %661 = vperm.xlu0 %3642, %v647_v7  }
  0xc4   :  { %656 = vperm.xlu0 %3642, %v646_v9  }
  0xcc   :  { %699 = vperm.xlu0 %3642, %v685_v15  }
  0xd4   :  { %772 = vperm.xlu0 %3642, %v44_v19  }
  0xef   :  { %v493_v35 = vpop.permute.xlu2 %492 }
  0xf7   :  { %v399_v36 = vpop.permute.xlu1 %398  ;;  %v544_v37 = vpop.permute.xlu2 %543 }
  0xf8   :  { %3153 = vmatmul.msk.f32.vlgmr.msra.gmra.mxu0 %vm217_vm1, %v399_v36 }
  0xfe   :  { %v491_v38 = vpop.permute.xlu0 %490 }
  0xff   :  { %3162 = vmatmul.msk.f32.vlgmr.msra.gmra.mxu2 %vm217_vm1, %v491_v38  ;;  %v495_v43 = vpop.permute.xlu2 %494 }
 0x100   :  { %v444_v39 = vpop.permute.xlu1 %443 }
 0x101   :  { %3157 = vmatmul.msk.f32.vlgmr.msra.gmra.mxu1 %vm217_vm1, %v444_v39 }
 0x102   :  { %v247_v40 = vpop.f32.mrf.mxu0 }
 0x103   :  { %v288_v41 = vpop.f32.mrf.mxu1 }
 0x104   :  { %v289_v42 = vadd.f32 %v288_v41, %v247_v40 }
 0x106   :  { %v542_v44 = vpop.permute.xlu0 %541 }
 0x107   :  { %3163 = vmatmul.msk.f32.gmra.mxu2 %vm217_vm1, %v493_v35  ;;  %3167 = vmatmul.msk.f32.vlgmr.msra.gmra.mxu3 %vm217_vm1, %v542_v44  ;;  %v448_v50 = vpop.permute.xlu2 %447 }
 0x108   :  { %v446_v45 = vpop.permute.xlu1 %445 }
 0x109   :  { %3158 = vmatmul.msk.f32.gmra.mxu1 %vm217_vm1, %v446_v45 }
 0x10a   :  { %v3960_v46 = vpop.f32.mrf.mxu0 }
 0x10b   :  { %v3962_v47 = vpop.f32.mrf.mxu1 }
 0x10e   :  { %v401_v48 = vpop.permute.xlu0 %400 }
 0x10f   :  { %v378_v49 = vpop.f32.mrf.mxu3  ;;  %3154 = vmatmul.msk.f32.gmra.mxu0 %vm217_vm1, %v401_v48  ;;  %3164 = vmatmul.msk.f32.gmra.mxu2 %vm217_vm1, %v495_v43  ;;  %v405_v61 = vpop.permute.xlu2 %404 }
 0x110   :  { %v331_v51 = vpop.f32.mrf.mxu2  ;;  %3168 = vmatmul.msk.f32.gmra.mxu3 %vm217_vm1, %v544_v37  ;;  %v403_v56 = vpop.permute.xlu1 %402 }
 0x111   :  { %v343_v52 = vadd.f32 %v331_v51, %v289_v42  ;;  %3159 = vmatmul.msk.f32.gmra.mxu1 %vm217_vm1, %v448_v50 }
 0x113   :  { %v3968_v53 = vadd.f32 %v378_v49, %v343_v52  ;;  %v253_v54 = vpop.f32.mrf.mxu0 }
 0x114   :  { %v294_v55 = vpop.f32.mrf.mxu1 }
 0x115   :  { %v295_v57 = vadd.f32 %v294_v55, %v253_v54 }
 0x116   :  { %v546_v58 = vpop.permute.xlu0 %545 }
 0x117   :  { %3155 = vmatmul.msk.f32.gmra.mxu0 %vm217_vm1, %v403_v56  ;;  %v3973_v60 = vpop.f32.mrf.mxu3  ;;  %v683_v56 = vld [vmem:[%s4696_s7] sm:$0xff] }
 0x118   :  { %v3971_v59 = vpop.f32.mrf.mxu2  ;;  %3169 = vmatmul.msk.f32.gmra.mxu3 %vm217_vm1, %v546_v58  ;;  %v548_v63 = vpop.permute.xlu1 %547  ;;  %v686_v58 = vld [vmem:[%s4696_s7 + $0x18] sm:$0xff] }
 0x11b   :  { %v256_v17 = vpop.f32.mrf.mxu0 }
 0x11c   :  { %v297_v16 = vpop.f32.mrf.mxu1 }
 0x11e   :  { %v497_v62 = vpop.permute.xlu0 %496 }
 0x11f   :  { %3156 = vmatmul.msk.f32.gmra.mxu0 %vm217_vm1, %v405_v61  ;;  %3165 = vmatmul.msk.f32.gmra.mxu2 %vm217_vm1, %v497_v62  ;;  %v384_v2 = vpop.f32.mrf.mxu3  ;;  %v684_v61 = vld [vmem:[%s4696_s7 + $0x8] sm:$0xff]  ;;  %v43_v62 = vld [vmem:[%s4697_s8] sm:$0xff] }
 0x120   :  { %v337_v0 = vpop.f32.mrf.mxu2  ;;  %3170 = vmatmul.msk.f32.gmra.mxu3 %vm217_vm1, %v548_v63 }
 0x121   :  { %v345_v1 = vadd.f32 %v337_v0, %v295_v57  ;;  %v645_v57 = vld [vmem:[%s4694_s5] sm:$0xff] }
 0x123   :  { %v3979_v3 = vadd.f32 %v384_v2, %v345_v1 }
 0x126   :  { %v450_v5 = vpop.permute.xlu0 %449 }
 0x127   :  { %3160 = vmatmul.msk.f32.gmra.mxu1 %vm217_vm1, %v450_v5  ;;  %3179 = vmatmul.msk.bf16.vlgmr.msrb.gmra.mxu0 %vm68_vm0, %v3588_v4  ;;  %v387_v20 = vpop.f32.mrf.mxu3  ;;  %v298_v4 = vadd.f32 %v297_v16, %v256_v17 }
 0x128   :  { %v340_v18 = vpop.f32.mrf.mxu2 }
 0x129   :  { %v346_v5 = vadd.f32 %v340_v18, %v298_v4 }
 0x12b   :  { %v393_v8 = vadd.f32 %v387_v20, %v346_v5  ;;  %v47_v5 = vld [vmem:[%s4689_s0 + $0x10] sm:$0xff] }
 0x137   :  { %3180 = vmatmul.msk.bf16.gmra.mxu0 %vm68_vm0, %v3589_v6  ;;  %v667_v6 = vpop.permute.xlu1 %666 }
 0x175   :  { %v431_v22 = vpop.f32.mrf.mxu0 }
 0x17e   :  { %v476_v21 = vpop.f32.mrf.mxu1 }
 0x17f   :  { %v477_v24 = vadd.f32 %v476_v21, %v431_v22  ;;  %v292_v21 = vadd.f32 %v3962_v47, %v3960_v46  ;;  %v662_v22 = vpop.permute.xlu0 %661 }
 0x181   :  { %v344_v16 = vadd.f32 %v3971_v59, %v292_v21 }
 0x182   :  { %v523_v23 = vpop.f32.mrf.mxu2 }
 0x183   :  { %v535_v25 = vadd.f32 %v523_v23, %v477_v24 }
 0x186   :  { %v479_v29 = vpop.f32.mrf.mxu1 }
 0x18a   :  { %v574_v26 = vpop.f32.mrf.mxu3  ;;  %v526_v30 = vpop.f32.mrf.mxu2 }
 0x18b   :  { %v586_v27 = vadd.f32 %v574_v26, %v535_v25  ;;  %v391_v26 = vadd.f32 %v3973_v60, %v344_v16  ;;  %v3598_v60 = vld [vmem:[%s4695_s6] sm:$0xff] }
 0x18c   :  { %v434_v28 = vpop.f32.mrf.mxu0 }
 0x18d   :  { %594 = vrot.lane.b32.xlu2 %v586_v27, %s3755_s25  ;;  %v480_v43 = vadd.f32 %v479_v29, %v434_v28 }
 0x18e   :  { %v482_v37 = vpop.f32.mrf.mxu1 }
 0x18f   :  { %v536_v44 = vadd.f32 %v526_v30, %v480_v43 }
 0x192   :  { %v529_v39 = vpop.f32.mrf.mxu2 }
 0x193   :  { %v577_v35 = vpop.f32.mrf.mxu3 }
 0x194   :  { %v437_v36 = vpop.f32.mrf.mxu0  ;;  %v587_v48 = vadd.f32 %v577_v35, %v536_v44 }
 0x195   :  { %v483_v38 = vadd.f32 %v482_v37, %v437_v36 }
 0x197   :  { %v537_v40 = vadd.f32 %v529_v39, %v483_v38  ;;  %v3599_v39 = vld [vmem:[%s4695_s6 + $0x8] sm:$0xff] }
 0x19b   :  { %v580_v41 = vpop.f32.mrf.mxu3 }
 0x19c   :  { %v588_v42 = vadd.f32 %v580_v41, %v537_v40  ;;  %v440_v45 = vpop.f32.mrf.mxu0 }
 0x19e   :  { %598 = vrot.lane.b32.xlu1 %v588_v42, %s3755_s25 }
 0x1a2   :  { %v532_v50 = vpop.f32.mrf.mxu2 }
 0x1a3   :  { %v583_v54 = vpop.f32.mrf.mxu3 }
 0x1a4   :  { %v485_v49 = vpop.f32.mrf.mxu1  ;;  %v635_v63 = vpop.f32.mrf.mxu0 }
 0x1a5   :  { %v486_v51 = vadd.f32 %v485_v49, %v440_v45 }
 0x1a6   :  { %596 = vrot.lane.b32.xlu1 %v587_v48, %s3755_s25 }
 0x1a7   :  { %v538_v52 = vadd.f32 %v532_v50, %v486_v51 }
 0x1a9   :  { %v589_v55 = vadd.f32 %v583_v54, %v538_v52 }
 0x1ab   :  { %600 = vrot.lane.b32.xlu2 %v589_v55, %s3755_s25 }
 0x1ac   :  { %v637_v0 = vpop.f32.mrf.mxu0 }
 0x1ae   :  { %689 = vperm.xlu1 %3643, %v683_v56  }
 0x1b3   :  { %651 = vperm.xlu2 %3644, %v645_v57  }
 0x1b4   :  { %v640_v2 = vpop.f32.mrf.mxu0 }
 0x1b6   :  { %704 = vperm.xlu1 %3643, %v686_v58  }
 0x1bb   :  { %694 = vperm.xlu2 %3644, %v684_v61  }
 0x1bc   :  { %v642_v10 = vpop.f32.mrf.mxu0 }
 0x1c3   :  { %767 = vperm.xlu2 %3644, %v43_v62  }
 0x1e7   :  { %v595_v1 = vpop.permute.xlu2 %594 }
 0x1e8   :  { %v606_v17 = vsel %vm217_vm1, %v3968_v53, %v595_v1 }
 0x1e9   :  { %v636_v27 = vadd.f32 %v635_v63, %v606_v17 }
 0x205   :  { %v601_v7 = vpop.permute.xlu2 %600 }
 0x206   :  { %v609_v9 = vsel %vm217_vm1, %v393_v8, %v601_v7  ;;  %v48_v8 = vld [vmem:[%s4689_s0 + $0x18] sm:$0xff] }
 0x207   :  { %v643_v15 = vadd.f32 %v642_v10, %v609_v9 }
 0x209   :  { %v672_v23 = vadd.f32 %v667_v6, %v643_v15 }
 0x20b   :  { %3645 = vtanh.f32 %v672_v23 }
 0x20d   :  { %v652_v20 = vpop.permute.xlu2 %651 }
 0x20e   :  { %v669_v46 = vadd.f32 %v652_v20, %v636_v27 }
 0x210   :  { %v599_v19 = vpop.permute.xlu1 %598 }
 0x211   :  { %v608_v24 = vsel %vm217_vm1, %v3979_v3, %v599_v19  ;;  %v3646_v30 = vpop.eup %3645  ;;  %v657_v3 = vpop.permute.xlu0 %656 }
 0x212   :  { %v641_v25 = vadd.f32 %v640_v2, %v608_v24 }
 0x214   :  { %v671_v18 = vadd.f32 %v662_v22, %v641_v25 }
 0x215   :  { %v695_v48 = vpop.permute.xlu2 %694 }
 0x216   :  { %3647 = vtanh.f32 %v671_v18 }
 0x217   :  { %3649 = vtanh.f32 %v669_v46 }
 0x218   :  { %v597_v28 = vpop.permute.xlu1 %596 }
 0x219   :  { %v607_v47 = vsel %vm217_vm1, %v391_v26, %v597_v28  ;;  %v700_v63 = vpop.permute.xlu0 %699 }
 0x21a   :  { %v638_v29 = vadd.f32 %v637_v0, %v607_v47 }
 0x21c   :  { %v3648_v35 = vpop.eup %3647  ;;  %v670_v36 = vadd.f32 %v657_v3, %v638_v29  ;;  %v3602_v29 = vld [vmem:[%s4693_s4 + $0x40] sm:$0xff] }
 0x21d   :  { %v682_v59 = vpack.c.bf16 %v3646_v30, %v3648_v35  ;;  %v3650_v53 = vpop.eup %3649  ;;  %v4048_v24 = vpop.permute.xlu2 %767  ;;  %v3604_v30 = vld [vmem:[%s4693_s4 + $0x50] sm:$0xff] }
 0x21e   :  { %3651 = vtanh.f32 %v670_v36  ;;  %v3608_v35 = vld [vmem:[%s4693_s4 + $0x70] sm:$0xff]  ;;  %v3606_v36 = vld [vmem:[%s4693_s4 + $0x60] sm:$0xff] }
 0x21f   :  { %730 = vmatpush.bf16.msrb.mxu1 %v682_v59 }
 0x220   :  { %v690_v40 = vpop.permute.xlu1 %689 }
 0x221   :  { %v4050_v16 = vpop.permute.xlu0 %772 }
 0x224   :  { %v3652_v37 = vpop.eup %3651 }
 0x225   :  { %v681_v38 = vpack.c.bf16 %v3652_v37, %v3650_v53 }
 0x227   :  { %731 = vmatpush.bf16.msrb.mxu1 %v681_v38 }
 0x228   :  { %v705_v2 = vpop.permute.xlu1 %704 }
 0x22a   :  { %3189 = vmatmul.msk.bf16.vlgmr.msrb.gmra.mxu1 %vm717_vm2, %v3598_v60 }
 0x23a   :  { %3190 = vmatmul.msk.bf16.gmra.mxu1 %vm717_vm2, %v3599_v39 }
 0x2a7   :  { %v733_v41 = vpop.f32.mrf.mxu1 }
 0x2a8   :  { %v734_v42 = vadd.f32 %v733_v41, %v690_v40 }
 0x2aa   :  { %v743_v43 = vadd.f32 2.0, %v734_v42 }
 0x2ac   :  { %v745_v44 = vsub.f32 0.0, %v743_v43 }
 0x2ae   :  { %v747_v45 = vmul.f32 1.442695, %v745_v44 }
 0x2af   :  { %v735_v49 = vpop.f32.mrf.mxu1 }
 0x2b0   :  { %3653 = vpow2.f32 %v747_v45  ;;  %v736_v50 = vadd.f32 %v735_v49, %v695_v48  ;;  %v3296_v48 = vld [vmem:[%s4694_s5 + $0x38] sm:$0xff]  ;;  %v3295_v49 = vld [vmem:[%s4694_s5 + $0x30] sm:$0xff] }
 0x2b2   :  { %v744_v51 = vadd.f32 2.0, %v736_v50 }
 0x2b4   :  { %v746_v52 = vsub.f32 0.0, %v744_v51 }
 0x2b6   :  { %v3654_v54 = vpop.eup %3653  ;;  %v749_v55 = vmul.f32 1.442695, %v746_v52 }
 0x2b7   :  { %v751_v56 = vadd.f32 1.0, %v3654_v54  ;;  %v738_v57 = vpop.f32.mrf.mxu1 }
 0x2b8   :  { %3655 = vpow2.f32 %v749_v55  ;;  %v739_v1 = vadd.f32 %v738_v57, %v700_v63 }
 0x2b9   :  { %3657 = vlog2.f32 %v751_v56 }
 0x2ba   :  { %3659 = vrcp.f32 %v751_v56  ;;  %v761_v9 = vadd.f32 %v739_v1, %v47_v5 }
 0x2be   :  { %v3656_v58 = vpop.eup %3655 }
 0x2bf   :  { %v3658_v61 = vpop.eup %3657  ;;  %v752_v62 = vadd.f32 1.0, %v3656_v58  ;;  %v740_v0 = vpop.f32.mrf.mxu1 }
 0x2c0   :  { %v754_v4 = vmul.f32 0.6931472, %v3658_v61  ;;  %v741_v6 = vadd.f32 %v740_v0, %v705_v2  ;;  %v3660_v7 = vpop.eup %3659 }
 0x2c1   :  { %3661 = vlog2.f32 %v752_v62  ;;  %v763_v19 = vmul.f32 %v3660_v7, %v761_v9 }
 0x2c2   :  { %3663 = vrcp.f32 %v752_v62  ;;  %v757_v10 = vsub.f32 0.0, %v754_v4  ;;  %v762_v21 = vadd.f32 %v741_v6, %v48_v8 }
 0x2c3   :  { %v4054_v20 = vmul.f32 %v4048_v24, %v763_v19 }
 0x2c4   :  { %v777_v17 = vmul.f32 %v4048_v24, %v757_v10 }
 0x2c6   :  { %v779_v46 = vsel %vm68_vm0, %v777_v17, 0.0 }
 0x2c7   :  { %v3662_v15 = vpop.eup %3661 }
 0x2c8   :  { %v3664_v22 = vpop.eup %3663  ;;  %v756_v23 = vmul.f32 0.6931472, %v3662_v15 }
 0x2c9   :  { %v764_v25 = vmul.f32 %v3664_v22, %v762_v21 }
 0x2ca   :  { %v758_v18 = vsub.f32 0.0, %v756_v23 }
 0x2cb   :  { %v4057_v26 = vmul.f32 %v4050_v16, %v764_v25 }
 0x2cc   :  { %v778_v27 = vmul.f32 %v4050_v16, %v758_v18 }
 0x2cd   :  { %v789_v28 = vpack.c.bf16 %v4057_v26, %v4054_v20 }
 0x2ce   :  { %v780_v47 = vsel %vm68_vm0, %v778_v27, 0.0  ;;  %v3600_v27 = vld [vmem:[%s4692_s3 + $0x10] sm:$0xff] }
 0x2cf   :  { %v4070_v3 = vadd.f32 %v780_v47, %v779_v46  ;;  %823 = vmatpush.bf16.msrb.mxu2 %v789_v28  ;;  %863 = vmatpush.bf16.msrb.mxu3 %v789_v28 }
 0x2d0   :  { %903 = vmatpush.bf16.msra.mxu0 %v789_v28  ;;  %943 = vmatpush.bf16.msra.mxu1 %v789_v28 }
 0x2d2   :  { %3207 = vmatmul.msk.bf16.vlgmr.msrb.gmra.mxu2 %vm68_vm0, %v3602_v29  ;;  %3221 = vmatmul.msk.bf16.vlgmr.msrb.gmra.mxu3 %vm68_vm0, %v3604_v30 }
 0x2d3   :  { %982 = vmatpush.msra.mxu2 %v3876_v11  ;;  %3249 = vmatmul.msk.bf16.vlgmr.msra.gmra.mxu1 %vm68_vm0, %v3608_v35  ;;  %v3603_v11 = vld [vmem:[%s4693_s4 + $0x48] sm:$0xff]  ;;  %v3601_v35 = vld [vmem:[%s4692_s3 + $0x18] sm:$0xff] }
 0x2d4   :  { %1109 = vmatpush.msrb.mxu1 %v3893_v14  ;;  %3235 = vmatmul.msk.bf16.vlgmr.msra.gmra.mxu0 %vm68_vm0, %v3606_v36  ;;  %v3605_v14 = vld [vmem:[%s4693_s4 + $0x58] sm:$0xff] }
 0x2d5   :  { %1023 = vmatpush.msra.mxu3 %v3881_v12  ;;  %1158 = vmatpush.msrb.mxu2 %v3938_v32  ;;  %v3607_v12 = vld [vmem:[%s4693_s4 + $0x68] sm:$0xff] }
 0x2d6   :  { %1064 = vmatpush.msrb.mxu0 %v3888_v13  ;;  %1297 = vmatpush.msra.mxu1 %v3951_v34  ;;  %v3609_v13 = vld [vmem:[%s4693_s4 + $0x78] sm:$0xff] }
 0x2d7   :  { %1203 = vmatpush.msrb.mxu3 %v3943_v33 }
 0x2d8   :  { %1248 = vmatpush.msra.mxu0 %v3932_v31 }
 0x2e2   :  { %3208 = vmatmul.msk.bf16.gmra.mxu2 %vm68_vm0, %v3603_v11  ;;  %3222 = vmatmul.msk.bf16.gmra.mxu3 %vm68_vm0, %v3605_v14 }
 0x2e3   :  { %3250 = vmatmul.msk.bf16.gmra.mxu1 %vm68_vm0, %v3609_v13 }
 0x2e4   :  { %3236 = vmatmul.msk.bf16.gmra.mxu0 %vm68_vm0, %v3607_v12 }
 0x350   :  { %v945_v31 = vpop.f32.mrf.mxu1 }
 0x351   :  { %v905_v32 = vpop.f32.mrf.mxu0  ;;  %3263 = vmatmul.msk.f32.vlgmr.msrb.gmra.mxu1 %vm217_vm1, %v945_v31  ;;  %1266 = vrot.lane.b32.xlu0 %v945_v31, %s3753_s19 }
 0x352   :  { %3259 = vmatmul.msk.f32.vlgmr.msrb.gmra.mxu0 %vm217_vm1, %v905_v32 }
 0x355   :  { %v825_v33 = vpop.f32.mrf.mxu2  ;;  %v865_v34 = vpop.f32.mrf.mxu3 }
 0x356   :  { %1127 = vrot.lane.b32.xlu1 %v865_v34, %s3753_s19  ;;  %3251 = vmatmul.msk.f32.vlgmr.msra.gmra.mxu2 %vm217_vm1, %v865_v34 }
 0x357   :  { %1358 = vmatpush.bf16.msra.mxu2 %v789_v28  ;;  %1172 = vrot.lane.b32.xlu2 %v825_v33, %s3753_s19 }
 0x358   :  { %3255 = vmatmul.msk.f32.vlgmr.msra.gmra.mxu3 %vm217_vm1, %v825_v33  ;;  %v947_v59 = vpop.f32.mrf.mxu1 }
 0x359   :  { %v907_v53 = vpop.f32.mrf.mxu0  ;;  %3264 = vmatmul.msk.f32.gmra.mxu1 %vm217_vm1, %v947_v59 }
 0x35a   :  { %3260 = vmatmul.msk.f32.gmra.mxu0 %vm217_vm1, %v907_v53 }
 0x35d   :  { %v827_v37 = vpop.f32.mrf.mxu2  ;;  %v867_v38 = vpop.f32.mrf.mxu3 }
 0x35e   :  { %1268 = vrot.lane.b32.xlu1 %v947_v59, %s3753_s19  ;;  %1129 = vrot.lane.b32.xlu0 %v867_v38, %s3753_s19 }
 0x35f   :  { %3252 = vmatmul.msk.f32.gmra.mxu2 %vm217_vm1, %v867_v38  ;;  %1217 = vrot.lane.b32.xlu2 %v905_v32, %s3753_s19 }
 0x360   :  { %3256 = vmatmul.msk.f32.gmra.mxu3 %vm217_vm1, %v827_v37  ;;  %v950_v39 = vpop.f32.mrf.mxu1 }
 0x361   :  { %v910_v60 = vpop.f32.mrf.mxu0  ;;  %3265 = vmatmul.msk.f32.gmra.mxu1 %vm217_vm1, %v950_v39 }
 0x362   :  { %3261 = vmatmul.msk.f32.gmra.mxu0 %vm217_vm1, %v910_v60 }
 0x365   :  { %v830_v40 = vpop.f32.mrf.mxu2  ;;  %v870_v41 = vpop.f32.mrf.mxu3 }
 0x366   :  { %1219 = vrot.lane.b32.xlu0 %v907_v53, %s3753_s19  ;;  %1174 = vrot.lane.b32.xlu1 %v827_v37, %s3753_s19 }
 0x367   :  { %3253 = vmatmul.msk.f32.gmra.mxu2 %vm217_vm1, %v870_v41  ;;  %1176 = vrot.lane.b32.xlu2 %v830_v40, %s3753_s19 }
 0x368   :  { %3257 = vmatmul.msk.f32.gmra.mxu3 %vm217_vm1, %v830_v40  ;;  %v952_v43 = vpop.f32.mrf.mxu1 }
 0x369   :  { %v912_v42 = vpop.f32.mrf.mxu0  ;;  %3266 = vmatmul.msk.f32.gmra.mxu1 %vm217_vm1, %v952_v43 }
 0x36a   :  { %3262 = vmatmul.msk.f32.gmra.mxu0 %vm217_vm1, %v912_v42 }
 0x36d   :  { %v832_v44 = vpop.f32.mrf.mxu2  ;;  %v872_v45 = vpop.f32.mrf.mxu3 }
 0x36e   :  { %1131 = vrot.lane.b32.xlu1 %v870_v41, %s3753_s19  ;;  %1178 = vrot.lane.b32.xlu0 %v832_v44, %s3753_s19 }
 0x36f   :  { %3254 = vmatmul.msk.f32.gmra.mxu2 %vm217_vm1, %v872_v45  ;;  %1133 = vrot.lane.b32.xlu2 %v872_v45, %s3753_s19 }
 0x370   :  { %3258 = vmatmul.msk.f32.gmra.mxu3 %vm217_vm1, %v832_v44 }
 0x376   :  { %1221 = vrot.lane.b32.xlu1 %v910_v60, %s3753_s19  ;;  %1223 = vrot.lane.b32.xlu0 %v912_v42, %s3753_s19 }
 0x377   :  { %1270 = vrot.lane.b32.xlu2 %v950_v39, %s3753_s19 }
 0x37e   :  { %1272 = vrot.lane.b32.xlu1 %v952_v43, %s3753_s19 }
 0x37f   :  { %1392 = vperm.xlu2 %3644, %v3296_v48  }
 0x386   :  { %1387 = vperm.xlu1 %3643, %v3295_v49  }
 0x3b1   :  { %v1173_v50 = vpop.permute.xlu2 %1172 }
 0x3b2   :  { %3271 = vmatmul.msk.f32.vlgmr.msrb.gmra.mxu3 %vm217_vm1, %v1173_v50 }
 0x3b9   :  { %v1218_v51 = vpop.permute.xlu2 %1217 }
 0x3ba   :  { %3275 = vmatmul.msk.f32.vlgmr.msra.gmra.mxu0 %vm217_vm1, %v1218_v51 }
 0x3c1   :  { %v1177_v54 = vpop.permute.xlu2 %1176 }
 0x3c3   :  { %v1267_v52 = vpop.permute.xlu0 %1266 }
 0x3c4   :  { %3279 = vmatmul.msk.f32.vlgmr.msra.gmra.mxu1 %vm217_vm1, %v1267_v52 }
 0x3c8   :  { %v1128_v55 = vpop.permute.xlu1 %1127 }
 0x3c9   :  { %3267 = vmatmul.msk.f32.vlgmr.msrb.gmra.mxu2 %vm217_vm1, %v1128_v55  ;;  %v1134_v56 = vpop.permute.xlu2 %1133 }
 0x3ce   :  { %v1111_v5 = vpop.f32.mrf.mxu1 }
 0x3cf   :  { %v1066_v61 = vpop.f32.mrf.mxu0 }
 0x3d0   :  { %v1269_v57 = vpop.permute.xlu1 %1268  ;;  %v1130_v58 = vpop.permute.xlu0 %1129 }
 0x3d1   :  { %3268 = vmatmul.msk.f32.gmra.mxu2 %vm217_vm1, %v1130_v58  ;;  %3280 = vmatmul.msk.f32.gmra.mxu1 %vm217_vm1, %v1269_v57  ;;  %v1271_v0 = vpop.permute.xlu2 %1270 }
 0x3d6   :  { %v4163_v19 = vpop.f32.mrf.mxu1 }
 0x3d7   :  { %v4161_v15 = vpop.f32.mrf.mxu0 }
 0x3d8   :  { %v1220_v62 = vpop.permute.xlu0 %1219  ;;  %v1175_v63 = vpop.permute.xlu1 %1174 }
 0x3d9   :  { %v984_v1 = vpop.f32.mrf.mxu2  ;;  %3272 = vmatmul.msk.f32.gmra.mxu3 %vm217_vm1, %v1175_v63  ;;  %3276 = vmatmul.msk.f32.gmra.mxu0 %vm217_vm1, %v1220_v62  ;;  %v3294_v63 = vld [vmem:[%s4694_s5 + $0x28] sm:$0xff] }
 0x3da   :  { %3281 = vmatmul.msk.f32.gmra.mxu1 %vm217_vm1, %v1271_v0  ;;  %v1393_v0 = vpop.permute.xlu2 %1392 }
 0x3db   :  { %v1025_v2 = vpop.f32.mrf.mxu3 }
 0x3dc   :  { %v1026_v4 = vadd.f32 %v1025_v2, %v984_v1 }
 0x3de   :  { %v1078_v6 = vadd.f32 %v1066_v61, %v1026_v4  ;;  %v1117_v46 = vpop.f32.mrf.mxu1  ;;  %v3293_v61 = vld [vmem:[%s4694_s5 + $0x20] sm:$0xff] }
 0x3df   :  { %v1072_v18 = vpop.f32.mrf.mxu0 }
 0x3e0   :  { %v4153_v7 = vadd.f32 %v1111_v5, %v1078_v6  ;;  %v1132_v8 = vpop.permute.xlu1 %1131  ;;  %v1179_v21 = vpop.permute.xlu0 %1178 }
 0x3e1   :  { %3269 = vmatmul.msk.f32.gmra.mxu2 %vm217_vm1, %v1132_v8  ;;  %3273 = vmatmul.msk.f32.gmra.mxu3 %vm217_vm1, %v1177_v54 }
 0x3e2   :  { %v4157_v9 = vpop.f32.mrf.mxu2 }
 0x3e3   :  { %v4159_v10 = vpop.f32.mrf.mxu3 }
 0x3e6   :  { %v4180_v12 = vpop.f32.mrf.mxu1 }
 0x3e7   :  { %v1075_v14 = vpop.f32.mrf.mxu0 }
 0x3e8   :  { %v1222_v22 = vpop.permute.xlu1 %1221  ;;  %v1224_v30 = vpop.permute.xlu0 %1223 }
 0x3e9   :  { %3270 = vmatmul.msk.f32.gmra.mxu2 %vm217_vm1, %v1134_v56  ;;  %3274 = vmatmul.msk.f32.gmra.mxu3 %vm217_vm1, %v1179_v21 }
 0x3ea   :  { %3277 = vmatmul.msk.f32.gmra.mxu0 %vm217_vm1, %v1222_v22  ;;  %v990_v23 = vpop.f32.mrf.mxu2 }
 0x3eb   :  { %v1031_v25 = vpop.f32.mrf.mxu3 }
 0x3ec   :  { %v1032_v17 = vadd.f32 %v1031_v25, %v990_v23 }
 0x3ee   :  { %v1080_v28 = vadd.f32 %v1072_v18, %v1032_v17 }
 0x3f0   :  { %v4171_v47 = vadd.f32 %v1117_v46, %v1080_v28  ;;  %v1273_v29 = vpop.permute.xlu1 %1272  ;;  %v1029_v46 = vadd.f32 %v4159_v10, %v4157_v9  ;;  %v3618_v9 = vld [vmem:[%s4693_s4 + $0xa0] sm:$0xff] }
 0x3f1   :  { %3282 = vmatmul.msk.f32.gmra.mxu1 %vm217_vm1, %v1273_v29  ;;  %3291 = vmatmul.msk.bf16.vlgmr.msra.gmra.mxu2 %vm68_vm0, %v3600_v27 }
 0x3f2   :  { %3278 = vmatmul.msk.f32.gmra.mxu0 %vm217_vm1, %v1224_v30  ;;  %v993_v36 = vpop.f32.mrf.mxu2  ;;  %v3616_v30 = vld [vmem:[%s4693_s4 + $0x90] sm:$0xff] }
 0x3f3   :  { %v1034_v11 = vpop.f32.mrf.mxu3 }
 0x3f4   :  { %v1035_v22 = vadd.f32 %v1034_v11, %v993_v36 }
 0x3f6   :  { %v1081_v36 = vadd.f32 %v1075_v14, %v1035_v22 }
 0x3f8   :  { %v1388_v4 = vpop.permute.xlu1 %1387  ;;  %v1126_v11 = vadd.f32 %v4180_v12, %v1081_v36 }
 0x401   :  { %3292 = vmatmul.msk.bf16.gmra.mxu2 %vm68_vm0, %v3601_v35  ;;  %v3614_v35 = vld [vmem:[%s4693_s4 + $0x80] sm:$0xff] }
 0x435   :  { %v1205_v13 = vpop.f32.mrf.mxu3 }
 0x437   :  { %v1250_v33 = vpop.f32.mrf.mxu0 }
 0x441   :  { %v1299_v59 = vpop.f32.mrf.mxu1 }
 0x44c   :  { %v1160_v31 = vpop.f32.mrf.mxu2 }
 0x44d   :  { %v1206_v32 = vadd.f32 %v1205_v13, %v1160_v31 }
 0x44e   :  { %v1302_v40 = vpop.f32.mrf.mxu1 }
 0x44f   :  { %v1262_v34 = vadd.f32 %v1250_v33, %v1206_v32 }
 0x451   :  { %v1311_v53 = vadd.f32 %v1299_v59, %v1262_v34 }
 0x453   :  { %1319 = vrot.lane.b32.xlu0 %v1311_v53, %s3755_s25 }
 0x454   :  { %v1163_v37 = vpop.f32.mrf.mxu2 }
 0x456   :  { %v1253_v39 = vpop.f32.mrf.mxu0 }
 0x457   :  { %v1305_v50 = vpop.f32.mrf.mxu1 }
 0x45c   :  { %v1208_v38 = vpop.f32.mrf.mxu3 }
 0x45d   :  { %v1209_v60 = vadd.f32 %v1208_v38, %v1163_v37 }
 0x45f   :  { %v1263_v41 = vadd.f32 %v1253_v39, %v1209_v60 }
 0x461   :  { %v1312_v42 = vadd.f32 %v1302_v40, %v1263_v41 }
 0x463   :  { %1321 = vrot.lane.b32.xlu1 %v1312_v42, %s3755_s25 }
 0x464   :  { %v1166_v43 = vpop.f32.mrf.mxu2  ;;  %v1211_v44 = vpop.f32.mrf.mxu3 }
 0x465   :  { %v1212_v45 = vadd.f32 %v1211_v44, %v1166_v43  ;;  %v3610_v44 = vld [vmem:[%s4695_s6 + $0x10] sm:$0xff] }
 0x467   :  { %v1256_v48 = vpop.f32.mrf.mxu0 }
 0x468   :  { %v1264_v49 = vadd.f32 %v1256_v48, %v1212_v45  ;;  %v3619_v45 = vld [vmem:[%s4693_s4 + $0xa8] sm:$0xff] }
 0x469   :  { %v3615_v48 = vld [vmem:[%s4693_s4 + $0x88] sm:$0xff] }
 0x46a   :  { %v1313_v51 = vadd.f32 %v1305_v50, %v1264_v49  ;;  %v3617_v49 = vld [vmem:[%s4693_s4 + $0x98] sm:$0xff] }
 0x46b   :  { %1510 = vrot.lane.b32.xlu1 %v4054_v20, %s3756_s16  ;;  %v3611_v50 = vld [vmem:[%s4695_s6 + $0x18] sm:$0xff] }
 0x46c   :  { %1323 = vrot.lane.b32.xlu2 %v1313_v51, %s3755_s25  ;;  %v1169_v52 = vpop.f32.mrf.mxu2  ;;  %v1214_v54 = vpop.f32.mrf.mxu3  ;;  %v4264_v51 = vld [vmem:[%s4691_s2 + $0x8] sm:$0xf] }
 0x46d   :  { %v1215_v55 = vadd.f32 %v1214_v54, %v1169_v52  ;;  %v3620_v52 = vld [vmem:[%s4693_s4 + $0xb0] sm:$0xff]  ;;  %v3621_v54 = vld [vmem:[%s4693_s4 + $0xb8] sm:$0xff] }
 0x46e   :  { %v1308_v58 = vpop.f32.mrf.mxu1 }
 0x46f   :  { %v1259_v56 = vpop.f32.mrf.mxu0 }
 0x470   :  { %v1265_v57 = vadd.f32 %v1259_v56, %v1215_v55  ;;  %v4279_v55 = vld [vmem:[%s4691_s2 + $0xc] sm:$0xf] }
 0x472   :  { %v1314_v62 = vadd.f32 %v1308_v58, %v1265_v57 }
 0x474   :  { %1377 = vperm.xlu2 %3644, %v3293_v61   ;;  %1325 = vrot.lane.b32.xlu0 %v1314_v62, %s3755_s25  ;;  %v1360_v2 = vpop.f32.mrf.mxu2  ;;  %v4290_v61 = vld [vmem:[%s4691_s2 + $0x10] sm:$0xf]  ;;  %v4295_v62 = vld [vmem:[%s4691_s2] sm:$0xf] }
 0x47c   :  { %1512 = vrot.lane.b32.xlu2 %v4057_v26, %s3756_s16  ;;  %1382 = vperm.xlu0 %3642, %v3294_v63   ;;  %v1362_v6 = vpop.f32.mrf.mxu2 }
 0x484   :  { %v1365_v27 = vpop.f32.mrf.mxu2 }
 0x48c   :  { %v1367_v32 = vpop.f32.mrf.mxu2 }
 0x4c5   :  { %v1320_v25 = vpop.permute.xlu0 %1319 }
 0x4c6   :  { %v1324_v1 = vpop.permute.xlu2 %1323  ;;  %v1331_v13 = vsel %vm217_vm1, %v4153_v7, %v1320_v25 }
 0x4c7   :  { %v1333_v29 = vsel %vm217_vm1, %v4171_v47, %v1324_v1  ;;  %v1079_v47 = vadd.f32 %v4161_v15, %v1029_v46  ;;  %v1361_v15 = vadd.f32 %v1360_v2, %v1331_v13  ;;  %v3434_v13 = vld [vmem:[%s4694_s5 + $0x50] sm:$0xff] }
 0x4c8   :  { %v1366_v10 = vadd.f32 %v1365_v27, %v1333_v29 }
 0x4c9   :  { %v1124_v34 = vadd.f32 %v4163_v19, %v1079_v47  ;;  %v4353_v47 = vld [vmem:[%s4691_s2 + $0x4] sm:$0xf] }
 0x4ca   :  { %v1397_v31 = vadd.f32 %v1388_v4, %v1366_v10  ;;  %v4314_v4 = vld [vmem:[%s4691_s2 + $0x18] sm:$0xf] }
 0x4cc   :  { %3665 = vtanh.f32 %v1397_v31 }
 0x4ce   :  { %v1378_v5 = vpop.permute.xlu2 %1377 }
 0x4cf   :  { %v1395_v38 = vadd.f32 %v1378_v5, %v1361_v15  ;;  %v4372_v15 = vld [vmem:[%s4691_s2 + $0x1c] sm:$0xf] }
 0x4d2   :  { %v3666_v40 = vpop.eup %3665 }
 0x4d5   :  { %v1322_v8 = vpop.permute.xlu1 %1321 }
 0x4d6   :  { %v4196_v21 = vpop.permute.xlu2 %1512  ;;  %v1332_v53 = vsel %vm217_vm1, %v1124_v34, %v1322_v8 }
 0x4d7   :  { %v4203_v17 = vsel %vm1516_vm3, %v4057_v26, %v4196_v21  ;;  %v1363_v12 = vadd.f32 %v1362_v6, %v1332_v53 }
 0x4dd   :  { %v4198_v23 = vpop.permute.xlu1 %1510 }
 0x4de   :  { %v4208_v18 = vsel %vm1516_vm3, %v4054_v20, %v4198_v23 }
 0x4df   :  { %v4212_v28 = vpack.c.bf16 %v4203_v17, %v4208_v18 }
 0x4e1   :  { %1561 = vmatpush.bf16.msrb.mxu0 %v4212_v28  ;;  %1601 = vmatpush.bf16.msrb.mxu1 %v4212_v28 }
 0x4e2   :  { %1641 = vmatpush.bf16.msrb.mxu2 %v4212_v28 }
 0x4e4   :  { %3345 = vmatmul.msk.bf16.vlgmr.msrb.gmra.mxu1 %vm68_vm0, %v3616_v30  ;;  %3331 = vmatmul.msk.bf16.vlgmr.msrb.gmra.mxu0 %vm68_vm0, %v3614_v35 }
 0x4e5   :  { %3359 = vmatmul.msk.bf16.vlgmr.msrb.gmra.mxu2 %vm68_vm0, %v3618_v9  ;;  %3376 = vmatpush.msk.msra.mxu0 %vm1708_vm4, %v4264_v51  ;;  %v4342_v9 = vld [vmem:[%s4691_s2 + $0x14] sm:$0xf] }
 0x4e6   :  { %v1326_v14 = vpop.permute.xlu0 %1325  ;;  %3387 = vmatpush.msk.msra.mxu2 %vm1708_vm4, %v4290_v61  ;;  %3381 = vmatpush.msk.msra.mxu1 %vm1708_vm4, %v4295_v62 }
 0x4e7   :  { %v1334_v33 = vsel %vm217_vm1, %v1126_v11, %v1326_v14  ;;  %3400 = vmatpush.msk.msrb.mxu0 %vm1708_vm4, %v4279_v55  ;;  %v3435_v14 = vld [vmem:[%s4694_s5 + $0x58] sm:$0xff] }
 0x4e8   :  { %v1368_v59 = vadd.f32 %v1367_v32, %v1334_v33  ;;  %3411 = vmatpush.msk.msrb.mxu2 %vm1708_vm4, %v4342_v9  ;;  %3405 = vmatpush.msk.msrb.mxu1 %vm1708_vm4, %v4353_v47 }
 0x4ea   :  { %v1398_v37 = vadd.f32 %v1393_v0, %v1368_v59 }
 0x4ec   :  { %3667 = vtanh.f32 %v1398_v37 }
 0x4ed   :  { %3669 = vtanh.f32 %v1395_v38 }
 0x4ee   :  { %v1383_v60 = vpop.permute.xlu0 %1382 }
 0x4ef   :  { %v1396_v39 = vadd.f32 %v1383_v60, %v1363_v12 }
 0x4f1   :  { %3671 = vtanh.f32 %v1396_v39 }
 0x4f2   :  { %v3668_v7 = vpop.eup %3667 }
 0x4f3   :  { %v1409_v41 = vpack.c.bf16 %v3668_v7, %v3666_v40  ;;  %v3670_v42 = vpop.eup %3669 }
 0x4f4   :  { %3332 = vmatmul.msk.bf16.gmra.mxu0 %vm68_vm0, %v3615_v48  ;;  %3346 = vmatmul.msk.bf16.gmra.mxu1 %vm68_vm0, %v3617_v49 }
 0x4f5   :  { %1457 = vmatpush.bf16.msra.mxu3 %v1409_v41  ;;  %3360 = vmatmul.msk.bf16.gmra.mxu2 %vm68_vm0, %v3619_v45 }
 0x4f7   :  { %v3672_v43 = vpop.eup %3671 }
 0x4f8   :  { %v1408_v19 = vpack.c.bf16 %v3672_v43, %v3670_v42 }
 0x4fa   :  { %1458 = vmatpush.bf16.msra.mxu3 %v1408_v19 }
 0x4fd   :  { %3313 = vmatmul.msk.bf16.vlgmr.msra.gmra.mxu3 %vm717_vm2, %v3610_v44 }
 0x4fe   :  { %1681 = vmatpush.bf16.msrb.mxu3 %v4212_v28 }
 0x502   :  { %3393 = vmatpush.msk.msra.mxu3 %vm1708_vm4, %v4314_v4 }
 0x50d   :  { %3314 = vmatmul.msk.bf16.gmra.mxu3 %vm717_vm2, %v3611_v50 }
 0x51d   :  { %3373 = vmatmul.msk.bf16.vlgmr.msrb.gmra.mxu3 %vm68_vm0, %v3620_v52 }
 0x51e   :  { %3417 = vmatpush.msk.msrb.mxu3 %vm1708_vm4, %v4372_v15 }
 0x52d   :  { %3374 = vmatmul.msk.bf16.gmra.mxu3 %vm68_vm0, %v3621_v54 }
 0x561   :  { %v1603_v56 = vpop.f32.mrf.mxu1  ;;  %v1563_v57 = vpop.f32.mrf.mxu0 }
 0x562   :  { %3377 = vmatmul.msk.f32.vlgmr.msra.gmra.mxu0 %vm1516_vm3, %v1603_v56  ;;  %1937 = vrot.lane.b32.xlu0 %v1563_v57, %s3756_s16 }
 0x563   :  { %2136 = vmatpush.bf16.msra.mxu0 %v4212_v28  ;;  %1889 = vrot.lane.b32.xlu2 %v1603_v56, %s3756_s16 }
 0x564   :  { %3382 = vmatmul.msk.f32.vlgmr.msra.gmra.mxu1 %vm1516_vm3, %v1563_v57 }
 0x568   :  { %v1643_v58 = vpop.f32.mrf.mxu2 }
 0x569   :  { %3388 = vmatmul.msk.f32.vlgmr.msra.gmra.mxu2 %vm1516_vm3, %v1643_v58  ;;  %v1565_v0 = vpop.f32.mrf.mxu0  ;;  %v1605_v1 = vpop.f32.mrf.mxu1 }
 0x56a   :  { %1987 = vrot.lane.b32.xlu0 %v1643_v58, %s3756_s16  ;;  %3378 = vmatmul.msk.f32.gmra.mxu0 %vm1516_vm3, %v1605_v1 }
 0x56c   :  { %3383 = vmatmul.msk.f32.gmra.mxu1 %vm1516_vm3, %v1565_v0 }
 0x570   :  { %v1645_v63 = vpop.f32.mrf.mxu2 }
 0x571   :  { %1989 = vrot.lane.b32.xlu1 %v1645_v63, %s3756_s16  ;;  %3389 = vmatmul.msk.f32.gmra.mxu2 %vm1516_vm3, %v1645_v63  ;;  %v1568_v8 = vpop.f32.mrf.mxu0  ;;  %v1608_v22 = vpop.f32.mrf.mxu1 }
 0x572   :  { %1891 = vrot.lane.b32.xlu0 %v1605_v1, %s3756_s16  ;;  %3379 = vmatmul.msk.f32.gmra.mxu0 %vm1516_vm3, %v1608_v22 }
 0x574   :  { %3384 = vmatmul.msk.f32.gmra.mxu1 %vm1516_vm3, %v1568_v8 }
 0x578   :  { %v1648_v5 = vpop.f32.mrf.mxu2 }
 0x579   :  { %3390 = vmatmul.msk.f32.gmra.mxu2 %vm1516_vm3, %v1648_v5  ;;  %v1570_v28 = vpop.f32.mrf.mxu0  ;;  %v1610_v46 = vpop.f32.mrf.mxu1 }
 0x57a   :  { %3380 = vmatmul.msk.f32.gmra.mxu0 %vm1516_vm3, %v1610_v46 }
 0x57c   :  { %3385 = vmatmul.msk.f32.gmra.mxu1 %vm1516_vm3, %v1570_v28 }
 0x580   :  { %v4309_v2 = vpop.f32.mrf.mxu3  ;;  %v1650_v25 = vpop.f32.mrf.mxu2 }
 0x581   :  { %3391 = vmatmul.msk.f32.gmra.mxu2 %vm1516_vm3, %v1650_v25 }
 0x588   :  { %v4319_v6 = vpop.f32.mrf.mxu3 }
 0x590   :  { %v4324_v27 = vpop.f32.mrf.mxu3 }
 0x598   :  { %v4328_v29 = vpop.f32.mrf.mxu3 }
 0x5a0   :  { %v1683_v30 = vpop.f32.mrf.mxu3 }
 0x5a1   :  { %2041 = vrot.lane.b32.xlu1 %v1683_v30, %s3756_s16  ;;  %3394 = vmatmul.msk.f32.vlgmr.msra.gmra.mxu3 %vm1516_vm3, %v1683_v30 }
 0x5a8   :  { %v1685_v35 = vpop.f32.mrf.mxu3 }
 0x5a9   :  { %1939 = vrot.lane.b32.xlu1 %v1565_v0, %s3756_s16  ;;  %2043 = vrot.lane.b32.xlu2 %v1685_v35, %s3756_s16 }
 0x5aa   :  { %3395 = vmatmul.msk.f32.gmra.mxu3 %vm1516_vm3, %v1685_v35  ;;  %v3613_v35 = vld [vmem:[%s4692_s3 + $0x28] sm:$0xff] }
 0x5b0   :  { %v1688_v36 = vpop.f32.mrf.mxu3 }
 0x5b1   :  { %1893 = vrot.lane.b32.xlu1 %v1608_v22, %s3756_s16  ;;  %1991 = vrot.lane.b32.xlu2 %v1648_v5, %s3756_s16 }
 0x5b2   :  { %2045 = vrot.lane.b32.xlu0 %v1688_v36, %s3756_s16  ;;  %3396 = vmatmul.msk.f32.gmra.mxu3 %vm1516_vm3, %v1688_v36 }
 0x5b8   :  { %v1690_v10 = vpop.f32.mrf.mxu3 }
 0x5b9   :  { %1941 = vrot.lane.b32.xlu2 %v1568_v8, %s3756_s16  ;;  %2047 = vrot.lane.b32.xlu1 %v1690_v10, %s3756_s16 }
 0x5ba   :  { %1993 = vrot.lane.b32.xlu0 %v1650_v25, %s3756_s16  ;;  %3397 = vmatmul.msk.f32.gmra.mxu3 %vm1516_vm3, %v1690_v10  ;;  %v3612_v25 = vld [vmem:[%s4692_s3 + $0x20] sm:$0xff] }
 0x5bd   :  { %v1890_v11 = vpop.permute.xlu2 %1889 }
 0x5be   :  { %3401 = vmatmul.msk.f32.vlgmr.msrb.gmra.mxu0 %vm1516_vm3, %v1890_v11 }
 0x5c1   :  { %1895 = vrot.lane.b32.xlu2 %v1610_v46, %s3756_s16  ;;  %2170 = vperm.xlu1 %3643, %v3435_v14  }
 0x5c2   :  { %1943 = vrot.lane.b32.xlu0 %v1570_v28, %s3756_s16 }
 0x5ca   :  { %2165 = vperm.xlu0 %3642, %v3434_v13  }
 0x5d4   :  { %v1938_v31 = vpop.permute.xlu0 %1937 }
 0x5d5   :  { %3406 = vmatmul.msk.f32.vlgmr.msrb.gmra.mxu1 %vm1516_vm3, %v1938_v31 }
 0x5dc   :  { %v1988_v32 = vpop.permute.xlu0 %1987 }
 0x5dd   :  { %3412 = vmatmul.msk.f32.vlgmr.msrb.gmra.mxu2 %vm1516_vm3, %v1988_v32 }
 0x5df   :  { %v1729_v34 = vpop.f32.mrf.mxu0 }
 0x5e1   :  { %v1773_v59 = vpop.f32.mrf.mxu1 }
 0x5e2   :  { %v1774_v50 = vadd.f32 %v1773_v59, %v1729_v34 }
 0x5e3   :  { %v1990_v33 = vpop.permute.xlu1 %1989 }
 0x5e4   :  { %v1892_v53 = vpop.permute.xlu0 %1891 }
 0x5e5   :  { %3413 = vmatmul.msk.f32.gmra.mxu2 %vm1516_vm3, %v1990_v33  ;;  %3402 = vmatmul.msk.f32.gmra.mxu0 %vm1516_vm3, %v1892_v53 }
 0x5e7   :  { %v1732_v38 = vpop.f32.mrf.mxu0 }
 0x5e9   :  { %v1776_v12 = vpop.f32.mrf.mxu1 }
 0x5ea   :  { %v1777_v60 = vadd.f32 %v1776_v12, %v1732_v38 }
 0x5ec   :  { %v1819_v37 = vpop.f32.mrf.mxu2 }
 0x5ed   :  { %v1831_v54 = vadd.f32 %v1819_v37, %v1774_v50  ;;  %v3443_v50 = vld [vmem:[%s4696_s7 + $0x58] sm:$0xff] }
 0x5ef   :  { %v1735_v41 = vpop.f32.mrf.mxu0 }
 0x5f1   :  { %v1779_v42 = vpop.f32.mrf.mxu1 }
 0x5f2   :  { %v1780_v43 = vadd.f32 %v1779_v42, %v1735_v41 }
 0x5f4   :  { %v1822_v39 = vpop.f32.mrf.mxu2 }
 0x5f5   :  { %v1832_v40 = vadd.f32 %v1822_v39, %v1777_v60 }
 0x5f7   :  { %v1738_v36 = vpop.f32.mrf.mxu0 }
 0x5f9   :  { %v1782_v10 = vpop.f32.mrf.mxu1 }
 0x5fc   :  { %v1825_v19 = vpop.f32.mrf.mxu2 }
 0x5fd   :  { %v1833_v45 = vadd.f32 %v1825_v19, %v1780_v43 }
 0x603   :  { %v2044_v7 = vpop.permute.xlu2 %2043 }
 0x604   :  { %v1828_v11 = vpop.f32.mrf.mxu2 }
 0x60b   :  { %v1992_v44 = vpop.permute.xlu2 %1991 }
 0x60c   :  { %3414 = vmatmul.msk.f32.gmra.mxu2 %vm1516_vm3, %v1992_v44 }
 0x613   :  { %v2042_v48 = vpop.permute.xlu1 %2041  ;;  %v1942_v52 = vpop.permute.xlu2 %1941 }
 0x614   :  { %3418 = vmatmul.msk.f32.vlgmr.msrb.gmra.mxu3 %vm1516_vm3, %v2042_v48 }
 0x61b   :  { %v1940_v49 = vpop.permute.xlu1 %1939  ;;  %v1896_v0 = vpop.permute.xlu2 %1895 }
 0x61c   :  { %3407 = vmatmul.msk.f32.gmra.mxu1 %vm1516_vm3, %v1940_v49  ;;  %3419 = vmatmul.msk.f32.gmra.mxu3 %vm1516_vm3, %v2044_v7 }
 0x623   :  { %v1894_v56 = vpop.permute.xlu1 %1893 }
 0x624   :  { %v2046_v57 = vpop.permute.xlu0 %2045  ;;  %v1869_v58 = vpop.f32.mrf.mxu3  ;;  %3403 = vmatmul.msk.f32.gmra.mxu0 %vm1516_vm3, %v1894_v56  ;;  %3408 = vmatmul.msk.f32.gmra.mxu1 %vm1516_vm3, %v1942_v52  ;;  %v3432_v52 = vld [vmem:[%s4694_s5 + $0x40] sm:$0xff] }
 0x625   :  { %v4383_v63 = vadd.f32 %v1869_v58, %v1831_v54  ;;  %3420 = vmatmul.msk.f32.gmra.mxu3 %vm1516_vm3, %v2046_v57 }
 0x62b   :  { %v2048_v1 = vpop.permute.xlu1 %2047 }
 0x62c   :  { %v1994_v5 = vpop.permute.xlu0 %1993  ;;  %3404 = vmatmul.msk.f32.gmra.mxu0 %vm1516_vm3, %v1896_v0 }
 0x62d   :  { %v1872_v8 = vpop.f32.mrf.mxu3  ;;  %3421 = vmatmul.msk.f32.gmra.mxu3 %vm1516_vm3, %v2048_v1  ;;  %3415 = vmatmul.msk.f32.gmra.mxu2 %vm1516_vm3, %v1994_v5 }
 0x62e   :  { %v4389_v22 = vadd.f32 %v1872_v8, %v1832_v40  ;;  %v3441_v8 = vld [vmem:[%s4696_s7 + $0x48] sm:$0xff] }
 0x634   :  { %v1944_v28 = vpop.permute.xlu0 %1943  ;;  %3430 = vmatmul.msk.bf16.vlgmr.msra.gmra.mxu0 %vm68_vm0, %v3612_v25  ;;  %v3433_v25 = vld [vmem:[%s4694_s5 + $0x48] sm:$0xff] }
 0x635   :  { %v1875_v46 = vpop.f32.mrf.mxu3  ;;  %3409 = vmatmul.msk.f32.gmra.mxu1 %vm1516_vm3, %v1944_v28  ;;  %v3442_v28 = vld [vmem:[%s4696_s7 + $0x50] sm:$0xff] }
 0x636   :  { %v4396_v30 = vadd.f32 %v1875_v46, %v1833_v45  ;;  %v3440_v45 = vld [vmem:[%s4696_s7 + $0x40] sm:$0xff] }
 0x63b   :  { %v1925_v14 = vpop.f32.mrf.mxu0 }
 0x63d   :  { %v1878_v13 = vpop.f32.mrf.mxu3 }
 0x644   :  { %3431 = vmatmul.msk.bf16.gmra.mxu0 %vm68_vm0, %v3613_v35 }
 0x652   :  { %v1973_v31 = vpop.f32.mrf.mxu1 }
 0x653   :  { %v1974_v32 = vadd.f32 %v1973_v31, %v1925_v14 }
 0x660   :  { %v2023_v33 = vpop.f32.mrf.mxu2 }
 0x661   :  { %v2035_v34 = vadd.f32 %v2023_v33, %v1974_v32  ;;  %v1783_v32 = vadd.f32 %v1782_v10, %v1738_v36 }
 0x662   :  { %v1928_v37 = vpop.f32.mrf.mxu0 }
 0x663   :  { %v1834_v33 = vadd.f32 %v1828_v11, %v1783_v32 }
 0x668   :  { %v2026_v60 = vpop.f32.mrf.mxu2 }
 0x68f   :  { %v2029_v19 = vpop.f32.mrf.mxu2 }
 0x697   :  { %v2077_v59 = vpop.f32.mrf.mxu3 }
 0x698   :  { %v2089_v53 = vadd.f32 %v2077_v59, %v2035_v34  ;;  %v2166_v34 = vpop.permute.xlu0 %2165 }
 0x699   :  { %v1976_v38 = vpop.f32.mrf.mxu1 }
 0x69a   :  { %v1977_v12 = vadd.f32 %v1976_v38, %v1928_v37  ;;  %2097 = vrot.lane.b32.xlu2 %v2089_v53, %s3757_s29  ;;  %v2171_v53 = vpop.permute.xlu1 %2170  ;;  %v1884_v37 = vadd.f32 %v1878_v13, %v1834_v33 }
 0x69c   :  { %v2036_v39 = vadd.f32 %v2026_v60, %v1977_v12 }
 0x69f   :  { %v2080_v40 = vpop.f32.mrf.mxu3 }
 0x6a0   :  { %v2090_v7 = vadd.f32 %v2080_v40, %v2036_v39 }
 0x6a1   :  { %v1931_v41 = vpop.f32.mrf.mxu0  ;;  %v1979_v42 = vpop.f32.mrf.mxu1 }
 0x6a2   :  { %2099 = vrot.lane.b32.xlu0 %v2090_v7, %s3757_s29  ;;  %v1980_v43 = vadd.f32 %v1979_v42, %v1931_v41 }
 0x6a4   :  { %v2037_v44 = vadd.f32 %v2029_v19, %v1980_v43 }
 0x6a8   :  { %v2083_v48 = vpop.f32.mrf.mxu3 }
 0x6a9   :  { %v2091_v49 = vadd.f32 %v2083_v48, %v2037_v44  ;;  %v1934_v54 = vpop.f32.mrf.mxu0 }
 0x6aa   :  { %2195 = vperm.xlu0 %3642, %v3440_v45  }
 0x6ab   :  { %2101 = vrot.lane.b32.xlu1 %v2091_v49, %s3757_s29 }
 0x6b0   :  { %v2032_v58 = vpop.f32.mrf.mxu2  ;;  %v2086_v1 = vpop.f32.mrf.mxu3 }
 0x6b1   :  { %v2138_v46 = vpop.f32.mrf.mxu0 }
 0x6b2   :  { %v1982_v56 = vpop.f32.mrf.mxu1  ;;  %2210 = vperm.xlu0 %3642, %v3443_v50  }
 0x6b3   :  { %v1983_v57 = vadd.f32 %v1982_v56, %v1934_v54  ;;  %2155 = vperm.xlu1 %3643, %v3432_v52   ;;  %v3623_v52 = vld [vmem:[%s4695_s6 + $0x28] sm:$0xff] }
 0x6b5   :  { %v2038_v0 = vadd.f32 %v2032_v58, %v1983_v57 }
 0x6b7   :  { %v2092_v5 = vadd.f32 %v2086_v1, %v2038_v0 }
 0x6b9   :  { %2103 = vrot.lane.b32.xlu2 %v2092_v5, %s3757_s29  ;;  %v2140_v35 = vpop.f32.mrf.mxu0 }
 0x6bb   :  { %2200 = vperm.xlu1 %3643, %v3441_v8  }
 0x6c1   :  { %2160 = vperm.xlu2 %3644, %v3433_v25   ;;  %v2143_v31 = vpop.f32.mrf.mxu0 }
 0x6c3   :  { %1519 = vrot.lane.b32.xlu1 %v4054_v20, %s3753_s19 }
 0x6c9   :  { %2205 = vperm.xlu2 %3644, %v3442_v28   ;;  %v2145_v38 = vpop.f32.mrf.mxu0 }
 0x6d1   :  { %1521 = vrot.lane.b32.xlu2 %v4057_v26, %s3753_s19 }
 0x6f4   :  { %v2098_v14 = vpop.permute.xlu2 %2097 }
 0x6f5   :  { %v2109_v10 = vsel %vm1516_vm3, %v4383_v63, %v2098_v14  ;;  %v3622_v63 = vld [vmem:[%s4695_s6 + $0x20] sm:$0xff] }
 0x6f6   :  { %v2139_v43 = vadd.f32 %v2138_v46, %v2109_v10 }
 0x713   :  { %v2104_v59 = vpop.permute.xlu2 %2103 }
 0x714   :  { %v2112_v20 = vsel %vm1516_vm3, %v1884_v37, %v2104_v59  ;;  %v2100_v60 = vpop.permute.xlu0 %2099 }
 0x715   :  { %v2146_v12 = vadd.f32 %v2145_v38, %v2112_v20  ;;  %v2110_v26 = vsel %vm1516_vm3, %v4389_v22, %v2100_v60 }
 0x716   :  { %v2141_v11 = vadd.f32 %v2140_v35, %v2110_v26 }
 0x717   :  { %v2176_v40 = vadd.f32 %v2171_v53, %v2146_v12 }
 0x719   :  { %3673 = vtanh.f32 %v2176_v40 }
 0x71b   :  { %v2161_v36 = vpop.permute.xlu2 %2160 }
 0x71c   :  { %v2174_v42 = vadd.f32 %v2161_v36, %v2141_v11  ;;  %v2196_v54 = vpop.permute.xlu0 %2195 }
 0x71d   :  { %v2102_v39 = vpop.permute.xlu1 %2101 }
 0x71e   :  { %v2111_v7 = vsel %vm1516_vm3, %v4396_v30, %v2102_v39 }
 0x71f   :  { %v2144_v41 = vadd.f32 %v2143_v31, %v2111_v7  ;;  %v3674_v45 = vpop.eup %3673 }
 0x721   :  { %v2175_v13 = vadd.f32 %v2166_v34, %v2144_v41 }
 0x723   :  { %3675 = vtanh.f32 %v2175_v13  ;;  %v2206_v33 = vpop.permute.xlu2 %2205 }
 0x724   :  { %3677 = vtanh.f32 %v2174_v42  ;;  %v2211_v26 = vpop.permute.xlu0 %2210 }
 0x725   :  { %v2156_v19 = vpop.permute.xlu1 %2155 }
 0x726   :  { %v2173_v44 = vadd.f32 %v2156_v19, %v2139_v43 }
 0x728   :  { %3679 = vtanh.f32 %v2173_v44 }
 0x729   :  { %v3676_v22 = vpop.eup %3675 }
 0x72a   :  { %v2187_v48 = vpack.c.bf16 %v3674_v45, %v3676_v22  ;;  %v3678_v30 = vpop.eup %3677 }
 0x72b   :  { %v1522_v41 = vpop.permute.xlu2 %1521 }
 0x72c   :  { %2235 = vmatpush.bf16.msra.mxu1 %v2187_v48 }
 0x72d   :  { %v2201_v5 = vpop.permute.xlu1 %2200 }
 0x72e   :  { %v3680_v49 = vpop.eup %3679 }
 0x72f   :  { %v2186_v50 = vpack.c.bf16 %v3678_v30, %v3680_v49 }
 0x731   :  { %2236 = vmatpush.bf16.msra.mxu1 %v2186_v50 }
 0x734   :  { %3452 = vmatmul.msk.bf16.vlgmr.msra.gmra.mxu1 %vm717_vm2, %v3622_v63  ;;  %v3626_v63 = vld [vmem:[%s4693_s4 + $0xc0] sm:$0xff] }
 0x735   :  { %v1520_v34 = vpop.permute.xlu1 %1519 }
 0x736   :  { %v1525_v37 = vsel %vm1516_vm3, %v4198_v23, %v1520_v34  ;;  %v1526_v23 = vsel %vm1516_vm3, %v4196_v21, %v1522_v41  ;;  %v3566_v34 = vld [vmem:[%s4694_s5 + $0x70] sm:$0xff] }
 0x744   :  { %3453 = vmatmul.msk.bf16.gmra.mxu1 %vm717_vm2, %v3623_v52  ;;  %v3628_v52 = vld [vmem:[%s4693_s4 + $0xd0] sm:$0xff] }
 0x7b1   :  { %v2238_v56 = vpop.f32.mrf.mxu1 }
 0x7b2   :  { %v2239_v57 = vadd.f32 %v2238_v56, %v2196_v54  ;;  %v3632_v56 = vld [vmem:[%s4693_s4 + $0xf0] sm:$0xff] }
 0x7b4   :  { %v2248_v58 = vadd.f32 2.0, %v2239_v57  ;;  %v3630_v57 = vld [vmem:[%s4693_s4 + $0xe0] sm:$0xff] }
 0x7b6   :  { %v2250_v0 = vsub.f32 0.0, %v2248_v58 }
 0x7b8   :  { %v2252_v1 = vmul.f32 1.442695, %v2250_v0 }
 0x7b9   :  { %v2240_v8 = vpop.f32.mrf.mxu1 }
 0x7ba   :  { %3681 = vpow2.f32 %v2252_v1  ;;  %v2241_v25 = vadd.f32 %v2240_v8, %v2201_v5 }
 0x7bc   :  { %v2249_v28 = vadd.f32 2.0, %v2241_v25 }
 0x7be   :  { %v2251_v46 = vsub.f32 0.0, %v2249_v28 }
 0x7c0   :  { %v3682_v35 = vpop.eup %3681  ;;  %v2254_v14 = vmul.f32 1.442695, %v2251_v46 }
 0x7c1   :  { %v2256_v31 = vadd.f32 1.0, %v3682_v35  ;;  %v2243_v32 = vpop.f32.mrf.mxu1 }
 0x7c2   :  { %3683 = vpow2.f32 %v2254_v14  ;;  %v2244_v59 = vadd.f32 %v2243_v32, %v2206_v33  ;;  %v3567_v33 = vld [vmem:[%s4694_s5 + $0x78] sm:$0xff] }
 0x7c3   :  { %3685 = vlog2.f32 %v2256_v31 }
 0x7c4   :  { %3687 = vrcp.f32 %v2256_v31  ;;  %v2266_v12 = vadd.f32 %v2244_v59, %v1525_v37 }
 0x7c8   :  { %v3684_v53 = vpop.eup %3683 }
 0x7c9   :  { %v3686_v20 = vpop.eup %3685  ;;  %v2257_v38 = vadd.f32 1.0, %v3684_v53  ;;  %v2245_v39 = vpop.f32.mrf.mxu1 }
 0x7ca   :  { %v3688_v60 = vpop.eup %3687  ;;  %v2259_v7 = vmul.f32 0.6931472, %v3686_v20  ;;  %v2246_v10 = vadd.f32 %v2245_v39, %v2211_v26 }
 0x7cb   :  { %3689 = vlog2.f32 %v2257_v38  ;;  %v2268_v40 = vmul.f32 %v3688_v60, %v2266_v12 }
 0x7cc   :  { %3691 = vrcp.f32 %v2257_v38  ;;  %v2262_v11 = vsub.f32 0.0, %v2259_v7  ;;  %v2267_v42 = vadd.f32 %v2246_v10, %v1526_v23 }
 0x7cd   :  { %v2270_v36 = vmul.f32 %v2268_v40, %v4048_v24 }
 0x7ce   :  { %v2272_v45 = vmul.f32 %v2262_v11, %v4048_v24 }
 0x7cf   :  { %3003 = vst.msk [vmem:[%s4701_s12 + $0x10] sm:$0xff] %vm217_vm1, %v2270_v36 }
 0x7d0   :  { %v2274_v21 = vsel %vm217_vm1, %v2272_v45, 0.0 }
 0x7d1   :  { %v3690_v13 = vpop.eup %3689 }
 0x7d2   :  { %v3692_v43 = vpop.eup %3691  ;;  %v2261_v19 = vmul.f32 0.6931472, %v3690_v13 }
 0x7d3   :  { %v2269_v44 = vmul.f32 %v3692_v43, %v2267_v42 }
 0x7d4   :  { %v2263_v22 = vsub.f32 0.0, %v2261_v19 }
 0x7d5   :  { %v2271_v48 = vmul.f32 %v2269_v44, %v4050_v16 }
 0x7d6   :  { %v2273_v30 = vmul.f32 %v2263_v22, %v4050_v16 }
 0x7d7   :  { %v2284_v49 = vpack.c.bf16 %v2271_v48, %v2270_v36  ;;  %3004 = vst.msk [vmem:[%s4701_s12 + $0x18] sm:$0xff] %vm217_vm1, %v2271_v48 }
 0x7d8   :  { %v2275_v50 = vsel %vm217_vm1, %v2273_v30, 0.0 }
 0x7d9   :  { %v4467_v54 = vadd.f32 %v2275_v50, %v2274_v21  ;;  %2318 = vmatpush.bf16.msra.mxu2 %v2284_v49  ;;  %2358 = vmatpush.bf16.msra.mxu3 %v2284_v49 }
 0x7da   :  { %2398 = vmatpush.bf16.msrb.mxu0 %v2284_v49  ;;  %2438 = vmatpush.bf16.msrb.mxu1 %v2284_v49 }
 0x7dc   :  { %3470 = vmatmul.msk.bf16.vlgmr.msra.gmra.mxu2 %vm68_vm0, %v3626_v63  ;;  %3484 = vmatmul.msk.bf16.vlgmr.msra.gmra.mxu3 %vm68_vm0, %v3628_v52 }
 0x7dd   :  { %3514 = vmatpush.msk.msrb.mxu2 %vm1708_vm4, %v4264_v51  ;;  %3512 = vmatmul.msk.bf16.vlgmr.msrb.gmra.mxu1 %vm68_vm0, %v3632_v56  ;;  %v3627_v51 = vld [vmem:[%s4693_s4 + $0xc8] sm:$0xff] }
 0x7de   :  { %3529 = vmatpush.msk.msra.mxu1 %vm1708_vm4, %v4314_v4  ;;  %3498 = vmatmul.msk.bf16.vlgmr.msrb.gmra.mxu0 %vm68_vm0, %v3630_v57 }
 0x7df   :  { %3519 = vmatpush.msk.msrb.mxu3 %vm1708_vm4, %v4295_v62  ;;  %3534 = vmatpush.msk.msra.mxu2 %vm1708_vm4, %v4279_v55  ;;  %v3629_v55 = vld [vmem:[%s4693_s4 + $0xd8] sm:$0xff] }
 0x7e0   :  { %3524 = vmatpush.msk.msra.mxu0 %vm1708_vm4, %v4290_v61  ;;  %3549 = vmatpush.msk.msrb.mxu1 %vm1708_vm4, %v4372_v15  ;;  %v3631_v61 = vld [vmem:[%s4693_s4 + $0xe8] sm:$0xff]  ;;  %v3633_v62 = vld [vmem:[%s4693_s4 + $0xf8] sm:$0xff]  ;;  %s3758_s4 = smov [#allocation2]  }
 0x7e1   :  { %3539 = vmatpush.msk.msra.mxu3 %vm1708_vm4, %v4353_v47 }
 0x7e2   :  { %3544 = vmatpush.msk.msrb.mxu0 %vm1708_vm4, %v4342_v9 }
 0x7ec   :  { %3471 = vmatmul.msk.bf16.gmra.mxu2 %vm68_vm0, %v3627_v51  ;;  %3485 = vmatmul.msk.bf16.gmra.mxu3 %vm68_vm0, %v3629_v55  ;;  %v3624_v51 = vld [vmem:[%s4692_s3 + $0x30] sm:$0xff] }
 0x7ed   :  { %3513 = vmatmul.msk.bf16.gmra.mxu1 %vm68_vm0, %v3633_v62 }
 0x7ee   :  { %3499 = vmatmul.msk.bf16.gmra.mxu0 %vm68_vm0, %v3631_v61 }
 0x85a   :  { %v2440_v4 = vpop.f32.mrf.mxu1 }
 0x85b   :  { %v2400_v9 = vpop.f32.mrf.mxu0  ;;  %3530 = vmatmul.msk.f32.vlgmr.msra.gmra.mxu1 %vm1516_vm3, %v2440_v4  ;;  %2761 = vrot.lane.b32.xlu2 %v2440_v4, %s3756_s16 }
 0x85c   :  { %3525 = vmatmul.msk.f32.vlgmr.msra.gmra.mxu0 %vm1516_vm3, %v2400_v9 }
 0x85f   :  { %v2320_v47 = vpop.f32.mrf.mxu2  ;;  %v2360_v15 = vpop.f32.mrf.mxu3 }
 0x860   :  { %2622 = vrot.lane.b32.xlu0 %v2360_v15, %s3756_s16  ;;  %3515 = vmatmul.msk.f32.vlgmr.msrb.gmra.mxu2 %vm1516_vm3, %v2360_v15 }
 0x861   :  { %2853 = vmatpush.bf16.msrb.mxu2 %v2284_v49  ;;  %2667 = vrot.lane.b32.xlu1 %v2320_v47, %s3756_s16 }
 0x862   :  { %3520 = vmatmul.msk.f32.vlgmr.msrb.gmra.mxu3 %vm1516_vm3, %v2320_v47  ;;  %v2442_v58 = vpop.f32.mrf.mxu1  ;;  %v3625_v47 = vld [vmem:[%s4692_s3 + $0x38] sm:$0xff] }
 0x863   :  { %v2402_v0 = vpop.f32.mrf.mxu0  ;;  %3531 = vmatmul.msk.f32.gmra.mxu1 %vm1516_vm3, %v2442_v58 }
 0x864   :  { %3526 = vmatmul.msk.f32.gmra.mxu0 %vm1516_vm3, %v2402_v0 }
 0x867   :  { %v2322_v1 = vpop.f32.mrf.mxu2  ;;  %v2362_v5 = vpop.f32.mrf.mxu3 }
 0x868   :  { %2763 = vrot.lane.b32.xlu0 %v2442_v58, %s3756_s16  ;;  %2624 = vrot.lane.b32.xlu2 %v2362_v5, %s3756_s16 }
 0x869   :  { %3516 = vmatmul.msk.f32.gmra.mxu2 %vm1516_vm3, %v2362_v5  ;;  %2712 = vrot.lane.b32.xlu1 %v2400_v9, %s3756_s16 }
 0x86a   :  { %3521 = vmatmul.msk.f32.gmra.mxu3 %vm1516_vm3, %v2322_v1  ;;  %v2445_v25 = vpop.f32.mrf.mxu1 }
 0x86b   :  { %v2405_v8 = vpop.f32.mrf.mxu0  ;;  %3532 = vmatmul.msk.f32.gmra.mxu1 %vm1516_vm3, %v2445_v25 }
 0x86c   :  { %3527 = vmatmul.msk.f32.gmra.mxu0 %vm1516_vm3, %v2405_v8 }
 0x86f   :  { %v2325_v28 = vpop.f32.mrf.mxu2  ;;  %v2365_v46 = vpop.f32.mrf.mxu3 }
 0x870   :  { %2714 = vrot.lane.b32.xlu2 %v2402_v0, %s3756_s16  ;;  %2669 = vrot.lane.b32.xlu0 %v2322_v1, %s3756_s16 }
 0x871   :  { %3517 = vmatmul.msk.f32.gmra.mxu2 %vm1516_vm3, %v2365_v46  ;;  %2671 = vrot.lane.b32.xlu1 %v2325_v28, %s3756_s16 }
 0x872   :  { %3522 = vmatmul.msk.f32.gmra.mxu3 %vm1516_vm3, %v2325_v28  ;;  %v2447_v14 = vpop.f32.mrf.mxu1 }
 0x873   :  { %v2407_v35 = vpop.f32.mrf.mxu0  ;;  %3533 = vmatmul.msk.f32.gmra.mxu1 %vm1516_vm3, %v2447_v14 }
 0x874   :  { %3528 = vmatmul.msk.f32.gmra.mxu0 %vm1516_vm3, %v2407_v35 }
 0x877   :  { %v2327_v31 = vpop.f32.mrf.mxu2  ;;  %v2367_v32 = vpop.f32.mrf.mxu3 }
 0x878   :  { %2626 = vrot.lane.b32.xlu0 %v2365_v46, %s3756_s16  ;;  %2673 = vrot.lane.b32.xlu2 %v2327_v31, %s3756_s16 }
 0x879   :  { %3518 = vmatmul.msk.f32.gmra.mxu2 %vm1516_vm3, %v2367_v32  ;;  %2628 = vrot.lane.b32.xlu1 %v2367_v32, %s3756_s16 }
 0x87a   :  { %3523 = vmatmul.msk.f32.gmra.mxu3 %vm1516_vm3, %v2327_v31 }
 0x880   :  { %2716 = vrot.lane.b32.xlu0 %v2405_v8, %s3756_s16  ;;  %2718 = vrot.lane.b32.xlu2 %v2407_v35, %s3756_s16 }
 0x881   :  { %2765 = vrot.lane.b32.xlu1 %v2445_v25, %s3756_s16 }
 0x888   :  { %2767 = vrot.lane.b32.xlu0 %v2447_v14, %s3756_s16 }
 0x889   :  { %2887 = vperm.xlu1 %3643, %v3567_v33  }
 0x890   :  { %2882 = vperm.xlu0 %3642, %v3566_v34  }
 0x8b5   :  { %v2762_v59 = vpop.permute.xlu2 %2761 }
 0x8b6   :  { %3550 = vmatmul.msk.f32.vlgmr.msrb.gmra.mxu1 %vm1516_vm3, %v2762_v59 }
 0x8c2   :  { %v2625_v20 = vpop.permute.xlu2 %2624 }
 0x8ca   :  { %v2715_v60 = vpop.permute.xlu2 %2714 }
 0x8d2   :  { %v2623_v53 = vpop.permute.xlu0 %2622  ;;  %v2674_v48 = vpop.permute.xlu2 %2673 }
 0x8d3   :  { %v2668_v37 = vpop.permute.xlu1 %2667  ;;  %3535 = vmatmul.msk.f32.vlgmr.msra.gmra.mxu2 %vm1516_vm3, %v2623_v53 }
 0x8d4   :  { %3540 = vmatmul.msk.f32.vlgmr.msra.gmra.mxu3 %vm1516_vm3, %v2668_v37 }
 0x8d8   :  { %v2606_v10 = vpop.f32.mrf.mxu1 }
 0x8d9   :  { %v2561_v41 = vpop.f32.mrf.mxu0 }
 0x8da   :  { %v2764_v38 = vpop.permute.xlu0 %2763  ;;  %v2719_v9 = vpop.permute.xlu2 %2718 }
 0x8db   :  { %v2713_v12 = vpop.permute.xlu1 %2712  ;;  %3536 = vmatmul.msk.f32.gmra.mxu2 %vm1516_vm3, %v2625_v20  ;;  %3551 = vmatmul.msk.f32.gmra.mxu1 %vm1516_vm3, %v2764_v38 }
 0x8dc   :  { %3545 = vmatmul.msk.f32.vlgmr.msrb.gmra.mxu0 %vm1516_vm3, %v2713_v12 }
 0x8e0   :  { %v2609_v30 = vpop.f32.mrf.mxu1 }
 0x8e1   :  { %v2564_v45 = vpop.f32.mrf.mxu0 }
 0x8e2   :  { %v2670_v39 = vpop.permute.xlu0 %2669 }
 0x8e3   :  { %v2672_v40 = vpop.permute.xlu1 %2671  ;;  %v2479_v26 = vpop.f32.mrf.mxu2  ;;  %3541 = vmatmul.msk.f32.gmra.mxu3 %vm1516_vm3, %v2670_v39 }
 0x8e4   :  { %3546 = vmatmul.msk.f32.gmra.mxu0 %vm1516_vm3, %v2715_v60 }
 0x8e5   :  { %v2520_v7 = vpop.f32.mrf.mxu3 }
 0x8e6   :  { %v2521_v36 = vadd.f32 %v2520_v7, %v2479_v26  ;;  %v3301_v26 = vld [vmem:[%s4696_s7 + $0x20] sm:$0xff] }
 0x8e8   :  { %v2573_v23 = vadd.f32 %v2561_v41, %v2521_v36  ;;  %v2612_v61 = vpop.f32.mrf.mxu1 }
 0x8e9   :  { %v2567_v57 = vpop.f32.mrf.mxu0 }
 0x8ea   :  { %v4557_v11 = vadd.f32 %v2606_v10, %v2573_v23  ;;  %v2627_v13 = vpop.permute.xlu0 %2626 }
 0x8eb   :  { %v2629_v42 = vpop.permute.xlu1 %2628  ;;  %3537 = vmatmul.msk.f32.gmra.mxu2 %vm1516_vm3, %v2627_v13  ;;  %3542 = vmatmul.msk.f32.gmra.mxu3 %vm1516_vm3, %v2672_v40 }
 0x8ec   :  { %v2482_v43 = vpop.f32.mrf.mxu2 }
 0x8ed   :  { %v2523_v19 = vpop.f32.mrf.mxu3 }
 0x8ee   :  { %v2524_v44 = vadd.f32 %v2523_v19, %v2482_v43  ;;  %v3564_v19 = vld [vmem:[%s4694_s5 + $0x60] sm:$0xff] }
 0x8f0   :  { %v2574_v22 = vadd.f32 %v2564_v45, %v2524_v44  ;;  %v4579_v1 = vpop.f32.mrf.mxu1  ;;  %v3574_v45 = vld [vmem:[%s4696_s7 + $0x70] sm:$0xff] }
 0x8f1   :  { %v2570_v0 = vpop.f32.mrf.mxu0 }
 0x8f2   :  { %v4561_v49 = vadd.f32 %v2609_v30, %v2574_v22  ;;  %v2717_v21 = vpop.permute.xlu0 %2716  ;;  %v3302_v22 = vld [vmem:[%s4696_s7 + $0x28] sm:$0xff]  ;;  %v3303_v30 = vld [vmem:[%s4696_s7 + $0x30] sm:$0xff] }
 0x8f3   :  { %v2766_v50 = vpop.permute.xlu1 %2765  ;;  %3538 = vmatmul.msk.f32.gmra.mxu2 %vm1516_vm3, %v2629_v42  ;;  %3543 = vmatmul.msk.f32.gmra.mxu3 %vm1516_vm3, %v2674_v48  ;;  %v3573_v42 = vld [vmem:[%s4696_s7 + $0x68] sm:$0xff] }
 0x8f4   :  { %3547 = vmatmul.msk.f32.gmra.mxu0 %vm1516_vm3, %v2717_v21  ;;  %3552 = vmatmul.msk.f32.gmra.mxu1 %vm1516_vm3, %v2766_v50  ;;  %v2485_v63 = vpop.f32.mrf.mxu2  ;;  %v3565_v48 = vld [vmem:[%s4694_s5 + $0x68] sm:$0xff]  ;;  %v3572_v21 = vld [vmem:[%s4696_s7 + $0x60] sm:$0xff]  ;;  %v3575_v50 = vld [vmem:[%s4696_s7 + $0x78] sm:$0xff] }
 0x8f5   :  { %v2526_v52 = vpop.f32.mrf.mxu3 }
 0x8f6   :  { %v2527_v56 = vadd.f32 %v2526_v52, %v2485_v63  ;;  %v3304_v63 = vld [vmem:[%s4696_s7 + $0x38] sm:$0xff] }
 0x8f8   :  { %v2575_v55 = vadd.f32 %v2567_v57, %v2527_v56 }
 0x8fa   :  { %v4570_v62 = vadd.f32 %v2612_v61, %v2575_v55  ;;  %v2768_v4 = vpop.permute.xlu0 %2767 }
 0x8fb   :  { %3562 = vmatmul.msk.bf16.vlgmr.msrb.gmra.mxu2 %vm68_vm0, %v3624_v51 }
 0x8fc   :  { %3548 = vmatmul.msk.f32.gmra.mxu0 %vm1516_vm3, %v2719_v9  ;;  %3553 = vmatmul.msk.f32.gmra.mxu1 %vm1516_vm3, %v2768_v4  ;;  %v2488_v15 = vpop.f32.mrf.mxu2 }
 0x8fd   :  { %v2529_v58 = vpop.f32.mrf.mxu3 }
 0x8fe   :  { %v2530_v55 = vadd.f32 %v2529_v58, %v2488_v15 }
 0x900   :  { %v2576_v4 = vadd.f32 %v2570_v0, %v2530_v55  ;;  %v3635_v55 = vld [vmem:[%s4695_s6 + $0x38] sm:$0xff] }
 0x902   :  { %v2883_v57 = vpop.permute.xlu0 %2882 }
 0x90b   :  { %3563 = vmatmul.msk.bf16.gmra.mxu2 %vm68_vm0, %v3625_v47 }
 0x933   :  { %v2794_v35 = vpop.f32.mrf.mxu1 }
 0x956   :  { %v2655_v5 = vpop.f32.mrf.mxu2 }
 0x957   :  { %v2700_v8 = vpop.f32.mrf.mxu3 }
 0x958   :  { %v2701_v25 = vadd.f32 %v2700_v8, %v2655_v5  ;;  %v2797_v59 = vpop.f32.mrf.mxu1  ;;  %v2888_v5 = vpop.permute.xlu1 %2887  ;;  %v2621_v8 = vadd.f32 %v4579_v1, %v2576_v4 }
 0x959   :  { %v2745_v28 = vpop.f32.mrf.mxu0 }
 0x95a   :  { %v2757_v46 = vadd.f32 %v2745_v28, %v2701_v25 }
 0x95c   :  { %v2806_v14 = vadd.f32 %v2794_v35, %v2757_v46 }
 0x95e   :  { %2814 = vrot.lane.b32.xlu2 %v2806_v14, %s3757_s29  ;;  %v2658_v31 = vpop.f32.mrf.mxu2 }
 0x961   :  { %v2748_v34 = vpop.f32.mrf.mxu0 }
 0x966   :  { %v2703_v32 = vpop.f32.mrf.mxu3 }
 0x967   :  { %v2704_v33 = vadd.f32 %v2703_v32, %v2658_v31 }
 0x969   :  { %v2758_v53 = vadd.f32 %v2748_v34, %v2704_v33 }
 0x96b   :  { %v2807_v37 = vadd.f32 %v2797_v59, %v2758_v53 }
 0x96d   :  { %2816 = vrot.lane.b32.xlu0 %v2807_v37, %s3757_s29 }
 0x96e   :  { %v2661_v20 = vpop.f32.mrf.mxu2  ;;  %v2706_v38 = vpop.f32.mrf.mxu3 }
 0x96f   :  { %v2707_v12 = vadd.f32 %v2706_v38, %v2661_v20 }
 0x971   :  { %v2751_v60 = vpop.f32.mrf.mxu0  ;;  %v2800_v39 = vpop.f32.mrf.mxu1 }
 0x972   :  { %v2759_v40 = vadd.f32 %v2751_v60, %v2707_v12 }
 0x974   :  { %v2808_v7 = vadd.f32 %v2800_v39, %v2759_v40 }
 0x975   :  { %1417 = vperm.xlu0 %3642, %v3301_v26  }
 0x976   :  { %2818 = vrot.lane.b32.xlu1 %v2808_v7, %s3757_s29  ;;  %v2664_v41 = vpop.f32.mrf.mxu2  ;;  %v2709_v36 = vpop.f32.mrf.mxu3 }
 0x977   :  { %v2710_v10 = vadd.f32 %v2709_v36, %v2664_v41 }
 0x979   :  { %v2754_v23 = vpop.f32.mrf.mxu0  ;;  %v2803_v43 = vpop.f32.mrf.mxu1 }
 0x97a   :  { %v2760_v13 = vadd.f32 %v2754_v23, %v2710_v10 }
 0x97c   :  { %v2809_v44 = vadd.f32 %v2803_v43, %v2760_v13  ;;  %v3634_v13 = vld [vmem:[%s4695_s6 + $0x30] sm:$0xff] }
 0x97d   :  { %2917 = vperm.xlu0 %3642, %v3573_v42  }
 0x97e   :  { %2872 = vperm.xlu1 %3643, %v3564_v19   ;;  %2820 = vrot.lane.b32.xlu2 %v2809_v44, %s3757_s29  ;;  %v2855_v52 = vpop.f32.mrf.mxu2 }
 0x985   :  { %2922 = vperm.xlu0 %3642, %v3574_v45  }
 0x986   :  { %1422 = vperm.xlu1 %3643, %v3302_v22   ;;  %2877 = vperm.xlu2 %3644, %v3565_v48   ;;  %v2857_v56 = vpop.f32.mrf.mxu2  ;;  %v3005_v22 = vld [vmem:[%s4698_s9] sm:$0xff] }
 0x987   :  { %v3725_v48 = vld [vmem:[%s4689_s0] sm:$0xff] }
 0x98e   :  { %1427 = vperm.xlu1 %3643, %v3303_v30   ;;  %2912 = vperm.xlu2 %3644, %v3572_v21   ;;  %v2860_v61 = vpop.f32.mrf.mxu2 }
 0x996   :  { %2927 = vperm.xlu1 %3643, %v3575_v50   ;;  %1432 = vperm.xlu2 %3644, %v3304_v63   ;;  %v2862_v28 = vpop.f32.mrf.mxu2 }
 0x9b8   :  { %v2815_v51 = vpop.permute.xlu2 %2814 }
 0x9b9   :  { %v2826_v1 = vsel %vm1516_vm3, %v4557_v11, %v2815_v51 }
 0x9ba   :  { %v2856_v38 = vadd.f32 %v2855_v52, %v2826_v1 }
 0x9d8   :  { %v2821_v9 = vpop.permute.xlu2 %2820 }
 0x9d9   :  { %v2829_v25 = vsel %vm1516_vm3, %v2621_v8, %v2821_v9 }
 0x9da   :  { %v2863_v46 = vadd.f32 %v2862_v28, %v2829_v25 }
 0x9dc   :  { %v2893_v33 = vadd.f32 %v2888_v5, %v2863_v46  ;;  %v3726_v5 = vld [vmem:[%s4689_s0 + $0x8] sm:$0xff] }
 0x9de   :  { %3693 = vtanh.f32 %v2893_v33 }
 0x9df   :  { %v2817_v47 = vpop.permute.xlu0 %2816 }
 0x9e0   :  { %v2827_v35 = vsel %vm1516_vm3, %v4561_v49, %v2817_v47  ;;  %v2878_v37 = vpop.permute.xlu2 %2877  ;;  %v782_v47 = vrot.slane %v4070_v3, 4 }
 0x9e1   :  { %v2858_v58 = vadd.f32 %v2857_v56, %v2827_v35 }
 0x9e3   :  { %v2891_v20 = vadd.f32 %v2878_v37, %v2858_v58 }
 0x9e4   :  { %v3694_v60 = vpop.eup %3693 }
 0x9e7   :  { %v1418_v14 = vpop.permute.xlu0 %1417 }
 0x9e8   :  { %v1461_v31 = vadd.f32 %v4309_v2, %v1418_v14  ;;  %v2819_v32 = vpop.permute.xlu1 %2818  ;;  %v2913_v43 = vpop.permute.xlu2 %2912 }
 0x9e9   :  { %v2828_v15 = vsel %vm1516_vm3, %v4570_v62, %v2819_v32 }
 0x9ea   :  { %v1470_v0 = vadd.f32 2.0, %v1461_v31  ;;  %v2861_v34 = vadd.f32 %v2860_v61, %v2828_v15  ;;  %v783_v31 = vadd.f32 %v782_v47, %v4070_v3 }
 0x9ec   :  { %v1472_v59 = vsub.f32 0.0, %v1470_v0  ;;  %v2892_v53 = vadd.f32 %v2883_v57, %v2861_v34  ;;  %v784_v58 = vrot.slane %v783_v31, 2 }
 0x9ee   :  { %v1474_v49 = vmul.f32 1.442695, %v1472_v59  ;;  %3695 = vtanh.f32 %v2892_v53  ;;  %v785_v1 = vadd.f32 %v784_v58, %v783_v31 }
 0x9f0   :  { %v2873_v2 = vpop.permute.xlu1 %2872  ;;  %3697 = vpow2.f32 %v1474_v49  ;;  %v1433_v57 = vpop.permute.xlu2 %1432  ;;  %v786_v3 = vrot.slane %v785_v1, 1 }
 0x9f1   :  { %v2890_v12 = vadd.f32 %v2873_v2, %v2856_v38  ;;  %3699 = vtanh.f32 %v2891_v20  ;;  %v1468_v61 = vadd.f32 %v4328_v29, %v1433_v57 }
 0x9f2   :  { %v787_v49 = vadd.f32 %v786_v3, %v785_v1 }
 0x9f3   :  { %3701 = vtanh.f32 %v2890_v12  ;;  %v1489_v8 = vadd.f32 %v3726_v5, %v1468_v61 }
 0x9f4   :  { %v3696_v62 = vpop.eup %3695 }
 0x9f5   :  { %v2904_v39 = vpack.c.bf16 %v3694_v60, %v3696_v62 }
 0x9f6   :  { %v3698_v40 = vpop.eup %3697 }
 0x9f7   :  { %2952 = vmatpush.bf16.msrb.mxu3 %v2904_v39  ;;  %v3700_v26 = vpop.eup %3699  ;;  %v1478_v36 = vadd.f32 1.0, %v3698_v40 }
 0x9f8   :  { %v1423_v11 = vpop.permute.xlu1 %1422 }
 0x9f9   :  { %v3702_v7 = vpop.eup %3701  ;;  %v1463_v41 = vadd.f32 %v4319_v6, %v1423_v11  ;;  %3703 = vrcp.f32 %v1478_v36  ;;  %v3006_v6 = vld [vmem:[%s4698_s9 + $0x8] sm:$0xff] }
 0x9fa   :  { %v2903_v10 = vpack.c.bf16 %v3700_v26, %v3702_v7  ;;  %3048 = vmatpush.msra.mxu1 %v3006_v6  ;;  %v2918_v26 = vpop.permute.xlu0 %2917 }
 0x9fb   :  { %v1471_v23 = vadd.f32 2.0, %v1463_v41 }
 0x9fc   :  { %2953 = vmatpush.bf16.msrb.mxu3 %v2903_v10  ;;  %3049 = vmatpush.msra.mxu1 %v3005_v22 }
 0x9fd   :  { %v1473_v42 = vsub.f32 0.0, %v1471_v23 }
 0x9ff   :  { %v1476_v19 = vmul.f32 1.442695, %v1473_v42  ;;  %3584 = vmatmul.msk.bf16.vlgmr.msrb.gmra.mxu3 %vm717_vm2, %v3634_v13  ;;  %v3704_v21 = vpop.eup %3703 }
 0xa00   :  { %v1428_v44 = vpop.permute.xlu1 %1427 }
 0xa01   :  { %3705 = vpow2.f32 %v1476_v19  ;;  %v1466_v45 = vadd.f32 %v4324_v27, %v1428_v44  ;;  %v3007_v19 = vld [vmem:[%s4699_s10] sm:$0xff] }
 0xa02   :  { %3707 = vlog2.f32 %v1478_v36  ;;  %3026 = vmatpush.msra.mxu0 %v3007_v19 }
 0xa03   :  { %v1488_v30 = vadd.f32 %v3725_v48, %v1466_v45 }
 0xa05   :  { %v1490_v50 = vmul.f32 %v3704_v21, %v1488_v30 }
 0xa07   :  { %v3706_v63 = vpop.eup %3705  ;;  %v1492_v27 = vmul.f32 %v1490_v50, %v4048_v24 }
 0xa08   :  { %v3708_v52 = vpop.eup %3707  ;;  %v1479_v56 = vadd.f32 1.0, %v3706_v63  ;;  %v2928_v63 = vpop.permute.xlu1 %2927 }
 0xa09   :  { %1506 = vst.msk [vmem:[%s4700_s11] sm:$0xff] %vm68_vm0, %v1492_v27  ;;  %v1481_v51 = vmul.f32 0.6931472, %v3708_v52 }
 0xa0a   :  { %3709 = vlog2.f32 %v1479_v56 }
 0xa0b   :  { %3711 = vrcp.f32 %v1479_v56  ;;  %v1484_v4 = vsub.f32 0.0, %v1481_v51 }
 0xa0d   :  { %v1494_v35 = vmul.f32 %v1484_v4, %v4048_v24 }
 0xa0f   :  { %3585 = vmatmul.msk.bf16.gmra.mxu3 %vm717_vm2, %v3635_v55  ;;  %v1496_v33 = vsel %vm68_vm0, %v1494_v35, 0.0  ;;  %v2277_v55 = vrot.slane %v4467_v54, 4 }
 0xa10   :  { %v3710_v9 = vpop.eup %3709 }
 0xa11   :  { %v3712_v25 = vpop.eup %3711  ;;  %v1483_v28 = vmul.f32 0.6931472, %v3710_v9 }
 0xa12   :  { %v1491_v46 = vmul.f32 %v3712_v25, %v1489_v8  ;;  %v2278_v8 = vadd.f32 %v2277_v55, %v4467_v54 }
 0xa13   :  { %v1485_v14 = vsub.f32 0.0, %v1483_v28 }
 0xa14   :  { %v1493_v29 = vmul.f32 %v1491_v46, %v4050_v16  ;;  %v2279_v35 = vrot.slane %v2278_v8, 2 }
 0xa15   :  { %v1495_v32 = vmul.f32 %v1485_v14, %v4050_v16 }
 0xa16   :  { %1507 = vst.msk [vmem:[%s4700_s11 + $0x8] sm:$0xff] %vm68_vm0, %v1493_v29 }
 0xa17   :  { %v1497_v15 = vsel %vm68_vm0, %v1495_v32, 0.0 }
 0xa18   :  { %v1498_v0 = vadd.f32 %v1497_v15, %v1496_v33 }
 0xa1a   :  { %v1499_v34 = vrot.slane %v1498_v0, 4 }
 0xa1c   :  { %v1500_v59 = vadd.f32 %v1499_v34, %v1498_v0 }
 0xa1e   :  { %v1501_v53 = vrot.slane %v1500_v59, 2 }
 0xa20   :  { %v1502_v37 = vadd.f32 %v1501_v53, %v1500_v59 }
 0xa22   :  { %v1503_v20 = vrot.slane %v1502_v37, 1 }
 0xa24   :  { %v1504_v38 = vadd.f32 %v1503_v20, %v1502_v37 }
 0xa26   :  { %v1505_v2 = vadd.f32 %v1504_v38, %v787_v49 }
 0xa28   :  { %3587 = vmatmul.msk.f32.vlgmr.msra.gmra.mxu1 %vm68_vm0, %v1505_v2 }
 0xa82   :  { %v2955_v12 = vpop.f32.mrf.mxu3 }
 0xa83   :  { %v2956_v60 = vadd.f32 %v2955_v12, %v2913_v43  ;;  %v2923_v43 = vpop.permute.xlu0 %2922 }
 0xa85   :  { %v2965_v62 = vadd.f32 2.0, %v2956_v60 }
 0xa87   :  { %v2967_v39 = vsub.f32 0.0, %v2965_v62 }
 0xa89   :  { %v2969_v40 = vmul.f32 1.442695, %v2967_v39 }
 0xa8a   :  { %v2957_v11 = vpop.f32.mrf.mxu3 }
 0xa8b   :  { %3713 = vpow2.f32 %v2969_v40  ;;  %v2958_v7 = vadd.f32 %v2957_v11, %v2918_v26 }
 0xa8d   :  { %v2966_v41 = vadd.f32 2.0, %v2958_v7 }
 0xa8f   :  { %v2968_v36 = vsub.f32 0.0, %v2966_v41 }
 0xa91   :  { %v3714_v10 = vpop.eup %3713  ;;  %v2971_v23 = vmul.f32 1.442695, %v2968_v36 }
 0xa92   :  { %v2973_v13 = vadd.f32 1.0, %v3714_v10  ;;  %v2960_v42 = vpop.f32.mrf.mxu3 }
 0xa93   :  { %3715 = vpow2.f32 %v2971_v23  ;;  %v2961_v44 = vadd.f32 %v2960_v42, %v2923_v43 }
 0xa94   :  { %3717 = vlog2.f32 %v2973_v13 }
 0xa95   :  { %3719 = vrcp.f32 %v2973_v13  ;;  %v2983_v48 = vadd.f32 %v2961_v44, %v4208_v18 }
 0xa99   :  { %v3716_v45 = vpop.eup %3715 }
 0xa9a   :  { %v3718_v6 = vpop.eup %3717  ;;  %v2974_v22 = vadd.f32 1.0, %v3716_v45  ;;  %v2962_v21 = vpop.f32.mrf.mxu3 }
 0xa9b   :  { %v3720_v30 = vpop.eup %3719  ;;  %v2976_v27 = vmul.f32 0.6931472, %v3718_v6  ;;  %v2963_v56 = vadd.f32 %v2962_v21, %v2928_v63 }
 0xa9c   :  { %3721 = vlog2.f32 %v2974_v22  ;;  %v2985_v50 = vmul.f32 %v3720_v30, %v2983_v48 }
 0xa9d   :  { %3723 = vrcp.f32 %v2974_v22  ;;  %v2979_v57 = vsub.f32 0.0, %v2976_v27  ;;  %v2984_v18 = vadd.f32 %v2963_v56, %v4203_v17 }
 0xa9e   :  { %v2987_v52 = vmul.f32 %v2985_v50, %v4048_v24 }
 0xa9f   :  { %v2989_v47 = vmul.f32 %v2979_v57, %v4048_v24  ;;  %v2280_v24 = vadd.f32 %v2279_v35, %v2278_v8 }
 0xaa0   :  { %3001 = vst.msk [vmem:[%s4701_s12] sm:$0xff] %vm217_vm1, %v2987_v52 }
 0xaa1   :  { %v2991_v46 = vsel %vm217_vm1, %v2989_v47, 0.0  ;;  %v2281_v54 = vrot.slane %v2280_v24, 1 }
 0xaa2   :  { %v3722_v51 = vpop.eup %3721 }
 0xaa3   :  { %v3724_v61 = vpop.eup %3723  ;;  %v2978_v4 = vmul.f32 0.6931472, %v3722_v51  ;;  %v2282_v58 = vadd.f32 %v2281_v54, %v2280_v24 }
 0xaa4   :  { %v2986_v9 = vmul.f32 %v3724_v61, %v2984_v18 }
 0xaa5   :  { %v2980_v5 = vsub.f32 0.0, %v2978_v4  ;;  %v3051_v34 = vpop.f32.mrf.mxu1 }
 0xaa6   :  { %v2988_v25 = vmul.f32 %v2986_v9, %v4050_v16 }
 0xaa7   :  { %v2990_v28 = vmul.f32 %v2980_v5, %v4050_v16 }
 0xaa8   :  { %3002 = vst.msk [vmem:[%s4701_s12 + $0x8] sm:$0xff] %vm217_vm1, %v2988_v25  ;;  %s3065_s12 = sshll.u32 %s3758_s4, 4  ;;  %s3066_s12 = int_to_ptr.vmem [resolvable:$true] %s3065_s12 }
 0xaa9   :  { %v2992_v17 = vsel %vm217_vm1, %v2990_v28, 0.0 }
 0xaaa   :  { %v2993_v14 = vadd.f32 %v2992_v17, %v2991_v46 }
 0xaac   :  { %v2994_v31 = vrot.slane %v2993_v14, 4 }
 0xaae   :  { %v2995_v29 = vadd.f32 %v2994_v31, %v2993_v14 }
 0xab0   :  { %v2996_v32 = vrot.slane %v2995_v29, 2 }
 0xab2   :  { %v2997_v33 = vadd.f32 %v2996_v32, %v2995_v29 }
 0xab4   :  { %v2998_v15 = vrot.slane %v2997_v33, 1 }
 0xab6   :  { %v2999_v16 = vadd.f32 %v2998_v15, %v2997_v33 }
 0xab8   :  { %v3000_v0 = vadd.f32 %v2999_v16, %v2282_v58 }
 0xaba   :  { %3586 = vmatmul.msk.f32.vlgmr.msra.gmra.mxu0 %vm217_vm1, %v3000_v0 }
 0xb37   :  { %v3028_v1 = vpop.f32.mrf.mxu0 }
 0xb38   :  { %v3052_v59 = vadd.f32 %v3051_v34, %v3028_v1 }
 0xb3a   :  { %3055 = vst.msk [vmem:[#allocation2] sm:$0x1] %vm3054_vm5, %v3052_v59 }
 0xb3b   :  { %3070 = dma.vmem_to_hbm [thread:$0]  %s3066_s12, 16, %s3068_s14, [#allocation3]  }
 0xb3c   :  { %3751 = dma.done.wait [#allocation3], 16  }
 0xb3d   :  { %3752 = vsyncadd [#allocation3], 4294967280 }
 0xb3e   :  { %3079 = vsyncpa [#allocation3], 1 }

</bundles_post_ra>
